<compile_context>
chip_gen: v7x
topology: tpu7x:2x2x1
jax: 0.10.0
libtpu: 0.0.40
codegen_flags: <defaults>
</compile_context>

<pallas_src>
import functools
import math

import jax
import jax.numpy as jnp
from jax import lax
from jax.experimental import pallas as pl
from jax.experimental.pallas import tpu as pltpu

LOG2 = math.log(2.0)


def _round_up(x, m):
    return ((x + m - 1) // m) * m


def _ssp(v):
    # ShiftedSoftplus: softplus(x) - log(2); exactly 0 at 0 (keeps padding exact).
    return jax.nn.softplus(v) - LOG2


def _make_kernel(*, cutoff, smooth, e_tile, n_pad, half_pad):
    f32 = jnp.float32

    def kernel(
        tt_ref, x_ref, src_ref, dst_ref, elen_ref, eattr_ref, freq_ref,
        e1_wt_ref, e1_b_ref, e2_wt_ref, e2_b_ref,
        c1_m1_wt_ref, c1_m2_wt_ref, c1_m2_b_ref,
        c2_m1_wt_ref, c2_m2_wt_ref, c2_m2_b_ref,
        te_wt_ref, te_b_ref, lin_wt_ref, lin_b_ref,
        out_ref,
        w_scr, x1_scr, acc_scr,
    ):
        p = pl.program_id(0)            # phase: 0 = conv1 edge pass, 1 = conv2
        t = pl.program_id(1)            # edge tile
        n_tiles = pl.num_programs(1)
        off = pl.multiple_of(t * e_tile, e_tile)

        # ---- phase 0, tile 0: init conv1 (x1 = x @ m1, zero accumulator) ----
        @pl.when((p == 0) & (t == 0))
        def _():
            x1_scr[...] = jnp.dot(x_ref[...], c1_m1_wt_ref[...],
                                  preferred_element_type=f32)
            acc_scr[...] = jnp.zeros_like(acc_scr)

        # ---- phase 1, tile 0: finalize conv1, add time emb, init conv2 ------
        @pl.when((p == 1) & (t == 0))
        def _():
            y1 = jnp.dot(acc_scr[...], c1_m2_wt_ref[...],
                         preferred_element_type=f32) + c1_m2_b_ref[...]
            # fused sin|cos time embedding along the 2*half_pad lane axis
            emb = tt_ref[...] * freq_ref[...]                    # [N_pad, 2*half_pad]
            lane = lax.broadcasted_iota(jnp.int32, emb.shape, 1)
            fused = jnp.where(lane < half_pad, jnp.sin(emb), jnp.cos(emb))
            fused = fused * jax.nn.sigmoid(fused)                # swish
            t_emb = jnp.dot(fused, te_wt_ref[...],
                            preferred_element_type=f32) + te_b_ref[...]
            x2 = _ssp(y1 + t_emb)
            x1_scr[...] = jnp.dot(x2, c2_m1_wt_ref[...],
                                  preferred_element_type=f32)
            acc_scr[...] = jnp.zeros_like(acc_scr)

        # ---- edge-filter MLP: computed in phase 0 only, cached for phase 1 --
        @pl.when(p == 0)
        def _():
            elen = elen_ref[...]                                 # [e_tile, 1]
            if smooth:
                C = 0.5 * (jnp.cos(elen * (math.pi / cutoff)) + 1.0)
                C = C * (elen <= cutoff).astype(f32) * (elen >= 0.0).astype(f32)
            else:
                C = (elen <= cutoff).astype(f32)
            h = jnp.dot(eattr_ref[...], e1_wt_ref[...],
                        preferred_element_type=f32) + e1_b_ref[...]
            h = _ssp(h)
            w = jnp.dot(h, e2_wt_ref[...],
                        preferred_element_type=f32) + e2_b_ref[...]
            w_scr[pl.ds(off, e_tile), :] = w * C                 # [e_tile, F_pad]

        # ---- edge pass (both phases): gather, modulate by W, scatter-add ----
        w_tile = w_scr[pl.ds(off, e_tile), :]                    # [e_tile, F_pad]
        src_c = src_ref[...]                                     # [e_tile, 1] i32
        dst_r = dst_ref[...]                                     # [1, e_tile] i32
        gather = (lax.broadcasted_iota(jnp.int32, (e_tile, n_pad), 1)
                  == src_c).astype(f32)                          # in-register one-hot
        x_j = jnp.dot(gather, x1_scr[...], preferred_element_type=f32)
        msg = x_j * w_tile
        scatter = (lax.broadcasted_iota(jnp.int32, (n_pad, e_tile), 0)
                   == dst_r).astype(f32)
        acc_scr[...] += jnp.dot(scatter, msg, preferred_element_type=f32)

        # ---- phase 1, last tile: finalize conv2, final linear, activation ---
        @pl.when((p == 1) & (t == n_tiles - 1))
        def _():
            y2 = jnp.dot(acc_scr[...], c2_m2_wt_ref[...],
                         preferred_element_type=f32) + c2_m2_b_ref[...]
            z = _ssp(y2)
            z = jnp.dot(z, lin_wt_ref[...],
                        preferred_element_type=f32) + lin_b_ref[...]
            out_ref[...] = _ssp(z)

    return kernel


def interaction_block(tt, xx, edge_index, edge_length, edge_attr, params,
                      *, cutoff, smooth, time_channels, edge_tile=512):
    """Pallas implementation of InteractionBlock.forward.

    tt: [N,1] f32, xx: [N,H] f32, edge_index: [2,E] int (row0=src j, row1=dst i),
    edge_length: [E,1] f32, edge_attr: [E,Ec] f32.
    """
    N, H = xx.shape
    E = edge_index.shape[1]
    Ec = edge_attr.shape[1]
    F = params["e2_w"].shape[0]
    assert time_channels % 2 == 0 and time_channels >= 4

    f32 = jnp.float32
    H_pad = _round_up(H, 128)
    F_pad = _round_up(F, 128)
    half = time_channels // 2
    half_pad = _round_up(half, 64)
    tc_pad = 2 * half_pad
    N_pad = _round_up(N, 8)

    # edge tiling: multiple of 128 when tiled, else full (padded to 8)
    E8 = _round_up(E, 8)
    if E8 <= edge_tile:
        e_tile = E8
    else:
        e_tile = _round_up(edge_tile, 128)
    E_pad = _round_up(E, e_tile)
    n_tiles = E_pad // e_tile

    def pad2(a, r, c, fill=0):
        return jnp.pad(a, ((0, r - a.shape[0]), (0, c - a.shape[1])),
                       constant_values=fill)

    src = edge_index[0].astype(jnp.int32)
    dst = edge_index[1].astype(jnp.int32)
    tt_p = pad2(tt.astype(f32), N_pad, 1)
    x_p = pad2(xx.astype(f32), N_pad, H_pad)
    src_p = pad2(src.reshape(E, 1), E_pad, 1)
    dst_p = pad2(dst.reshape(1, E), 1, E_pad)
    # padded edges get length > cutoff so their filter W is exactly 0
    elen_p = pad2(edge_length.astype(f32), E_pad, 1, fill=cutoff + 1.0)
    eattr_p = pad2(edge_attr.astype(f32), E_pad, Ec)

    freq = jnp.exp(jnp.arange(half, dtype=f32) * (-math.log(1000.0) / (half - 1)))
    freq_cat = jnp.zeros((1, tc_pad), f32)
    freq_cat = freq_cat.at[0, :half].set(freq)
    freq_cat = freq_cat.at[0, half_pad:half_pad + half].set(freq)

    def wt(w, rows, cols):       # torch [out,in] -> padded [in_pad, out_pad]
        return pad2(w.T.astype(f32), rows, cols)

    def bias(b, cols):
        return pad2(b.reshape(1, -1).astype(f32), 1, cols)

    te_w = params["te_w"].astype(f32)                       # [H, time_channels]
    te_fused = jnp.zeros((tc_pad, H_pad), f32)               # [sin rows | cos rows]
    te_fused = te_fused.at[:half, :H].set(te_w[:, :half].T)
    te_fused = te_fused.at[half_pad:half_pad + half, :H].set(te_w[:, half:].T)

    weights = (
        wt(params["e1_w"], Ec, F_pad), bias(params["e1_b"], F_pad),
        wt(params["e2_w"], F_pad, F_pad), bias(params["e2_b"], F_pad),
        wt(params["c1_m1_w"], H_pad, F_pad),
        wt(params["c1_m2_w"], F_pad, H_pad), bias(params["c1_m2_b"], H_pad),
        wt(params["c2_m1_w"], H_pad, F_pad),
        wt(params["c2_m2_w"], F_pad, H_pad), bias(params["c2_m2_b"], H_pad),
        te_fused, bias(params["te_b"], H_pad),
        wt(params["lin_w"], H_pad, H_pad), bias(params["lin_b"], H_pad),
    )
    inputs = (tt_p, x_p, src_p, dst_p, elen_p, eattr_p, freq_cat) + weights

    def full_spec(a):
        nd = a.ndim
        return pl.BlockSpec(a.shape, lambda p, t: (0,) * nd)

    in_specs = [
        full_spec(tt_p), full_spec(x_p),
        pl.BlockSpec((e_tile, 1), lambda p, t: (t, 0)),          # src (both phases)
        pl.BlockSpec((1, e_tile), lambda p, t: (0, t)),          # dst (both phases)
        # edge_length / edge_attr are only consumed in phase 0; pin to block 0
        # in phase 1 so they are not re-streamed from HBM for conv2.
        pl.BlockSpec((e_tile, 1), lambda p, t: (t * (1 - p), 0)),
        pl.BlockSpec((e_tile, Ec), lambda p, t: (t * (1 - p), 0)),
        full_spec(freq_cat),
    ] + [full_spec(w) for w in weights]

    out_spec = pl.BlockSpec((N_pad, H_pad), lambda p, t: (0, 0))

    scratch_shapes = [
        pltpu.VMEM((E_pad, F_pad), f32),    # W cache (shared edge MLP output)
        pltpu.VMEM((N_pad, F_pad), f32),    # x @ node_mlp1 for the current conv
        pltpu.VMEM((N_pad, F_pad), f32),    # scatter-add accumulator
    ]

    # ---- VMEM budget & cost hints ------------------------------------------
    resident = sum(int(a.size) * 4 for a in (tt_p, x_p, freq_cat) + weights)
    streamed = 2 * 4 * (e_tile * (1 + 1 + 1 + Ec))   # double-buffered edge tiles
    scratch = 4 * (E_pad * F_pad + 2 * N_pad * F_pad)
    out_bytes = 4 * N_pad * H_pad
    vmem_est = resident + streamed + scratch + 2 * out_bytes
    vmem_limit = int(min(48 * 1024 * 1024,
                         max(2 * vmem_est, 16 * 1024 * 1024)))

    flops = int(
        2 * E_pad * (Ec * F_pad + F_pad * F_pad)        # edge MLP (once)
        + 2 * (4 * E_pad * N_pad * F_pad)               # gather + scatter, 2 convs
        + 2 * (4 * N_pad * H_pad * F_pad)               # node_mlp1/2, 2 convs
        + 2 * N_pad * tc_pad * H_pad                    # time projection
        + 2 * N_pad * H_pad * H_pad)                    # final linear
    transc = int(E_pad * F_pad + 4 * N_pad * H_pad + 3 * N_pad * tc_pad)
    bytes_acc = int(sum(int(a.size) * 4 for a in inputs) + out_bytes)

    kernel = _make_kernel(cutoff=float(cutoff), smooth=bool(smooth),
                          e_tile=e_tile, n_pad=N_pad, half_pad=half_pad)

    out = pl.pallas_call(
        kernel,
        out_shape=jax.ShapeDtypeStruct((N_pad, H_pad), f32),
        grid_spec=pltpu.PrefetchScalarGridSpec(
            num_scalar_prefetch=0,
            grid=(2, n_tiles),
            in_specs=in_specs,
            out_specs=out_spec,
            scratch_shapes=scratch_shapes),
        compiler_params=pltpu.CompilerParams(
            # both axes are sequential reductions: phase 1 depends on phase 0,
            # all edge tiles hit the same accumulator.
            dimension_semantics=("arbitrary", "arbitrary"),
            vmem_limit_bytes=vmem_limit),
        cost_estimate=pl.CostEstimate(flops=flops, transcendentals=transc,
                                      bytes_accessed=bytes_acc),
    )(*inputs)
    return out[:N, :H]


def interaction_block_ref(tt, xx, edge_index, edge_length, edge_attr, params,
                          *, cutoff, smooth, time_channels):
    """Pure-JAX reference (mirrors the PyTorch semantics)."""
    N, H = xx.shape
    src, dst = edge_index[0], edge_index[1]

    if smooth:
        C = 0.5 * (jnp.cos(edge_length * math.pi / cutoff) + 1.0)
        C = C * (edge_length <= cutoff) * (edge_length >= 0.0)
    else:
        C = (edge_length <= cutoff).astype(jnp.float32)

    h = _ssp(edge_attr @ params["e1_w"].T + params["e1_b"])
    W = h @ params["e2_w"].T + params["e2_b"]
    W = W * C.reshape(-1, 1)

    def cfconv(x, m1_w, m2_w, m2_b):
        x1 = x @ m1_w.T
        msg = x1[src] * W
        agg = jax.ops.segment_sum(msg, dst, num_segments=N)
        return agg @ m2_w.T + m2_b

    x = cfconv(xx, params["c1_m1_w"], params["c1_m2_w"], params["c1_m2_b"])

    half = time_channels // 2
    freq = jnp.exp(jnp.arange(half, dtype=jnp.float32)
                   * (-math.log(1000.0) / (half - 1)))
    emb = tt * freq[None, :]
    emb = jnp.concatenate([jnp.sin(emb), jnp.cos(emb)], axis=-1)
    t_emb = (emb * jax.nn.sigmoid(emb)) @ params["te_w"].T + params["te_b"]

    x = _ssp(x + t_emb)
    x = cfconv(x, params["c2_m1_w"], params["c2_m2_w"], params["c2_m2_b"])
    x = _ssp(x)
    x = x @ params["lin_w"].T + params["lin_b"]
    return _ssp(x)


def init_params(key, hidden, edge_ch, num_filters, time_ch):
    ks = jax.random.split(key, 16)

    def lin(k, out_d, in_d):
        scale = math.sqrt(6.0 / (in_d + out_d))  # xavier-uniform-ish
        return jax.random.uniform(k, (out_d, in_d), jnp.float32, -scale, scale)

    return dict(
        e1_w=lin(ks[0], num_filters, edge_ch),
        e1_b=jax.random.normal(ks[1], (num_filters,), jnp.float32) * 0.05,
        e2_w=lin(ks[2], num_filters, num_filters),
        e2_b=jax.random.normal(ks[3], (num_filters,), jnp.float32) * 0.05,
        c1_m1_w=lin(ks[4], num_filters, hidden),
        c1_m2_w=lin(ks[5], hidden, num_filters),
        c1_m2_b=jnp.zeros((hidden,), jnp.float32),
        c2_m1_w=lin(ks[6], num_filters, hidden),
        c2_m2_w=lin(ks[7], hidden, num_filters),
        c2_m2_b=jnp.zeros((hidden,), jnp.float32),
        te_w=lin(ks[8], hidden, time_ch),
        te_b=jax.random.normal(ks[9], (hidden,), jnp.float32) * 0.05,
        lin_w=lin(ks[10], hidden, hidden),
        lin_b=jax.random.normal(ks[11], (hidden,), jnp.float32) * 0.05,
    )


if __name__ == "__main__":
    N, E = 16, 200                           # nodes, edges (multi-tile: 2 edge tiles)
    HIDDEN, EDGE_CH, FILTERS, TIME_CH = 32, 16, 32, 16
    CUTOFF, SMOOTH = 10.0, True

    key = jax.random.PRNGKey(0)
    k_tt, k_x, k_src, k_dst, k_len, k_attr, k_p = jax.random.split(key, 7)

    tt = jax.random.uniform(k_tt, (N, 1), jnp.float32, 0.0, 1.0)
    xx = jax.random.normal(k_x, (N, HIDDEN), jnp.float32)
    src = jax.random.randint(k_src, (E,), 0, N, jnp.int32)
    dst = jax.random.randint(k_dst, (E,), 0, N, jnp.int32)
    edge_index = jnp.stack([src, dst], axis=0)
    edge_length = jax.random.uniform(k_len, (E, 1), jnp.float32, 0.5, CUTOFF * 1.2)
    edge_attr = jax.random.normal(k_attr, (E, EDGE_CH), jnp.float32)

    params = init_params(k_p, HIDDEN, EDGE_CH, FILTERS, TIME_CH)

    run = functools.partial(interaction_block, cutoff=CUTOFF, smooth=SMOOTH,
                            time_channels=TIME_CH, edge_tile=128)
    out = run(tt, xx, edge_index, edge_length, edge_attr, params)
    out = jax.block_until_ready(out)

    ref = interaction_block_ref(tt, xx, edge_index, edge_length, edge_attr,
                                params, cutoff=CUTOFF, smooth=SMOOTH,
                                time_channels=TIME_CH)
    assert out.shape == (N, HIDDEN)
    err = float(jnp.max(jnp.abs(out - ref)))
    assert jnp.allclose(out, ref, atol=2e-4, rtol=2e-4), f"max abs err {err}"
    print("KERNEL_OK")
</pallas_src>

<mosaic_0001>
module attributes {stable_mosaic.version = 11 : i64} {
  func.func @kernel(%arg0: i32, %arg1: i32, %arg2: memref<16x1xf32, #tpu.memory_space<vmem>>, %arg3: memref<16x128xf32, #tpu.memory_space<vmem>>, %arg4: memref<128x1xi32, #tpu.memory_space<vmem>>, %arg5: memref<1x128xi32, #tpu.memory_space<vmem>>, %arg6: memref<128x1xf32, #tpu.memory_space<vmem>>, %arg7: memref<128x16xf32, #tpu.memory_space<vmem>>, %arg8: memref<1x128xf32, #tpu.memory_space<vmem>>, %arg9: memref<16x128xf32, #tpu.memory_space<vmem>>, %arg10: memref<1x128xf32, #tpu.memory_space<vmem>>, %arg11: memref<128x128xf32, #tpu.memory_space<vmem>>, %arg12: memref<1x128xf32, #tpu.memory_space<vmem>>, %arg13: memref<128x128xf32, #tpu.memory_space<vmem>>, %arg14: memref<128x128xf32, #tpu.memory_space<vmem>>, %arg15: memref<1x128xf32, #tpu.memory_space<vmem>>, %arg16: memref<128x128xf32, #tpu.memory_space<vmem>>, %arg17: memref<128x128xf32, #tpu.memory_space<vmem>>, %arg18: memref<1x128xf32, #tpu.memory_space<vmem>>, %arg19: memref<128x128xf32, #tpu.memory_space<vmem>>, %arg20: memref<1x128xf32, #tpu.memory_space<vmem>>, %arg21: memref<128x128xf32, #tpu.memory_space<vmem>>, %arg22: memref<1x128xf32, #tpu.memory_space<vmem>>, %arg23: memref<16x128xf32, #tpu.memory_space<vmem>>, %arg24: memref<256x128xf32, #tpu.memory_space<vmem>>, %arg25: memref<16x128xf32, #tpu.memory_space<vmem>>, %arg26: memref<16x128xf32, #tpu.memory_space<vmem>>) attributes {dimension_semantics = [#tpu.dimension_semantics<arbitrary>, #tpu.dimension_semantics<arbitrary>], iteration_bounds = array<i64: 2, 2>, scalar_prefetch = 0 : i64, scratch_operands = 3 : i64, tpu.core_type = #tpu.core_type<tc>, window_params = [{pipeline_mode = #tpu.pipeline_mode<synchronous>, transform_indices = @transform_0, window_bounds = array<i64: 16, 1>}, {pipeline_mode = #tpu.pipeline_mode<synchronous>, transform_indices = @transform_1, window_bounds = array<i64: 16, 128>}, {transform_indices = @transform_2, window_bounds = array<i64: 128, 1>}, {transform_indices = @transform_3, window_bounds = array<i64: 1, 128>}, {transform_indices = @transform_4, window_bounds = array<i64: 128, 1>}, {transform_indices = @transform_5, window_bounds = array<i64: 128, 16>}, {pipeline_mode = #tpu.pipeline_mode<synchronous>, transform_indices = @transform_6, window_bounds = array<i64: 1, 128>}, {pipeline_mode = #tpu.pipeline_mode<synchronous>, transform_indices = @transform_7, window_bounds = array<i64: 16, 128>}, {pipeline_mode = #tpu.pipeline_mode<synchronous>, transform_indices = @transform_8, window_bounds = array<i64: 1, 128>}, {pipeline_mode = #tpu.pipeline_mode<synchronous>, transform_indices = @transform_9, window_bounds = array<i64: 128, 128>}, {pipeline_mode = #tpu.pipeline_mode<synchronous>, transform_indices = @transform_10, window_bounds = array<i64: 1, 128>}, {pipeline_mode = #tpu.pipeline_mode<synchronous>, transform_indices = @transform_11, window_bounds = array<i64: 128, 128>}, {pipeline_mode = #tpu.pipeline_mode<synchronous>, transform_indices = @transform_12, window_bounds = array<i64: 128, 128>}, {pipeline_mode = #tpu.pipeline_mode<synchronous>, transform_indices = @transform_13, window_bounds = array<i64: 1, 128>}, {pipeline_mode = #tpu.pipeline_mode<synchronous>, transform_indices = @transform_14, window_bounds = array<i64: 128, 128>}, {pipeline_mode = #tpu.pipeline_mode<synchronous>, transform_indices = @transform_15, window_bounds = array<i64: 128, 128>}, {pipeline_mode = #tpu.pipeline_mode<synchronous>, transform_indices = @transform_16, window_bounds = array<i64: 1, 128>}, {pipeline_mode = #tpu.pipeline_mode<synchronous>, transform_indices = @transform_17, window_bounds = array<i64: 128, 128>}, {pipeline_mode = #tpu.pipeline_mode<synchronous>, transform_indices = @transform_18, window_bounds = array<i64: 1, 128>}, {pipeline_mode = #tpu.pipeline_mode<synchronous>, transform_indices = @transform_19, window_bounds = array<i64: 128, 128>}, {pipeline_mode = #tpu.pipeline_mode<synchronous>, transform_indices = @transform_20, window_bounds = array<i64: 1, 128>}, {pipeline_mode = #tpu.pipeline_mode<synchronous>, transform_indices = @transform_21, window_bounds = array<i64: 16, 128>}]} {
    %c128_i32 = arith.constant 128 : i32
    %0 = arith.muli %arg1, %c128_i32 : i32
    %1 = tpu.assume_multiple %0, 128 : i32
    %c0_i32 = arith.constant 0 : i32
    %2 = arith.cmpi eq, %arg0, %c0_i32 : i32
    %c0_i32_0 = arith.constant 0 : i32
    %3 = arith.cmpi eq, %arg1, %c0_i32_0 : i32
    %4 = arith.andi %2, %3 : i1
    %5 = arith.extui %4 : i1 to i32
    %c0_i32_1 = arith.constant 0 : i32
    %6 = arith.cmpi ne, %5, %c0_i32_1 : i32
    scf.if %6 {
      %c0_20 = arith.constant 0 : index
      %c0_21 = arith.constant 0 : index
      %41 = vector.load %arg3[%c0_20, %c0_21] : memref<16x128xf32, #tpu.memory_space<vmem>>, vector<16x128xf32>
      %c0_22 = arith.constant 0 : index
      %c0_23 = arith.constant 0 : index
      %42 = vector.load %arg13[%c0_22, %c0_23] : memref<128x128xf32, #tpu.memory_space<vmem>>, vector<128x128xf32>
      %cst_24 = arith.constant dense<0.000000e+00> : vector<16x128xf32>
      %43 = tpu.matmul %41, %42, %cst_24 {dimension_numbers = #tpu.dot_dimension_numbers<[1], [0], [0], [1], [0, 0, 1, 1], [], []>} : vector<16x128xf32>, vector<128x128xf32>, vector<16x128xf32> -> vector<16x128xf32>
      %c0_25 = arith.constant 0 : index
      %c0_26 = arith.constant 0 : index
      %44 = vector.load %arg25[%c0_25, %c0_26] : memref<16x128xf32, #tpu.memory_space<vmem>>, vector<16x128xf32>
      tpu.vector_store %arg25[%c0_25, %c0_26], %43 {strides = array<i32>} : memref<16x128xf32, #tpu.memory_space<vmem>>, vector<16x128xf32>,
      %cst_27 = arith.constant 0.000000e+00 : f32
      %45 = vector.broadcast %cst_27 : f32 to vector<16x128xf32>
      %c0_28 = arith.constant 0 : index
      %c0_29 = arith.constant 0 : index
      %46 = vector.load %arg26[%c0_28, %c0_29] : memref<16x128xf32, #tpu.memory_space<vmem>>, vector<16x128xf32>
      tpu.vector_store %arg26[%c0_28, %c0_29], %45 {strides = array<i32>} : memref<16x128xf32, #tpu.memory_space<vmem>>, vector<16x128xf32>,
    } else {
    }
    %c1_i32 = arith.constant 1 : i32
    %7 = arith.cmpi eq, %arg0, %c1_i32 : i32
    %c0_i32_2 = arith.constant 0 : i32
    %8 = arith.cmpi eq, %arg1, %c0_i32_2 : i32
    %9 = arith.andi %7, %8 : i1
    %10 = arith.extui %9 : i1 to i32
    %c0_i32_3 = arith.constant 0 : i32
    %11 = arith.cmpi ne, %10, %c0_i32_3 : i32
    scf.if %11 {
      %c0_20 = arith.constant 0 : index
      %c0_21 = arith.constant 0 : index
      %41 = vector.load %arg26[%c0_20, %c0_21] : memref<16x128xf32, #tpu.memory_space<vmem>>, vector<16x128xf32>
      %c0_22 = arith.constant 0 : index
      %c0_23 = arith.constant 0 : index
      %42 = vector.load %arg14[%c0_22, %c0_23] : memref<128x128xf32, #tpu.memory_space<vmem>>, vector<128x128xf32>
      %cst_24 = arith.constant dense<0.000000e+00> : vector<16x128xf32>
      %43 = tpu.matmul %41, %42, %cst_24 {dimension_numbers = #tpu.dot_dimension_numbers<[1], [0], [0], [1], [0, 0, 1, 1], [], []>} : vector<16x128xf32>, vector<128x128xf32>, vector<16x128xf32> -> vector<16x128xf32>
      %c0_25 = arith.constant 0 : index
      %c0_26 = arith.constant 0 : index
      %44 = vector.load %arg15[%c0_25, %c0_26] : memref<1x128xf32, #tpu.memory_space<vmem>>, vector<1x128xf32>
      %45 = vector.broadcast %44 : vector<1x128xf32> to vector<16x128xf32>
      %46 = arith.addf %43, %45 : vector<16x128xf32>
      %c0_27 = arith.constant 0 : index
      %c0_28 = arith.constant 0 : index
      %47 = vector.load %arg2[%c0_27, %c0_28] : memref<16x1xf32, #tpu.memory_space<vmem>>, vector<16x1xf32>
      %c0_29 = arith.constant 0 : index
      %c0_30 = arith.constant 0 : index
      %48 = vector.load %arg8[%c0_29, %c0_30] : memref<1x128xf32, #tpu.memory_space<vmem>>, vector<1x128xf32>
      %49 = vector.broadcast %47 : vector<16x1xf32> to vector<16x128xf32>
      %50 = vector.broadcast %48 : vector<1x128xf32> to vector<16x128xf32>
      %51 = arith.mulf %49, %50 : vector<16x128xf32>
      %52 = tpu.iota {dimensions = array<i32: 1>} : vector<16x128xi32>
      %c64_i32 = arith.constant 64 : i32
      %53 = vector.broadcast %c64_i32 : i32 to vector<16x128xi32>
      %54 = arith.cmpi slt, %52, %53 : vector<16x128xi32>
      %55 = math.sin %51 : vector<16x128xf32>
      %56 = math.cos %51 : vector<16x128xf32>
      %57 = arith.select %54, %55, %56 : vector<16x128xi1>, vector<16x128xf32>
      %58 = arith.negf %57 : vector<16x128xf32>
      %59 = math.exp %58 : vector<16x128xf32>
      %cst_31 = arith.constant 1.000000e+00 : f32
      %60 = vector.broadcast %cst_31 : f32 to vector<16x128xf32>
      %61 = arith.addf %60, %59 : vector<16x128xf32>
      %62 = arith.divf %60, %61 : vector<16x128xf32>
      %63 = arith.mulf %57, %62 : vector<16x128xf32>
      %c0_32 = arith.constant 0 : index
      %c0_33 = arith.constant 0 : index
      %64 = vector.load %arg19[%c0_32, %c0_33] : memref<128x128xf32, #tpu.memory_space<vmem>>, vector<128x128xf32>
      %cst_34 = arith.constant dense<0.000000e+00> : vector<16x128xf32>
      %65 = tpu.matmul %63, %64, %cst_34 {dimension_numbers = #tpu.dot_dimension_numbers<[1], [0], [0], [1], [0, 0, 1, 1], [], []>} : vector<16x128xf32>, vector<128x128xf32>, vector<16x128xf32> -> vector<16x128xf32>
      %c0_35 = arith.constant 0 : index
      %c0_36 = arith.constant 0 : index
      %66 = vector.load %arg20[%c0_35, %c0_36] : memref<1x128xf32, #tpu.memory_space<vmem>>, vector<1x128xf32>
      %67 = vector.broadcast %66 : vector<1x128xf32> to vector<16x128xf32>
      %68 = arith.addf %65, %67 : vector<16x128xf32>
      %69 = arith.addf %46, %68 : vector<16x128xf32>
      %cst_37 = arith.constant 0.000000e+00 : f32
      %70 = vector.broadcast %cst_37 : f32 to vector<16x128xf32>
      %71 = arith.maximumf %69, %70 : vector<16x128xf32>
      %72 = vector.broadcast %cst_37 : f32 to vector<16x128xf32>
      %73 = arith.subf %69, %72 : vector<16x128xf32>
      %74 = arith.cmpf one, %73, %73 : vector<16x128xf32>
      %75 = vector.broadcast %cst_37 : f32 to vector<16x128xf32>
      %76 = arith.addf %69, %75 : vector<16x128xf32>
      %77 = math.absf %73 : vector<16x128xf32>
      %cst_38 = arith.constant 0.000000e+00 : f32
      %78 = vector.broadcast %cst_38 : f32 to vector<16x128xf32>
      %79 = arith.subf %78, %77 : vector<16x128xf32>
      %80 = math.exp %79 : vector<16x128xf32>
      %81 = math.log1p %80 : vector<16x128xf32>
      %82 = arith.addf %71, %81 : vector<16x128xf32>
      %83 = arith.select %74, %76, %82 : vector<16x128xi1>, vector<16x128xf32>
      %cst_39 = arith.constant 0.693147182 : f32
      %84 = vector.broadcast %cst_39 : f32 to vector<16x128xf32>
      %85 = arith.subf %83, %84 : vector<16x128xf32>
      %c0_40 = arith.constant 0 : index
      %c0_41 = arith.constant 0 : index
      %86 = vector.load %arg16[%c0_40, %c0_41] : memref<128x128xf32, #tpu.memory_space<vmem>>, vector<128x128xf32>
      %cst_42 = arith.constant dense<0.000000e+00> : vector<16x128xf32>
      %87 = tpu.matmul %85, %86, %cst_42 {dimension_numbers = #tpu.dot_dimension_numbers<[1], [0], [0], [1], [0, 0, 1, 1], [], []>} : vector<16x128xf32>, vector<128x128xf32>, vector<16x128xf32> -> vector<16x128xf32>
      %c0_43 = arith.constant 0 : index
      %c0_44 = arith.constant 0 : index
      %88 = vector.load %arg25[%c0_43, %c0_44] : memref<16x128xf32, #tpu.memory_space<vmem>>, vector<16x128xf32>
      tpu.vector_store %arg25[%c0_43, %c0_44], %87 {strides = array<i32>} : memref<16x128xf32, #tpu.memory_space<vmem>>, vector<16x128xf32>,
      %cst_45 = arith.constant 0.000000e+00 : f32
      %89 = vector.broadcast %cst_45 : f32 to vector<16x128xf32>
      %c0_46 = arith.constant 0 : index
      %c0_47 = arith.constant 0 : index
      %90 = vector.load %arg26[%c0_46, %c0_47] : memref<16x128xf32, #tpu.memory_space<vmem>>, vector<16x128xf32>
      tpu.vector_store %arg26[%c0_46, %c0_47], %89 {strides = array<i32>} : memref<16x128xf32, #tpu.memory_space<vmem>>, vector<16x128xf32>,
    } else {
    }
    %c0_i32_4 = arith.constant 0 : i32
    %12 = arith.cmpi eq, %arg0, %c0_i32_4 : i32
    %13 = arith.extui %12 : i1 to i32
    %c0_i32_5 = arith.constant 0 : i32
    %14 = arith.cmpi ne, %13, %c0_i32_5 : i32
    scf.if %14 {
      %c0_20 = arith.constant 0 : index
      %c0_21 = arith.constant 0 : index
      %41 = vector.load %arg6[%c0_20, %c0_21] : memref<128x1xf32, #tpu.memory_space<vmem>>, vector<128x1xf32>
      %cst_22 = arith.constant 0.314159274 : f32
      %42 = vector.broadcast %cst_22 : f32 to vector<128x1xf32>
      %43 = arith.mulf %41, %42 : vector<128x1xf32>
      %44 = math.cos %43 : vector<128x1xf32>
      %cst_23 = arith.constant 1.000000e+00 : f32
      %45 = vector.broadcast %cst_23 : f32 to vector<128x1xf32>
      %46 = arith.addf %44, %45 : vector<128x1xf32>
      %cst_24 = arith.constant 5.000000e-01 : f32
      %47 = vector.broadcast %cst_24 : f32 to vector<128x1xf32>
      %48 = arith.mulf %47, %46 : vector<128x1xf32>
      %cst_25 = arith.constant 1.000000e+01 : f32
      %49 = vector.broadcast %cst_25 : f32 to vector<128x1xf32>
      %50 = arith.cmpf ole, %41, %49 : vector<128x1xf32>
      %51 = arith.extui %50 : vector<128x1xi1> to vector<128x1xi32>
      %52 = arith.sitofp %51 : vector<128x1xi32> to vector<128x1xf32>
      %53 = arith.mulf %48, %52 : vector<128x1xf32>
      %cst_26 = arith.constant 0.000000e+00 : f32
      %54 = vector.broadcast %cst_26 : f32 to vector<128x1xf32>
      %55 = arith.cmpf oge, %41, %54 : vector<128x1xf32>
      %56 = arith.extui %55 : vector<128x1xi1> to vector<128x1xi32>
      %57 = arith.sitofp %56 : vector<128x1xi32> to vector<128x1xf32>
      %58 = arith.mulf %53, %57 : vector<128x1xf32>
      %c0_27 = arith.constant 0 : index
      %c0_28 = arith.constant 0 : index
      %59 = vector.load %arg7[%c0_27, %c0_28] : memref<128x16xf32, #tpu.memory_space<vmem>>, vector<128x16xf32>
      %c0_29 = arith.constant 0 : index
      %c0_30 = arith.constant 0 : index
      %60 = vector.load %arg9[%c0_29, %c0_30] : memref<16x128xf32, #tpu.memory_space<vmem>>, vector<16x128xf32>
      %cst_31 = arith.constant dense<0.000000e+00> : vector<128x128xf32>
      %61 = tpu.matmul %59, %60, %cst_31 {dimension_numbers = #tpu.dot_dimension_numbers<[1], [0], [0], [1], [0, 0, 1, 1], [], []>} : vector<128x16xf32>, vector<16x128xf32>, vector<128x128xf32> -> vector<128x128xf32>
      %c0_32 = arith.constant 0 : index
      %c0_33 = arith.constant 0 : index
      %62 = vector.load %arg10[%c0_32, %c0_33] : memref<1x128xf32, #tpu.memory_space<vmem>>, vector<1x128xf32>
      %63 = vector.broadcast %62 : vector<1x128xf32> to vector<128x128xf32>
      %64 = arith.addf %61, %63 : vector<128x128xf32>
      %cst_34 = arith.constant 0.000000e+00 : f32
      %65 = vector.broadcast %cst_34 : f32 to vector<128x128xf32>
      %66 = arith.maximumf %64, %65 : vector<128x128xf32>
      %67 = vector.broadcast %cst_34 : f32 to vector<128x128xf32>
      %68 = arith.subf %64, %67 : vector<128x128xf32>
      %69 = arith.cmpf one, %68, %68 : vector<128x128xf32>
      %70 = vector.broadcast %cst_34 : f32 to vector<128x128xf32>
      %71 = arith.addf %64, %70 : vector<128x128xf32>
      %72 = math.absf %68 : vector<128x128xf32>
      %cst_35 = arith.constant 0.000000e+00 : f32
      %73 = vector.broadcast %cst_35 : f32 to vector<128x128xf32>
      %74 = arith.subf %73, %72 : vector<128x128xf32>
      %75 = math.exp %74 : vector<128x128xf32>
      %76 = math.log1p %75 : vector<128x128xf32>
      %77 = arith.addf %66, %76 : vector<128x128xf32>
      %78 = arith.select %69, %71, %77 : vector<128x128xi1>, vector<128x128xf32>
      %cst_36 = arith.constant 0.693147182 : f32
      %79 = vector.broadcast %cst_36 : f32 to vector<128x128xf32>
      %80 = arith.subf %78, %79 : vector<128x128xf32>
      %c0_37 = arith.constant 0 : index
      %c0_38 = arith.constant 0 : index
      %81 = vector.load %arg11[%c0_37, %c0_38] : memref<128x128xf32, #tpu.memory_space<vmem>>, vector<128x128xf32>
      %cst_39 = arith.constant dense<0.000000e+00> : vector<128x128xf32>
      %82 = tpu.matmul %80, %81, %cst_39 {dimension_numbers = #tpu.dot_dimension_numbers<[1], [0], [0], [1], [0, 0, 1, 1], [], []>} : vector<128x128xf32>, vector<128x128xf32>, vector<128x128xf32> -> vector<128x128xf32>
      %c0_40 = arith.constant 0 : index
      %c0_41 = arith.constant 0 : index
      %83 = vector.load %arg12[%c0_40, %c0_41] : memref<1x128xf32, #tpu.memory_space<vmem>>, vector<1x128xf32>
      %84 = vector.broadcast %83 : vector<1x128xf32> to vector<128x128xf32>
      %85 = arith.addf %82, %84 : vector<128x128xf32>
      %86 = vector.broadcast %58 : vector<128x1xf32> to vector<128x128xf32>
      %87 = arith.mulf %85, %86 : vector<128x128xf32>
      %88 = arith.index_cast %1 : i32 to index
      %c0_42 = arith.constant 0 : index
      %89 = vector.load %arg24[%88, %c0_42] : memref<256x128xf32, #tpu.memory_space<vmem>>, vector<128x128xf32>
      tpu.vector_store %arg24[%88, %c0_42], %87 {strides = array<i32>} : memref<256x128xf32, #tpu.memory_space<vmem>>, vector<128x128xf32>,
    } else {
    }
    %15 = arith.index_cast %1 : i32 to index
    %c0 = arith.constant 0 : index
    %16 = vector.load %arg24[%15, %c0] : memref<256x128xf32, #tpu.memory_space<vmem>>, vector<128x128xf32>
    %c0_6 = arith.constant 0 : index
    %c0_7 = arith.constant 0 : index
    %17 = vector.load %arg4[%c0_6, %c0_7] : memref<128x1xi32, #tpu.memory_space<vmem>>, vector<128x1xi32>
    %c0_8 = arith.constant 0 : index
    %c0_9 = arith.constant 0 : index
    %18 = vector.load %arg5[%c0_8, %c0_9] : memref<1x128xi32, #tpu.memory_space<vmem>>, vector<1x128xi32>
    %19 = tpu.iota {dimensions = array<i32: 1>} : vector<128x16xi32>
    %20 = vector.broadcast %17 : vector<128x1xi32> to vector<128x16xi32>
    %21 = arith.cmpi eq, %19, %20 : vector<128x16xi32>
    %22 = arith.extui %21 : vector<128x16xi1> to vector<128x16xi32>
    %23 = arith.sitofp %22 : vector<128x16xi32> to vector<128x16xf32>
    %c0_10 = arith.constant 0 : index
    %c0_11 = arith.constant 0 : index
    %24 = vector.load %arg25[%c0_10, %c0_11] : memref<16x128xf32, #tpu.memory_space<vmem>>, vector<16x128xf32>
    %cst = arith.constant dense<0.000000e+00> : vector<128x128xf32>
    %25 = tpu.matmul %23, %24, %cst {dimension_numbers = #tpu.dot_dimension_numbers<[1], [0], [0], [1], [0, 0, 1, 1], [], []>} : vector<128x16xf32>, vector<16x128xf32>, vector<128x128xf32> -> vector<128x128xf32>
    %26 = arith.mulf %25, %16 : vector<128x128xf32>
    %27 = tpu.iota {dimensions = array<i32: 0>} : vector<16x128xi32>
    %28 = vector.broadcast %18 : vector<1x128xi32> to vector<16x128xi32>
    %29 = arith.cmpi eq, %27, %28 : vector<16x128xi32>
    %30 = arith.extui %29 : vector<16x128xi1> to vector<16x128xi32>
    %31 = arith.sitofp %30 : vector<16x128xi32> to vector<16x128xf32>
    %c0_12 = arith.constant 0 : index
    %c0_13 = arith.constant 0 : index
    %32 = vector.load %arg26[%c0_12, %c0_13] : memref<16x128xf32, #tpu.memory_space<vmem>>, vector<16x128xf32>
    %cst_14 = arith.constant dense<0.000000e+00> : vector<16x128xf32>
    %33 = tpu.matmul %31, %26, %cst_14 {dimension_numbers = #tpu.dot_dimension_numbers<[1], [0], [0], [1], [0, 0, 1, 1], [], []>} : vector<16x128xf32>, vector<128x128xf32>, vector<16x128xf32> -> vector<16x128xf32>
    %34 = arith.addf %32, %33 : vector<16x128xf32>
    %c0_15 = arith.constant 0 : index
    %c0_16 = arith.constant 0 : index
    %35 = vector.load %arg26[%c0_15, %c0_16] : memref<16x128xf32, #tpu.memory_space<vmem>>, vector<16x128xf32>
    tpu.vector_store %arg26[%c0_15, %c0_16], %34 {strides = array<i32>} : memref<16x128xf32, #tpu.memory_space<vmem>>, vector<16x128xf32>,
    %c1_i32_17 = arith.constant 1 : i32
    %36 = arith.cmpi eq, %arg0, %c1_i32_17 : i32
    %c1_i32_18 = arith.constant 1 : i32
    %37 = arith.cmpi eq, %arg1, %c1_i32_18 : i32
    %38 = arith.andi %36, %37 : i1
    %39 = arith.extui %38 : i1 to i32
    %c0_i32_19 = arith.constant 0 : i32
    %40 = arith.cmpi ne, %39, %c0_i32_19 : i32
    scf.if %40 {
      %c0_20 = arith.constant 0 : index
      %c0_21 = arith.constant 0 : index
      %41 = vector.load %arg26[%c0_20, %c0_21] : memref<16x128xf32, #tpu.memory_space<vmem>>, vector<16x128xf32>
      %c0_22 = arith.constant 0 : index
      %c0_23 = arith.constant 0 : index
      %42 = vector.load %arg17[%c0_22, %c0_23] : memref<128x128xf32, #tpu.memory_space<vmem>>, vector<128x128xf32>
      %cst_24 = arith.constant dense<0.000000e+00> : vector<16x128xf32>
      %43 = tpu.matmul %41, %42, %cst_24 {dimension_numbers = #tpu.dot_dimension_numbers<[1], [0], [0], [1], [0, 0, 1, 1], [], []>} : vector<16x128xf32>, vector<128x128xf32>, vector<16x128xf32> -> vector<16x128xf32>
      %c0_25 = arith.constant 0 : index
      %c0_26 = arith.constant 0 : index
      %44 = vector.load %arg18[%c0_25, %c0_26] : memref<1x128xf32, #tpu.memory_space<vmem>>, vector<1x128xf32>
      %45 = vector.broadcast %44 : vector<1x128xf32> to vector<16x128xf32>
      %46 = arith.addf %43, %45 : vector<16x128xf32>
      %cst_27 = arith.constant 0.000000e+00 : f32
      %47 = vector.broadcast %cst_27 : f32 to vector<16x128xf32>
      %48 = arith.maximumf %46, %47 : vector<16x128xf32>
      %49 = vector.broadcast %cst_27 : f32 to vector<16x128xf32>
      %50 = arith.subf %46, %49 : vector<16x128xf32>
      %51 = arith.cmpf one, %50, %50 : vector<16x128xf32>
      %52 = vector.broadcast %cst_27 : f32 to vector<16x128xf32>
      %53 = arith.addf %46, %52 : vector<16x128xf32>
      %54 = math.absf %50 : vector<16x128xf32>
      %cst_28 = arith.constant 0.000000e+00 : f32
      %55 = vector.broadcast %cst_28 : f32 to vector<16x128xf32>
      %56 = arith.subf %55, %54 : vector<16x128xf32>
      %57 = math.exp %56 : vector<16x128xf32>
      %58 = math.log1p %57 : vector<16x128xf32>
      %59 = arith.addf %48, %58 : vector<16x128xf32>
      %60 = arith.select %51, %53, %59 : vector<16x128xi1>, vector<16x128xf32>
      %cst_29 = arith.constant 0.693147182 : f32
      %61 = vector.broadcast %cst_29 : f32 to vector<16x128xf32>
      %62 = arith.subf %60, %61 : vector<16x128xf32>
      %c0_30 = arith.constant 0 : index
      %c0_31 = arith.constant 0 : index
      %63 = vector.load %arg21[%c0_30, %c0_31] : memref<128x128xf32, #tpu.memory_space<vmem>>, vector<128x128xf32>
      %cst_32 = arith.constant dense<0.000000e+00> : vector<16x128xf32>
      %64 = tpu.matmul %62, %63, %cst_32 {dimension_numbers = #tpu.dot_dimension_numbers<[1], [0], [0], [1], [0, 0, 1, 1], [], []>} : vector<16x128xf32>, vector<128x128xf32>, vector<16x128xf32> -> vector<16x128xf32>
      %c0_33 = arith.constant 0 : index
      %c0_34 = arith.constant 0 : index
      %65 = vector.load %arg22[%c0_33, %c0_34] : memref<1x128xf32, #tpu.memory_space<vmem>>, vector<1x128xf32>
      %66 = vector.broadcast %65 : vector<1x128xf32> to vector<16x128xf32>
      %67 = arith.addf %64, %66 : vector<16x128xf32>
      %cst_35 = arith.constant 0.000000e+00 : f32
      %68 = vector.broadcast %cst_35 : f32 to vector<16x128xf32>
      %69 = arith.maximumf %67, %68 : vector<16x128xf32>
      %70 = vector.broadcast %cst_35 : f32 to vector<16x128xf32>
      %71 = arith.subf %67, %70 : vector<16x128xf32>
      %72 = arith.cmpf one, %71, %71 : vector<16x128xf32>
      %73 = vector.broadcast %cst_35 : f32 to vector<16x128xf32>
      %74 = arith.addf %67, %73 : vector<16x128xf32>
      %75 = math.absf %71 : vector<16x128xf32>
      %cst_36 = arith.constant 0.000000e+00 : f32
      %76 = vector.broadcast %cst_36 : f32 to vector<16x128xf32>
      %77 = arith.subf %76, %75 : vector<16x128xf32>
      %78 = math.exp %77 : vector<16x128xf32>
      %79 = math.log1p %78 : vector<16x128xf32>
      %80 = arith.addf %69, %79 : vector<16x128xf32>
      %81 = arith.select %72, %74, %80 : vector<16x128xi1>, vector<16x128xf32>
      %cst_37 = arith.constant 0.693147182 : f32
      %82 = vector.broadcast %cst_37 : f32 to vector<16x128xf32>
      %83 = arith.subf %81, %82 : vector<16x128xf32>
      %c0_38 = arith.constant 0 : index
      %c0_39 = arith.constant 0 : index
      %84 = vector.load %arg23[%c0_38, %c0_39] : memref<16x128xf32, #tpu.memory_space<vmem>>, vector<16x128xf32>
      tpu.vector_store %arg23[%c0_38, %c0_39], %83 {strides = array<i32>} : memref<16x128xf32, #tpu.memory_space<vmem>>, vector<16x128xf32>,
    } else {
    }
    return
  }
  func.func @transform_0(%arg0: i32, %arg1: i32) -> (i32, i32) {
    %c0_i32 = arith.constant 0 : i32
    %c0_i32_0 = arith.constant 0 : i32
    %c0_i32_1 = arith.constant 0 : i32
    return %c0_i32, %c0_i32_0 : i32, i32
  }
  func.func @transform_1(%arg0: i32, %arg1: i32) -> (i32, i32) {
    %c0_i32 = arith.constant 0 : i32
    %c0_i32_0 = arith.constant 0 : i32
    %c0_i32_1 = arith.constant 0 : i32
    return %c0_i32, %c0_i32_0 : i32, i32
  }
  func.func @transform_2(%arg0: i32, %arg1: i32) -> (i32, i32) {
    %c0_i32 = arith.constant 0 : i32
    %c0_i32_0 = arith.constant 0 : i32
    return %arg1, %c0_i32 : i32, i32
  }
  func.func @transform_3(%arg0: i32, %arg1: i32) -> (i32, i32) {
    %c0_i32 = arith.constant 0 : i32
    %c0_i32_0 = arith.constant 0 : i32
    return %c0_i32, %arg1 : i32, i32
  }
  func.func @transform_4(%arg0: i32, %arg1: i32) -> (i32, i32) {
    %c1_i32 = arith.constant 1 : i32
    %0 = arith.subi %c1_i32, %arg0 : i32
    %1 = arith.muli %arg1, %0 : i32
    %c0_i32 = arith.constant 0 : i32
    %c0_i32_0 = arith.constant 0 : i32
    return %1, %c0_i32 : i32, i32
  }
  func.func @transform_5(%arg0: i32, %arg1: i32) -> (i32, i32) {
    %c1_i32 = arith.constant 1 : i32
    %0 = arith.subi %c1_i32, %arg0 : i32
    %1 = arith.muli %arg1, %0 : i32
    %c0_i32 = arith.constant 0 : i32
    %c0_i32_0 = arith.constant 0 : i32
    return %1, %c0_i32 : i32, i32
  }
  func.func @transform_6(%arg0: i32, %arg1: i32) -> (i32, i32) {
    %c0_i32 = arith.constant 0 : i32
    %c0_i32_0 = arith.constant 0 : i32
    %c0_i32_1 = arith.constant 0 : i32
    return %c0_i32, %c0_i32_0 : i32, i32
  }
  func.func @transform_7(%arg0: i32, %arg1: i32) -> (i32, i32) {
    %c0_i32 = arith.constant 0 : i32
    %c0_i32_0 = arith.constant 0 : i32
    %c0_i32_1 = arith.constant 0 : i32
    return %c0_i32, %c0_i32_0 : i32, i32
  }
  func.func @transform_8(%arg0: i32, %arg1: i32) -> (i32, i32) {
    %c0_i32 = arith.constant 0 : i32
    %c0_i32_0 = arith.constant 0 : i32
    %c0_i32_1 = arith.constant 0 : i32
    return %c0_i32, %c0_i32_0 : i32, i32
  }
  func.func @transform_9(%arg0: i32, %arg1: i32) -> (i32, i32) {
    %c0_i32 = arith.constant 0 : i32
    %c0_i32_0 = arith.constant 0 : i32
    %c0_i32_1 = arith.constant 0 : i32
    return %c0_i32, %c0_i32_0 : i32, i32
  }
  func.func @transform_10(%arg0: i32, %arg1: i32) -> (i32, i32) {
    %c0_i32 = arith.constant 0 : i32
    %c0_i32_0 = arith.constant 0 : i32
    %c0_i32_1 = arith.constant 0 : i32
    return %c0_i32, %c0_i32_0 : i32, i32
  }
  func.func @transform_11(%arg0: i32, %arg1: i32) -> (i32, i32) {
    %c0_i32 = arith.constant 0 : i32
    %c0_i32_0 = arith.constant 0 : i32
    %c0_i32_1 = arith.constant 0 : i32
    return %c0_i32, %c0_i32_0 : i32, i32
  }
  func.func @transform_12(%arg0: i32, %arg1: i32) -> (i32, i32) {
    %c0_i32 = arith.constant 0 : i32
    %c0_i32_0 = arith.constant 0 : i32
    %c0_i32_1 = arith.constant 0 : i32
    return %c0_i32, %c0_i32_0 : i32, i32
  }
  func.func @transform_13(%arg0: i32, %arg1: i32) -> (i32, i32) {
    %c0_i32 = arith.constant 0 : i32
    %c0_i32_0 = arith.constant 0 : i32
    %c0_i32_1 = arith.constant 0 : i32
    return %c0_i32, %c0_i32_0 : i32, i32
  }
  func.func @transform_14(%arg0: i32, %arg1: i32) -> (i32, i32) {
    %c0_i32 = arith.constant 0 : i32
    %c0_i32_0 = arith.constant 0 : i32
    %c0_i32_1 = arith.constant 0 : i32
    return %c0_i32, %c0_i32_0 : i32, i32
  }
  func.func @transform_15(%arg0: i32, %arg1: i32) -> (i32, i32) {
    %c0_i32 = arith.constant 0 : i32
    %c0_i32_0 = arith.constant 0 : i32
    %c0_i32_1 = arith.constant 0 : i32
    return %c0_i32, %c0_i32_0 : i32, i32
  }
  func.func @transform_16(%arg0: i32, %arg1: i32) -> (i32, i32) {
    %c0_i32 = arith.constant 0 : i32
    %c0_i32_0 = arith.constant 0 : i32
    %c0_i32_1 = arith.constant 0 : i32
    return %c0_i32, %c0_i32_0 : i32, i32
  }
  func.func @transform_17(%arg0: i32, %arg1: i32) -> (i32, i32) {
    %c0_i32 = arith.constant 0 : i32
    %c0_i32_0 = arith.constant 0 : i32
    %c0_i32_1 = arith.constant 0 : i32
    return %c0_i32, %c0_i32_0 : i32, i32
  }
  func.func @transform_18(%arg0: i32, %arg1: i32) -> (i32, i32) {
    %c0_i32 = arith.constant 0 : i32
    %c0_i32_0 = arith.constant 0 : i32
    %c0_i32_1 = arith.constant 0 : i32
    return %c0_i32, %c0_i32_0 : i32, i32
  }
  func.func @transform_19(%arg0: i32, %arg1: i32) -> (i32, i32) {
    %c0_i32 = arith.constant 0 : i32
    %c0_i32_0 = arith.constant 0 : i32
    %c0_i32_1 = arith.constant 0 : i32
    return %c0_i32, %c0_i32_0 : i32, i32
  }
  func.func @transform_20(%arg0: i32, %arg1: i32) -> (i32, i32) {
    %c0_i32 = arith.constant 0 : i32
    %c0_i32_0 = arith.constant 0 : i32
    %c0_i32_1 = arith.constant 0 : i32
    return %c0_i32, %c0_i32_0 : i32, i32
  }
  func.func @transform_21(%arg0: i32, %arg1: i32) -> (i32, i32) {
    %c0_i32 = arith.constant 0 : i32
    %c0_i32_0 = arith.constant 0 : i32
    %c0_i32_1 = arith.constant 0 : i32
    return %c0_i32, %c0_i32_0 : i32, i32
  }
}

</mosaic_0001>

<bundles_post_ra>
// kernel: tpu_custom_call.1
= control target key start
LH: loop header
LB: loop body
LE: loop exit
PB: predicated region body
PF: predicated region fallthrough
CT: control target
= control target key end

     0   :  { %s9500_s0 = inlined_call_operand.vmem [shape: f32[16,1], index: 0, kind: input, shape index: {}]   ;;  %s9501_s1 = inlined_call_operand.vmem [shape: f32[16,128], index: 1, kind: input, shape index: {}]   ;;  %s9502_s2 = inlined_call_operand.vmem [shape: s32[256,1], index: 2, kind: input, shape index: {}]   ;;  %s9503_s3 = inlined_call_operand.hbm [shape: s32[1,256], index: 3, kind: input, shape index: {}]   ;;  %s9504_s4 = inlined_call_operand.vmem [shape: f32[256,1], index: 4, kind: input, shape index: {}]   ;;  %s9505_s5 = inlined_call_operand.vmem [shape: f32[256,16], index: 5, kind: input, shape index: {}]   ;;  %s9506_s6 = inlined_call_operand.vmem [shape: f32[1,128], index: 6, kind: input, shape index: {}]   ;;  %s9507_s7 = inlined_call_operand.vmem [shape: f32[16,128], index: 7, kind: input, shape index: {}]   ;;  %s9508_s8 = inlined_call_operand.vmem [shape: f32[1,128], index: 8, kind: input, shape index: {}]   ;;  %s9509_s9 = inlined_call_operand.vmem [shape: f32[128,128], index: 9, kind: input, shape index: {}]   ;;  %s9510_s10 = inlined_call_operand.vmem [shape: f32[1,128], index: 10, kind: input, shape index: {}]   ;;  %s9511_s11 = inlined_call_operand.vmem [shape: f32[128,128], index: 11, kind: input, shape index: {}]   ;;  %s9512_s12 = inlined_call_operand.vmem [shape: f32[128,128], index: 12, kind: input, shape index: {}]   ;;  %s9513_s13 = inlined_call_operand.vmem [shape: f32[1,128], index: 13, kind: input, shape index: {}]   ;;  %s9514_s14 = inlined_call_operand.vmem [shape: f32[128,128], index: 14, kind: input, shape index: {}]   ;;  %s9515_s15 = inlined_call_operand.vmem [shape: f32[128,128], index: 15, kind: input, shape index: {}]   ;;  %s9516_s16 = inlined_call_operand.vmem [shape: f32[1,128], index: 16, kind: input, shape index: {}]   ;;  %s9517_s17 = inlined_call_operand.vmem [shape: f32[128,128], index: 17, kind: input, shape index: {}]   ;;  %s9518_s18 = inlined_call_operand.vmem [shape: f32[1,128], index: 18, kind: input, shape index: {}]   ;;  %s9519_s19 = inlined_call_operand.hbm [shape: f32[128,128], index: 19, kind: input, shape index: {}]   ;;  %s9520_s20 = inlined_call_operand.vmem [shape: f32[1,128], index: 20, kind: input, shape index: {}]   ;;  %s9521_s21 = inlined_call_operand.hbm [shape: f32[16,128], index: 21, kind: output, shape index: {}]  }
   0x1   :  { %9559 = sst [smem:[#allocation26_spill]] %s9500_s0 }
   0x2   :  { %9560 = sst [smem:[#allocation27_spill]] %s9501_s1 }
   0x3   :  { %9561 = sst [smem:[#allocation28_spill]] %s9502_s2 }
   0x4   :  { %9562 = sst [smem:[#allocation29_spill]] %s9503_s3 }
   0x5   :  { %9563 = sst [smem:[#allocation30_spill]] %s9504_s4 }
   0x6   :  { %9564 = sst [smem:[#allocation31_spill]] %s9505_s5 }
   0x7   :  { %9565 = sst [smem:[#allocation32_spill]] %s9510_s10 }
   0x8   :  { %9566 = sst [smem:[#allocation33_spill]] %s9515_s15 }
   0x9   :  { %9567 = sst [smem:[#allocation34_spill]] %s9516_s16 }
   0xa   :  { %9568 = sst [smem:[#allocation35_spill]] %s9519_s19 }
   0xb   :  { %9569 = sst [smem:[#allocation36_spill]] %s9520_s20 }
   0xc   :  { %9570 = sst [smem:[#allocation37_spill]] %s9521_s21 }
   0xd   :  { %26 = vsyncpa [#allocation6], 0 }
   0xe   :  { %28 = vsyncpa [#allocation6 + $0x1], 0 }
   0xf   :  { %29 = vsyncpa [#allocation9], 0 }
  0x10   :  { %30 = vsyncpa [#allocation7], 0  ;;  %s6867_s2 = smov 0   ;;  %s6869_s25 = smov 0  }
  0x11   :  { %s6871_s26 = smov 0   ;;  %s6873_s27 = smov 0  }
  0x12   :  { %s6875_s3 = smov 0   ;;  %s6877_s28 = smov 0  }
  0x13   :  { %s6879_s29 = smov 0   ;;  %s6881_s0 = smov 0  }
  0x14 LB: > { %9571 = sst [smem:[#allocation14_spill]] %s6704_s25  ;;  %s9525_s4 = sadd.s32 4294967295, %s6728_s0   ;;  %s6728_s0 = sphi %s6881_s0, %s36_s0   ;;  %s6724_s29 = sphi %s6879_s29, %s9700_s29   ;;  %s6720_s28 = sphi %s6877_s28, %s9699_s28   ;;  %s6716_s3 = sphi %s6875_s3, %s9698_s3   ;;  %s6712_s27 = sphi %s6873_s27, %s9697_s27   ;;  %s6708_s26 = sphi %s6871_s26, %s9696_s26   ;;  %s6704_s25 = sphi %s6869_s25, %s9695_s25   ;;  %s6700_s2 = sphi %s6867_s2, %s9694_s2  }
  0x15   : > { %9572 = sst [smem:[#allocation15_spill]] %s6708_s26  ;;  %p136_p0 = scmp.ne.s32.totalorder %s6704_s25, %s6700_s2 }
  0x16   : > { %9573 = sst [smem:[#allocation16_spill]] %s6720_s28  ;;  %p6909_p1 = scmp.eq.s32.totalorder %s9525_s4, 0 }
  0x17   : > { %9574 = sst [smem:[#allocation17_spill]] %s6724_s29  ;;  %p5159_p2 = scmp.ge.s32.totalorder %s6728_s0, 1 }
  0x18   : > { %s9575_s30 = scalar_select %p6909_p1, 1, 0 }
  0x19   : > { %p543_p3 = scmp.lt.s32.totalorder %s6728_s0, 5  ;;  %p6917_p4 = por %p6909_p1, %p136_p0 }
  0x1a   : > { %s6730_s23 = smov [#allocation8]   ;;  %s9579_s19 = sld [smem:[#allocation35_spill]] }
  0x1b   : > { %s9576_s5 = scalar_select %p6917_p4, 1, 0 }
  0x1c   : > { %p6921_p5 = pnand %p5159_p2, %p543_p3  ;;  %s600_s1 = sshll.u32 %s6730_s23, 4  ;;  %s601_s1 = int_to_ptr.vmem [resolvable:$true] %s600_s1 }
  0x1e   : > { %s9577_s22 = scalar_select %p6921_p5, 1, 0 }
  0x1f   : > { %p6292_p6 = pneg %p6921_p5 }
  0x20   : > { %s6570_s21 = scalar_lea.hbm %s9579_s19, 2048 }
  0x21   : > { %p6929_p7 = pnand %p6292_p6, %p6909_p1  ;;  %p6571_p8 = scmp.ne.s32.totalorder %s9579_s19, %s6570_s21 }
  0x22   : > { %p6577_p12 = scmp.lt.u32.totalorder %s6570_s21, %s9579_s19 }
  0x23   : > { %p6572_p9 = pneg %p6929_p7 }
  0x25   : > { %p6573_p10 = pnand %p6572_p9, %p6571_p8 }
  0x27   : > { %p6574_p11 = pneg %p6573_p10 }
  0x29   : > { %p6579_p13 = pnand %p6577_p12, %p6574_p11 }
  0x2b   : > { %6582 = shalt.err (!%p6579_p13)
}
  0x2c   : > { %s6583_s10 = scalar_lea.vmem %s601_s1, 2048  ;;  %p6591_p6 = scmp.lt.s32.totalorder %s601_s1, %s601_s1 }
  0x2d   : > { %p6584_p0 = scmp.ne.s32.totalorder %s601_s1, %s6583_s10  ;;  %p6592_p1 = scmp.lt.s32.totalorder %s6583_s10, %s6583_s10 }
  0x2f   : > { %p6586_p2 = pnand %p6584_p0, %p6572_p9  ;;  %p6593_p4 = por %p6592_p1, %p6591_p6 }
  0x31   : > { %p6587_p3 = pneg %p6586_p2 }
  0x33   : > { %p6594_p5 = pnand %p6593_p4, %p6587_p3 }
  0x35   : > { %6597 = shalt.err (!%p6594_p5)
}
  0x36   : > { %s6731_s16 = smov 128   ;;  %s6732_s15 = smov 8  }
  0x37   : > { %6295 = dma.hbm_to_vmem [thread:$0]  (!%p6929_p7), %s9579_s19, 2048, %s601_s1, [#allocation9], %s6731_s16, %s6731_s16, %s6732_s15  }
  0x38   : > { %s45_s10 = sadd.s32 1, %s6720_s28  ;;  %s48_s4 = sadd.s32 1, %s6724_s29 }
  0x39   : > { %p46_p1 = scmp.ge.s32.totalorder %s45_s10, 2  ;;  %s123_s2 = sadd.s32 1, %s6708_s26 }
  0x3a   : > { %p130_p4 = scmp.ne.s32.totalorder %s6708_s26, %s6704_s25  ;;  %p131_p5 = scmp.eq.s32.totalorder %s6728_s0, 0 }
  0x3b   : > { %s9702_s10 = smov (%p46_p1, %s45_s10), 0  ;;  %s9704_s4 = smov (!%p46_p1, %s48_s4), %s6724_s29 }
  0x3c   : > { %9580 = sst [smem:[#allocation18_spill]] %s9702_s10  ;;  %s120_s23 = ssub.s32 %s6720_s28, %s9702_s10 }
  0x3d   : > { %p50_p8 = scmp.ge.s32.totalorder %s9704_s4, 2  ;;  %p121_p9 = scmp.eq.s32.totalorder %s120_s23, 0 }
  0x3e   : > { %p132_p10 = por %p131_p5, %p130_p4  ;;  %p6301_p11 = scmp.lt.s32.totalorder %s6728_s0, 4 }
  0x3f   : > { %s9706_s4 = smov (%p50_p8, %s9704_s4), 0  ;;  %s626_s24 = sand.u32 1, %s6708_s26  }
  0x40   : > { %9581 = sst [smem:[#allocation19_spill]] %s9706_s4  ;;  %s5162_s16 = sshll.u32 %s6720_s28, 4 }
  0x41   : > { %s6964_s1 = scalar_select %p121_p9, %s6708_s26, %s123_s2  }
  0x42   : > { %s9583_s21 = sld [smem:[#allocation29_spill]]  ;;  %s629_s10 = scalar_lea.vmem [#allocation5], %s626_s24 }
  0x43   : > { %9582 = sst [smem:[#allocation20_spill]] %s6964_s1  ;;  %s636_s29 = sshll.u32 %s629_s10, 4  ;;  %s6973_s29 = int_to_ptr.vmem [resolvable:$true] %s636_s29 }
  0x44   : > { %p6975_p7 = pnand %p6301_p11, %p132_p10  ;;  %s627_s2 = scalar_lea.sflag [#allocation6], %s626_s24 }
  0x46   : > { %p6600_p13 = pneg %p6975_p7 }
  0x48   : > { %s6971_s19 = scalar_lea.hbm %s9583_s21, %s5162_s16  ;;  %s6603_s10 = scalar_lea.hbm %s9583_s21, 32 }
  0x49   : > { %s6598_s4 = scalar_lea.hbm %s6971_s19, 16  ;;  %p6604_p3 = scmp.lt.u32.totalorder %s6971_s19, %s9583_s21 }
  0x4a   : > { %p6599_p12 = scmp.ne.s32.totalorder %s6971_s19, %s6598_s4  ;;  %p6605_p6 = scmp.lt.u32.totalorder %s6603_s10, %s6598_s4 }
  0x4b   : > { %p6607_p4 = scmp.lt.u32.totalorder %s6598_s4, %s6971_s19 }
  0x4c   : > { %p6601_p0 = pnand %p6600_p13, %p6599_p12  ;;  %p6606_p1 = por %p6605_p6, %p6604_p3 }
  0x4e   : > { %p6602_p2 = pneg %p6601_p0  ;;  %p6608_p5 = por %p6607_p4, %p6606_p1 }
  0x50   : > { %p6609_p8 = pnand %p6608_p5, %p6602_p2 }
  0x52   : > { %6612 = shalt.err (!%p6609_p8)
}
  0x53   : > { %s6613_s24 = scalar_lea.vmem %s6973_s29, 16  ;;  %s6733_s16 = smov [#allocation5]  }
  0x54   : > { %p6614_p9 = scmp.ne.s32.totalorder %s6973_s29, %s6613_s24  ;;  %s6618_s15 = sshll.u32 %s6733_s16, 4  ;;  %s6619_s15 = int_to_ptr.vmem [resolvable:$false] %s6618_s15 }
  0x55   : > { %s6620_s28 = scalar_lea.vmem %s6619_s15, 32  ;;  %p6621_p12 = scmp.lt.s32.totalorder %s6973_s29, %s6619_s15 }
  0x56   : > { %p6616_p10 = pnand %p6614_p9, %p6600_p13  ;;  %p6622_p0 = scmp.lt.s32.totalorder %s6620_s28, %s6613_s24 }
  0x58   : > { %p6617_p11 = pneg %p6616_p10  ;;  %p6623_p3 = por %p6622_p0, %p6621_p12 }
  0x5a   : > { %p6624_p6 = pnand %p6623_p3, %p6617_p11 }
  0x5c   : > { %6627 = shalt.err (!%p6624_p6)
}
  0x5d   : > { %6299 = dma.hbm_to_vmem [thread:$0]  (!%p6975_p7), %s6971_s19, 16, %s6973_s29, %s627_s2  }
  0x5e   : > { %p9585_p2 = scmp.ne.s32.totalorder %s9577_s22, 0 }
  0x5f   : > { %s673_s4 = sand.u32 (!%p9585_p2), 1, %s6704_s25   ;;  %p9586_p13 = scmp.ne.s32.totalorder (!%p9585_p2), %s9576_s5, 0 }
  0x60   : > { %671 = sbr.rel (%p9585_p2) target bundleno = 3082 (0xc0a), region = 104  ;;  %s674_s10 = scalar_lea.sflag (!%p9585_p2), [#allocation6], %s673_s4 }
  0x61   : > { %s7007_s20 = scalar_lea.vmem (!%p9585_p2), [#allocation5], %s673_s4 }
  0x67   : > { %6687 = dma.done.wait (%p9586_p13), %s674_s10, 16  }
  0x68   : > { %6689 = vsyncadd (%p9586_p13), %s674_s10, 4294967280  ;;  %p9587_p1 = scmp.ne.s32.totalorder %s9575_s30, 0 }
  0x6a   : > { %6691 = dma.done.wait (%p9587_p1), [#allocation9], 2048  }
  0x6b   : > { %6693 = vsyncadd (%p9587_p1), [#allocation9], 4294965248  ;;  %s5165_s19 = sshll.u32 %s6712_s27, 4  ;;  %s758_s29 = ssub.s32 1, %s6716_s3 }
  0x6c   : > { %p753_p7 = scmp.lt.s32.totalorder %s5165_s19, 31  ;;  %s759_s22 = smul.u32 %s6712_s27, %s758_s29 }
  0x6d   : > { %p779_p4 = scmp.eq.s32.totalorder %s6716_s3, 0  ;;  %p780_p5 = scmp.eq.s32.totalorder %s6712_s27, 0 }
  0x6e   : > { %s9708_s19 = smov (!%p753_p7, %s5165_s19), 31  ;;  %s5167_s5 = sshll.u32 %s759_s22, 4 }
  0x6f   : > { %s5166_s2 = sshll.u32 %s9708_s19, 3  ;;  %p761_p8 = scmp.lt.s32.totalorder %s5167_s5, 31 }
  0x70   : > { %s9588_s16 = sld [smem:[#allocation28_spill]]  ;;  %p781_p9 = pnand %p780_p5, %p779_p4 }
  0x71   : > { %s9710_s5 = smov (!%p761_p8, %s5167_s5), 31  ;;  %s9589_s21 = sld [smem:[#allocation30_spill]]  ;;  %v787_v0 = vld [vmem:[%s9511_s11] sm:$0xff] (!%p781_p9)  ;;  %v788_v1 = vld [vmem:[%s9511_s11 + $0x8] sm:$0xff] (!%p781_p9)  ;;  %v789_v2 = vld [vmem:[%s9511_s11 + $0x10] sm:$0xff] (!%p781_p9)  ;;  %v6734_v26 = vmov (!%p781_p9), 0.0  }
  0x72   : > { %s5168_s28 = sshll.u32 %s9710_s5, 3  ;;  %s9590_s22 = sld [smem:[#allocation31_spill]]  ;;  %v5924_v3 = vpack.c.bf16 (!%p781_p9), %v788_v1, %v787_v0  ;;  %v790_v4 = vld [vmem:[%s9511_s11 + $0x18] sm:$0xff] (!%p781_p9)  ;;  %v791_v6 = vld [vmem:[%s9511_s11 + $0x20] sm:$0xff] (!%p781_p9)  ;;  %v792_v7 = vld [vmem:[%s9511_s11 + $0x28] sm:$0xff] (!%p781_p9)  ;;  %880 = vst [vmem:[#allocation4] sm:$0xff] (!%p781_p9), %v6734_v26 }
  0x73   : > { %784 = sbr.rel (%p781_p9) target bundleno = 362 (0x16a), region = 116  ;;  %v5928_v5 = vpack.c.bf16 (!%p781_p9), %v790_v4, %v789_v2  ;;  %v5932_v8 = vpack.c.bf16 (!%p781_p9), %v792_v7, %v791_v6  ;;  %v793_v10 = vld [vmem:[%s9511_s11 + $0x30] sm:$0xff] (!%p781_p9)  ;;  %v794_v11 = vld [vmem:[%s9511_s11 + $0x38] sm:$0xff] (!%p781_p9)  ;;  %v795_v13 = vld [vmem:[%s9511_s11 + $0x40] sm:$0xff] (!%p781_p9)  ;;  %881 = vst [vmem:[#allocation4 + $0x8] sm:$0xff] (!%p781_p9), %v6734_v26 }
  0x74   : > { %5925 = vmatprep.subr.bf16.mxu0 (!%p781_p9), %v5924_v3  ;;  %v5936_v12 = vpack.c.bf16 (!%p781_p9), %v794_v11, %v793_v10  ;;  %v796_v14 = vld [vmem:[%s9511_s11 + $0x48] sm:$0xff] (!%p781_p9)  ;;  %v797_v16 = vld [vmem:[%s9511_s11 + $0x50] sm:$0xff] (!%p781_p9)  ;;  %v798_v17 = vld [vmem:[%s9511_s11 + $0x58] sm:$0xff] (!%p781_p9) }
  0x75   : > { %5927 = vmatpush3.bf16.msra.mxu0 (!%p781_p9), %v5924_v3  ;;  %v5940_v15 = vpack.c.bf16 (!%p781_p9), %v796_v14, %v795_v13  ;;  %v5944_v18 = vpack.c.bf16 (!%p781_p9), %v798_v17, %v797_v16  ;;  %v799_v19 = vld [vmem:[%s9511_s11 + $0x60] sm:$0xff] (!%p781_p9)  ;;  %v800_v20 = vld [vmem:[%s9511_s11 + $0x68] sm:$0xff] (!%p781_p9)  ;;  %v801_v22 = vld [vmem:[%s9511_s11 + $0x70] sm:$0xff] (!%p781_p9) }
  0x76   : > { %s7026_s15 = scalar_lea.vmem %s9588_s16, %s5166_s2  ;;  %5929 = vmatprep.subr.bf16.mxu0 (!%p781_p9), %v5928_v5  ;;  %v5948_v21 = vpack.c.bf16 (!%p781_p9), %v800_v20, %v799_v19  ;;  %v802_v23 = vld [vmem:[%s9511_s11 + $0x78] sm:$0xff] (!%p781_p9) }
  0x77   : > { %s7033_s29 = scalar_lea.vmem %s9589_s21, %s5168_s28  ;;  %v5952_v24 = vpack.c.bf16 (!%p781_p9), %v802_v23, %v801_v22 }
  0x78   : > { %s7038_s26 = scalar_lea.vmem %s9590_s22, %s5168_s28  ;;  %s9591_s22 = sld [smem:[#allocation27_spill]] (!%p781_p9) }
  0x79   : > { %5931 = vmatpush3.bf16.msra.mxu0 (!%p781_p9), %v5928_v5 }
  0x7a   : > { %5933 = vmatprep.subr.bf16.mxu0 %v5932_v8 }
  0x7d   : > { %5935 = vmatpush3.bf16.msra.mxu0 %v5932_v8 }
  0x7e   : > { %v785_v9 = vld [vmem:[%s9591_s22] sm:$0xff]  ;;  %5937 = vmatprep.subr.bf16.mxu0 %v5936_v12  ;;  %v786_v25 = vld [vmem:[%s9591_s22 + $0x8] sm:$0xff] }
  0x7f   : > { %5599 = vmatprep.mubr.f32.mxu0 %v785_v9 }
  0x81   : > { %5939 = vmatpush3.bf16.msra.mxu0 %v5936_v12 }
  0x82   : > { %5941 = vmatprep.subr.bf16.mxu0 %v5940_v15 }
  0x85   : > { %5943 = vmatpush3.bf16.msra.mxu0 %v5940_v15 }
  0x86   : > { %5945 = vmatprep.subr.bf16.mxu0 %v5944_v18 }
  0x89   : > { %5947 = vmatpush3.bf16.msra.mxu0 %v5944_v18 }
  0x8a   : > { %5949 = vmatprep.subr.bf16.mxu0 %v5948_v21 }
  0x8d   : > { %5951 = vmatpush3.bf16.msra.mxu0 %v5948_v21 }
  0x8e   : > { %5953 = vmatprep.subr.bf16.mxu0 %v5952_v24 }
  0x91   : > { %5955 = vmatpush3.bf16.msra.mxu0 %v5952_v24 }
  0x94   : > { %5600 = vmatmul.mubr.f32.vlgmr.msra.gmra.mrb[0].mxu0 %v786_v25 }
 0x167   : > { %v5601_v27 = vpop.f32.mrb[0].mxu0 }
 0x168   : > { %879 = vst [vmem:[#allocation3 + $0x8] sm:$0xff] %v5601_v27  ;;  %v869_v28 = vpop.f32.mrb[1].mxu0 }
 0x169   : > { %878 = vst [vmem:[#allocation3] sm:$0xff] %v869_v28 }
 0x16a PF: > { %p882_p10 = scmp.eq.s32.totalorder %s6716_s3, 1 }
 0x16c   : > { %p883_p11 = pnand %p882_p10, %p780_p5 }
 0x16d   : > { %s9592_s4 = sld [smem:[#allocation26_spill]] (!%p883_p11)  ;;  %v6735_v30 = vmov (!%p883_p11), 0   ;;  %v889_v32 = vld [vmem:[%s9512_s12] sm:$0xff] (!%p883_p11)  ;;  %v890_v33 = vld [vmem:[%s9512_s12 + $0x8] sm:$0xff] (!%p883_p11)  ;;  %v891_v35 = vld [vmem:[%s9512_s12 + $0x10] sm:$0xff] (!%p883_p11)  ;;  %v6736_v56 = vmov (!%p883_p11), 0.0  }
 0x16e   : > { %886 = sbr.rel (%p883_p11) target bundleno = 1091 (0x443), region = 120  ;;  %6395 = vset.pattern.permute.xlu0 (!%p883_p11), %v6735_v30  ;;  %v5956_v34 = vpack.c.bf16 (!%p883_p11), %v890_v33, %v889_v32  ;;  %v892_v36 = vld [vmem:[%s9512_s12 + $0x18] sm:$0xff] (!%p883_p11)  ;;  %v893_v38 = vld [vmem:[%s9512_s12 + $0x20] sm:$0xff] (!%p883_p11)  ;;  %v894_v39 = vld [vmem:[%s9512_s12 + $0x28] sm:$0xff] (!%p883_p11) }
 0x16f   : > { %v5960_v37 = vpack.c.bf16 (!%p883_p11), %v892_v36, %v891_v35  ;;  %v5964_v40 = vpack.c.bf16 (!%p883_p11), %v894_v39, %v893_v38  ;;  %v895_v41 = vld [vmem:[%s9512_s12 + $0x30] sm:$0xff] (!%p883_p11)  ;;  %v896_v42 = vld [vmem:[%s9512_s12 + $0x38] sm:$0xff] (!%p883_p11)  ;;  %v897_v44 = vld [vmem:[%s9512_s12 + $0x40] sm:$0xff] (!%p883_p11) }
 0x170   : > { %5957 = vmatprep.subr.bf16.mxu0 (!%p883_p11), %v5956_v34  ;;  %v5968_v43 = vpack.c.bf16 (!%p883_p11), %v896_v42, %v895_v41  ;;  %v898_v45 = vld [vmem:[%s9512_s12 + $0x48] sm:$0xff] (!%p883_p11)  ;;  %v899_v47 = vld [vmem:[%s9512_s12 + $0x50] sm:$0xff] (!%p883_p11)  ;;  %v900_v48 = vld [vmem:[%s9512_s12 + $0x58] sm:$0xff] (!%p883_p11) }
 0x171   : > { %5959 = vmatpush3.bf16.msra.mxu0 (!%p883_p11), %v5956_v34  ;;  %v5972_v46 = vpack.c.bf16 (!%p883_p11), %v898_v45, %v897_v44  ;;  %v901_v49 = vld [vmem:[%s9512_s12 + $0x60] sm:$0xff] (!%p883_p11)  ;;  %v5976_v50 = vpack.c.bf16 (!%p883_p11), %v900_v48, %v899_v47  ;;  %v902_v51 = vld [vmem:[%s9512_s12 + $0x68] sm:$0xff] (!%p883_p11)  ;;  %v903_v54 = vld [vmem:[%s9512_s12 + $0x70] sm:$0xff] (!%p883_p11)  ;;  %v6738_v44 = vmov (!%p883_p11), 2475754826  }
 0x172   : > { %5961 = vmatprep.subr.bf16.mxu0 (!%p883_p11), %v5960_v37  ;;  %v5980_v52 = vpack.c.bf16 (!%p883_p11), %v902_v51, %v901_v49  ;;  %v887_v53 = vld [vmem:[#allocation4] sm:$0xff] (!%p883_p11)  ;;  %v904_v55 = vld [vmem:[%s9512_s12 + $0x78] sm:$0xff] (!%p883_p11)  ;;  %v888_v57 = vld [vmem:[#allocation4 + $0x8] sm:$0xff] (!%p883_p11)  ;;  %v6740_v48 = vmov (!%p883_p11), 2102212464  }
 0x173   : > { %v987_v29 = vld [vmem:[%s9592_s4] sm:$0xff] (!%p883_p11)  ;;  %v988_v31 = vld [vmem:[%s9592_s4 + $0x8] sm:$0xff] (!%p883_p11)  ;;  %5634 = vmatprep.mubr.f32.mxu0 (!%p883_p11), %v887_v53  ;;  %1672 = vst [vmem:[#allocation4] sm:$0xff] (!%p883_p11), %v6736_v56  ;;  %1673 = vst [vmem:[#allocation4 + $0x8] sm:$0xff] (!%p883_p11), %v6736_v56  ;;  %v5984_v58 = vpack.c.bf16 (!%p883_p11), %v904_v55, %v903_v54 }
 0x174   : > { %992 = vperm.xlu0 (!%p883_p11), %6395, %v987_v29   ;;  %v1441_v59 = vld [vmem:[%s9517_s17] sm:$0xff] (!%p883_p11)  ;;  %v1442_v60 = vld [vmem:[%s9517_s17 + $0x8] sm:$0xff] (!%p883_p11)  ;;  %v1443_v62 = vld [vmem:[%s9517_s17 + $0x10] sm:$0xff] (!%p883_p11) }
 0x175   : > { %5963 = vmatpush3.bf16.msra.mxu0 %v5960_v37  ;;  %v5988_v61 = vpack.c.bf16 %v1442_v60, %v1441_v59  ;;  %v1444_v63 = vld [vmem:[%s9517_s17 + $0x18] sm:$0xff]  ;;  %v1445_v1 = vld [vmem:[%s9517_s17 + $0x20] sm:$0xff]  ;;  %v1446_v2 = vld [vmem:[%s9517_s17 + $0x28] sm:$0xff] }
 0x176   : > { %5965 = vmatprep.subr.bf16.mxu0 %v5964_v40  ;;  %v5992_v0 = vpack.c.bf16 %v1444_v63, %v1443_v62  ;;  %v5996_v3 = vpack.c.bf16 %v1446_v2, %v1445_v1  ;;  %v1447_v4 = vld [vmem:[%s9517_s17 + $0x30] sm:$0xff]  ;;  %v1448_v5 = vld [vmem:[%s9517_s17 + $0x38] sm:$0xff]  ;;  %v1449_v7 = vld [vmem:[%s9517_s17 + $0x40] sm:$0xff] }
 0x177   : > { %v6000_v6 = vpack.c.bf16 %v1448_v5, %v1447_v4  ;;  %v1450_v8 = vld [vmem:[%s9517_s17 + $0x48] sm:$0xff]  ;;  %v1451_v10 = vld [vmem:[%s9517_s17 + $0x50] sm:$0xff]  ;;  %v1452_v11 = vld [vmem:[%s9517_s17 + $0x58] sm:$0xff] }
 0x178   : > { %997 = vperm.xlu0 %6395, %v988_v31   ;;  %v6004_v9 = vpack.c.bf16 %v1450_v8, %v1449_v7  ;;  %v6008_v12 = vpack.c.bf16 %v1452_v11, %v1451_v10  ;;  %v1453_v13 = vld [vmem:[%s9517_s17 + $0x60] sm:$0xff]  ;;  %v1454_v14 = vld [vmem:[%s9517_s17 + $0x68] sm:$0xff]  ;;  %v1455_v16 = vld [vmem:[%s9517_s17 + $0x70] sm:$0xff] }
 0x179   : > { %5967 = vmatpush3.bf16.msra.mxu0 %v5964_v40  ;;  %v6012_v15 = vpack.c.bf16 %v1454_v14, %v1453_v13  ;;  %v1456_v17 = vld [vmem:[%s9517_s17 + $0x78] sm:$0xff]  ;;  %v5173_v19 = vld [vmem:[%s9506_s6] ss:$0 sm:$0xff]  ;;  %v6737_v40 = vmov 683565275  }
 0x17a   : > { %5969 = vmatprep.subr.bf16.mxu0 %v5968_v43  ;;  %v6016_v18 = vpack.c.bf16 %v1456_v17, %v1455_v16 }
 0x17d   : > { %5971 = vmatpush3.bf16.msra.mxu0 %v5968_v43 }
 0x17e   : > { %5973 = vmatprep.subr.bf16.mxu0 %v5972_v46 }
 0x181   : > { %5975 = vmatpush3.bf16.msra.mxu0 %v5972_v46  ;;  %v6739_v46 = vmov 2131351028  }
 0x182   : > { %5977 = vmatprep.subr.bf16.mxu0 %v5976_v50 }
 0x185   : > { %5979 = vmatpush3.bf16.msra.mxu0 %v5976_v50  ;;  %v6741_v50 = vmov 920167782  }
 0x186   : > { %5981 = vmatprep.subr.bf16.mxu0 %v5980_v52 }
 0x189   : > { %5983 = vmatpush3.bf16.msra.mxu0 %v5980_v52 }
 0x18a   : > { %5985 = vmatprep.subr.bf16.mxu0 %v5984_v58 }
 0x18d   : > { %5987 = vmatpush3.bf16.msra.mxu0 %v5984_v58 }
 0x18e   : > { %5989 = vmatprep.subr.bf16.mxu0 %v5988_v61 }
 0x190   : > { %5635 = vmatmul.mubr.f32.vlgmr.msra.gmra.mrb[0].mxu0 %v888_v57  ;;  %v6742_v57 = vmov 1326507024  }
 0x191   : > { %5991 = vmatpush3.bf16.msra.mxu0 %v5988_v61 }
 0x192   : > { %5993 = vmatprep.subr.bf16.mxu0 %v5992_v0 }
 0x195   : > { %5995 = vmatpush3.bf16.msra.mxu0 %v5992_v0 }
 0x196   : > { %5997 = vmatprep.subr.bf16.mxu0 %v5996_v3 }
 0x199   : > { %5999 = vmatpush3.bf16.msra.mxu0 %v5996_v3 }
 0x19a   : > { %6001 = vmatprep.subr.bf16.mxu0 %v6000_v6 }
 0x19d   : > { %6003 = vmatpush3.bf16.msra.mxu0 %v6000_v6 }
 0x19e   : > { %6005 = vmatprep.subr.bf16.mxu0 %v6004_v9 }
 0x1a1   : > { %6007 = vmatpush3.bf16.msra.mxu0 %v6004_v9 }
 0x1a2   : > { %6009 = vmatprep.subr.bf16.mxu0 %v6008_v12 }
 0x1a5   : > { %6011 = vmatpush3.bf16.msra.mxu0 %v6008_v12 }
 0x1a6   : > { %6013 = vmatprep.subr.bf16.mxu0 %v6012_v15 }
 0x1a9   : > { %6015 = vmatpush3.bf16.msra.mxu0 %v6012_v15 }
 0x1aa   : > { %6017 = vmatprep.subr.bf16.mxu0 %v6016_v18 }
 0x1ad   : > { %6019 = vmatpush3.bf16.msra.mxu0 %v6016_v18 }
 0x1f3   : > { %v993_v20 = vpop.permute.xlu0 %992 }
 0x1f4   : > { %v7204_v21 = vmul.f32 %v5173_v19, %v993_v20 }
 0x1f6   : > { %v1011_v22 = vand.u32 2147483647, %v7204_v21  ;;  %v1014_v23 = vand.u32 2139095040, %v7204_v21  ;;  %vm1013_vm14 = vcmp.lt.s32.totalorder %v7204_v21, 0 }
 0x1f7   : > { %v998_v24 = vpop.permute.xlu0 %997 }
 0x1f8   : > { %v1015_v25 = vshrl.u32 %v1014_v23, 23  ;;  %v7208_v26 = vmul.f32 %v5173_v19, %v998_v24  ;;  %v1018_v27 = vand.u32 8388607, %v1011_v22  ;;  %vm1012_vm15 = vcmp.le.f32.partialorder %v1011_v22, 0.7853982 }
 0x1fa   : > { %v5174_v28 = vadd.s32 4294967169, %v1015_v25  ;;  %v1118_v29 = vand.u32 2139095040, %v7208_v26  ;;  %v1019_v31 = vor.u32 8388608, %v1018_v27  ;;  %v1115_v33 = vand.u32 2147483647, %v7208_v26 }
 0x1fc   : > { %v1021_v30 = vadd.s32 1, %v5174_v28  ;;  %v1119_v32 = vshrl.u32 %v1118_v29, 23  ;;  %v7214_v38 = vshll.u32 %v1019_v31, 8  ;;  %v1122_v42 = vand.u32 8388607, %v1115_v33 }
 0x1fe   : > { %vm1022_vm0 = vcmp.gt.s32.totalorder %v1021_v30, 0  ;;  %v5178_v35 = vadd.s32 4294967169, %v1119_v32  ;;  %v1123_v8 = vor.u32 8388608, %v1122_v42 }
 0x1ff   : > { %v1023_v34 = vsel %vm1022_vm0, %v1021_v30, 0  ;;  %vm1117_vm0 = vcmp.lt.s32.totalorder %v7208_v26, 0 }
 0x200   : > { %v1024_v36 = vshrl.u32 %v1023_v34, 5  ;;  %v1025_v37 = vand.u32 31, %v1023_v34  ;;  %v1125_v43 = vadd.s32 1, %v5178_v35  ;;  %v1163_v23 = vshll.u32 %v1123_v8, 8 }
 0x202   : > { %v1026_v39 = vsub.s32 32, %v1025_v37  ;;  %v1028_v41 = vshll.u32 %v6737_v40, %v1025_v37  ;;  %v1031_v45 = vshll.u32 %v6738_v44, %v1025_v37  ;;  %v1034_v47 = vshll.u32 %v6739_v46, %v1025_v37 }
 0x203   : > { %v1037_v49 = vshll.u32 %v6740_v48, %v1025_v37  ;;  %v1040_v51 = vshll.u32 %v6741_v50, %v1025_v37  ;;  %vm1043_vm1 = vcmp.lt.s32.totalorder %v1024_v36, 1  ;;  %vm1045_vm2 = vcmp.lt.s32.totalorder %v1024_v36, 3 }
 0x204   : > { %v1029_v52 = vshrl.u32 %v6738_v44, %v1026_v39  ;;  %v1032_v53 = vshrl.u32 %v6739_v46, %v1026_v39  ;;  %v1035_v54 = vshrl.u32 %v6740_v48, %v1026_v39  ;;  %v1027_v55 = vshrl.u32 %v6737_v40, %v1026_v39 }
 0x205   : > { %v1038_v56 = vshrl.u32 %v6741_v50, %v1026_v39  ;;  %v1041_v58 = vshrl.u32 %v6742_v57, %v1026_v39  ;;  %vm1126_vm3 = vcmp.gt.s32.totalorder %v1125_v43, 0  ;;  %vm1046_vm4 = vcmp.lt.s32.totalorder %v1024_v36, 4 }
 0x206   : > { %v1030_v59 = vor.u32 %v1029_v52, %v1028_v41  ;;  %v1033_v60 = vor.u32 %v1032_v53, %v1031_v45  ;;  %v1036_v61 = vor.u32 %v1035_v54, %v1034_v47  ;;  %v1127_v0 = vsel %vm1126_vm3, %v1125_v43, 0 }
 0x207   : > { %v1039_v62 = vor.u32 %v1038_v56, %v1037_v49  ;;  %v1042_v63 = vor.u32 %v1041_v58, %v1040_v51  ;;  %vm1044_vm5 = vcmp.lt.s32.totalorder %v1024_v36, 2  ;;  %v1129_v11 = vand.u32 31, %v1127_v0 }
 0x208   : > { %v1047_v1 = vsel %vm1043_vm1, %v1027_v55, %v1030_v59  ;;  %v1048_v2 = vsel %vm1046_vm4, %v1036_v61, 2102212464  ;;  %v1051_v3 = vsel %vm1043_vm1, %v1030_v59, %v1033_v60  ;;  %v1055_v4 = vsel %vm1043_vm1, %v1033_v60, %v1036_v61 }
 0x209   : > { %v1049_v5 = vsel %vm1045_vm2, %v1033_v60, %v1048_v2  ;;  %v1052_v6 = vsel %vm1046_vm4, %v1039_v62, 920167782  ;;  %v1056_v7 = vsel %vm1046_vm4, %v1042_v63, 1326507024  ;;  %v1128_v19 = vshrl.u32 %v1127_v0, 5 }
 0x20a   : > { %v1053_v9 = vsel %vm1045_vm2, %v1036_v61, %v1052_v6  ;;  %v1057_v10 = vsel %vm1045_vm2, %v1039_v62, %v1056_v7  ;;  %v1050_v12 = vsel %vm1044_vm5, %v1047_v1, %v1049_v5  ;;  %v1130_v20 = vsub.s32 32, %v1129_v11 }
 0x20b   : > { %v1054_v13 = vsel %vm1044_vm5, %v1051_v3, %v1053_v9  ;;  %v1058_v14 = vsel %vm1044_vm5, %v1055_v4, %v1057_v10  ;;  %v1066_v24 = vmul.u32 %v7214_v38, %v1050_v12  ;;  %v1132_v25 = vshll.u32 %v6737_v40, %v1129_v11 }
 0x20c   : > { %v7227_v15 = vmul.u32.u64.low %v7214_v38, %v1058_v14  ;;  %v7228_v16 = vmul.u32.u64.high %v7214_v38, %v1058_v14, %v7227_v15  ;;  %v7231_v17 = vmul.u32.u64.low %v7214_v38, %v1054_v13  ;;  %v7232_v18 = vmul.u32.u64.high %v7214_v38, %v1054_v13, %v7231_v17 }
 0x20d   : > { %v1135_v27 = vshll.u32 %v6738_v44, %v1129_v11  ;;  %v1138_v28 = vshll.u32 %v6739_v46, %v1129_v11  ;;  %v1133_v29 = vshrl.u32 %v6738_v44, %v1130_v20  ;;  %v1136_v30 = vshrl.u32 %v6739_v46, %v1130_v20 }
 0x20e   : > { %v1139_v31 = vshrl.u32 %v6740_v48, %v1130_v20  ;;  %v1141_v32 = vshll.u32 %v6740_v48, %v1129_v11  ;;  %vm1068_vm6 = vc.u32 %v7228_v16, %v7231_v17  ;;  %v1069_v34 = vadd.s32 1, %v7232_v18 }
 0x20f   : > { %v1142_v35 = vshrl.u32 %v6741_v50, %v1130_v20  ;;  %v1144_v36 = vshll.u32 %v6741_v50, %v1129_v11  ;;  %v1134_v37 = vor.u32 %v1133_v29, %v1132_v25  ;;  %v1137_v39 = vor.u32 %v1136_v30, %v1135_v27 }
 0x210   : > { %v1140_v41 = vor.u32 %v1139_v31, %v1138_v28  ;;  %v1145_v42 = vshrl.u32 %v6742_v57, %v1130_v20  ;;  %v1070_v38 = vsel %vm1068_vm6, %v1069_v34, %v7232_v18  ;;  %vm1147_vm7 = vcmp.lt.s32.totalorder %v1128_v19, 1 }
 0x211   : > { %v1143_v43 = vor.u32 %v1142_v35, %v1141_v32  ;;  %vm1150_vm8 = vcmp.lt.s32.totalorder %v1128_v19, 4  ;;  %v1071_v44 = vadd.s32 %v1070_v38, %v1066_v24  ;;  %vm1149_vm9 = vcmp.lt.s32.totalorder %v1128_v19, 3 }
 0x212   : > { %v1146_v45 = vor.u32 %v1145_v42, %v1144_v36  ;;  %v1152_v46 = vsel %vm1150_vm8, %v1140_v41, 2102212464  ;;  %v1131_v47 = vshrl.u32 %v6737_v40, %v1130_v20  ;;  %v1155_v48 = vsel %vm1147_vm7, %v1134_v37, %v1137_v39 }
 0x213   : > { %v1156_v49 = vsel %vm1150_vm8, %v1143_v43, 920167782  ;;  %v1159_v51 = vsel %vm1147_vm7, %v1137_v39, %v1140_v41  ;;  %v1072_v52 = vadd.s32 536870912, %v1071_v44  ;;  %vm1148_vm10 = vcmp.lt.s32.totalorder %v1128_v19, 2 }
 0x214   : > { %v1157_v50 = vsel %vm1149_vm9, %v1140_v41, %v1156_v49  ;;  %v1160_v53 = vsel %vm1150_vm8, %v1146_v45, 1326507024  ;;  %v1151_v54 = vsel %vm1147_vm7, %v1131_v47, %v1134_v37  ;;  %v1153_v55 = vsel %vm1149_vm9, %v1137_v39, %v1152_v46 }
 0x215   : > { %v1158_v56 = vsel %vm1148_vm10, %v1155_v48, %v1157_v50  ;;  %v1161_v57 = vsel %vm1149_vm9, %v1143_v43, %v1160_v53  ;;  %v1073_v58 = vshrl.u32 %v1072_v52, 30  ;;  %v1154_v0 = vsel %vm1148_vm10, %v1151_v54, %v1153_v55 }
 0x216   : > { %v1162_v59 = vsel %vm1148_vm10, %v1159_v51, %v1161_v57  ;;  %v7242_v60 = vmul.u32.u64.low %v1163_v23, %v1158_v56  ;;  %v7243_v61 = vmul.u32.u64.high %v1163_v23, %v1158_v56, %v7242_v60  ;;  %v1170_v3 = vmul.u32 %v1163_v23, %v1154_v0 }
 0x217   : > { %v7245_v62 = vmul.u32.u64.low %v1163_v23, %v1162_v59  ;;  %v7246_v63 = vmul.u32.u64.high %v1163_v23, %v1162_v59, %v7245_v62  ;;  %v1074_v40 = vshll.u32 %v1073_v58, 30  ;;  %v1067_v15 = vadd.s32 %v7231_v17, %v7228_v16 }
 0x218   : > { %v1173_v2 = vadd.s32 1, %v7243_v61  ;;  %v1097_v37 = vsub.s32 4, %v1073_v58  ;;  %v1008_v54 = vlaneseq  ;;  %vm1116_vm1 = vcmp.le.f32.partialorder %v1115_v33, 0.7853982 }
 0x219   : > { %v1075_v1 = vsub.s32 %v1071_v44, %v1074_v40  ;;  %vm1172_vm11 = vc.u32 %v7246_v63, %v7242_v60  ;;  %v1171_v16 = vadd.s32 %v7242_v60, %v7246_v63  ;;  %vm1103_vm9 = vweird.f32 %v7204_v21 }
 0x21a   : > { %v1174_v5 = vsel %vm1172_vm11, %v1173_v2, %v7243_v61  ;;  %v1098_v46 = vsel %vm1013_vm14, %v1097_v37, %v1073_v58  ;;  %v1009_v60 = vand.u32 127, %v1008_v54  ;;  %v1588_v54 = vld [vmem:[%s9514_s14 + $0x48] sm:$0xff] }
 0x21b   : > { %v1077_v4 = vsub.s32 0, %v1075_v1  ;;  %v1175_v6 = vadd.s32 %v1174_v5, %v1170_v3  ;;  %v1100_v52 = vsel %vm1012_vm15, 0, %v1098_v46 }
 0x21c   : > { %v1104_v55 = vadd.s32 3, %v1100_v52  ;;  %v1312_v61 = vand.u32 3, %v1100_v52  ;;  %vm1010_vm2 = vcmp.lt.s32.totalorder %v1009_v60, 64  ;;  %v1586_v52 = vld [vmem:[%s9514_s14 + $0x38] sm:$0xff]  ;;  %v1591_v60 = vld [vmem:[%s9514_s14 + $0x60] sm:$0xff] }
 0x21d   : > { %v5175_v7 = vmin.u32 %v1077_v4, %v1075_v1  ;;  %v1176_v8 = vadd.s32 536870912, %v1175_v6 }
 0x21e   : > { %v1105_v22 = vand.u32 3, %v1104_v55  ;;  %vm1317_vm3 = vcmp.eq.s32.totalorder %v1312_v61, 2  ;;  %vm1314_vm6 = vcmp.eq.s32.totalorder %v1312_v61, 0  ;;  %vm1313_vm8 = vcmp.lt.s32.totalorder %v1312_v61, 2  ;;  %v1592_v61 = vld [vmem:[%s9514_s14 + $0x68] sm:$0xff] }
 0x21f   : > { %v1079_v9 = vclz %v5175_v7  ;;  %v1177_v10 = vshrl.u32 %v1176_v8, 30 }
 0x220   : > { %vm1110_vm4 = vcmp.eq.s32.totalorder %v1105_v22, 2  ;;  %vm1107_vm5 = vcmp.eq.s32.totalorder %v1105_v22, 0  ;;  %vm1106_vm7 = vcmp.lt.s32.totalorder %v1105_v22, 2  ;;  %v6044_v22 = vpack.c.bf16 %v1592_v61, %v1591_v60 }
 0x221   : > { %v5176_v11 = vadd.s32 4294967294, %v1079_v9  ;;  %v1178_v12 = vshll.u32 %v1177_v10, 30  ;;  %v1201_v57 = vsub.s32 4, %v1177_v10 }
 0x223   : > { %vm5177_vm12 = vcmp.lt.s32.totalorder %v5176_v11, 0  ;;  %v1179_v14 = vsub.s32 %v1175_v6, %v1178_v12  ;;  %v1202_v62 = vsel %vm1117_vm0, %v1201_v57, %v1177_v10  ;;  %v1590_v57 = vld [vmem:[%s9514_s14 + $0x58] sm:$0xff] }
 0x224   : > { %v1082_v13 = vsel %vm5177_vm12, 0, %v5176_v11  ;;  %v1204_v2 = vsel %vm1116_vm1, 0, %v1202_v62  ;;  %v1594_v62 = vld [vmem:[%s9514_s14 + $0x78] sm:$0xff] }
 0x225   : > { %v1083_v18 = vsub.s32 32, %v1082_v13  ;;  %v1087_v19 = vsub.s32 4294967266, %v1082_v13  ;;  %v1181_v20 = vsub.s32 0, %v1179_v14  ;;  %v1084_v23 = vshll.u32 %v1075_v1, %v1082_v13 }
 0x226   : > { %v1208_v7 = vadd.s32 3, %v1204_v2 }
 0x227   : > { %v1085_v24 = vshrl.u32 %v1067_v15, %v1083_v18  ;;  %v1088_v25 = vadd.s32 127, %v1087_v19  ;;  %v5179_v27 = vmin.u32 %v1181_v20, %v1179_v14  ;;  %v1415_v15 = vand.u32 3, %v1204_v2 }
 0x229   : > { %v1086_v28 = vor.u32 %v1085_v24, %v1084_v23  ;;  %v1089_v29 = vshll.u32 %v1088_v25, 23  ;;  %v1183_v30 = vclz %v5179_v27  ;;  %vm1420_vm11 = vcmp.eq.s32.totalorder %v1415_v15, 2 }
 0x22b   : > { %v1090_v31 = vor.u32 4788187, %v1089_v29  ;;  %v5180_v32 = vadd.s32 4294967294, %v1183_v30  ;;  %v1093_v35 = vcvt.s32.f32 %v1086_v28 }
 0x22d   : > { %v1091_v34 = vand.u32 2147483647, %v1090_v31  ;;  %vm5181_vm13 = vcmp.lt.s32.totalorder %v5180_v32, 0 }
 0x22e   : > { %v1186_v39 = vsel %vm5181_vm13, 0, %v5180_v32  ;;  %vm1417_vm13 = vcmp.eq.s32.totalorder %v1415_v15, 0 }
 0x22f   : > { %v1094_v36 = vmul.f32 %v1093_v35, %v1091_v34  ;;  %v1187_v17 = vsub.s32 32, %v1186_v39  ;;  %v1191_v41 = vsub.s32 4294967266, %v1186_v39  ;;  %v1188_v38 = vshll.u32 %v1179_v14, %v1186_v39 }
 0x230   : > { %v1209_v14 = vand.u32 3, %v1208_v7 }
 0x231   : > { %v1095_v42 = vxor.u32 2147483648, %v1094_v36  ;;  %v1189_v43 = vshrl.u32 %v1171_v16, %v1187_v17  ;;  %v1192_v44 = vadd.s32 127, %v1191_v41 }
 0x232   : > { %vm1214_vm10 = vcmp.eq.s32.totalorder %v1209_v14, 2  ;;  %vm1211_vm12 = vcmp.eq.s32.totalorder %v1209_v14, 0 }
 0x233   : > { %v1096_v45 = vsel %vm1013_vm14, %v1095_v42, %v1094_v36  ;;  %v1190_v48 = vor.u32 %v1189_v43, %v1188_v38  ;;  %v1193_v49 = vshll.u32 %v1192_v44, 23  ;;  %vm1210_vm14 = vcmp.lt.s32.totalorder %v1209_v14, 2  ;;  %v1580_v38 = vld [vmem:[%s9514_s14 + $0x8] sm:$0xff]  ;;  %v1581_v43 = vld [vmem:[%s9514_s14 + $0x10] sm:$0xff] }
 0x234   : > { %v1099_v47 = vsel %vm1012_vm15, %v7204_v21, %v1096_v45  ;;  %vm1416_vm15 = vcmp.lt.s32.totalorder %v1415_v15, 2  ;;  %v1582_v45 = vld [vmem:[%s9514_s14 + $0x18] sm:$0xff] }
 0x235   : > { %6396 = vcosq.f32 %v1099_v47  ;;  %v1194_v51 = vor.u32 4788187, %v1193_v49  ;;  %v1197_v53 = vcvt.s32.f32 %v1190_v48  ;;  %v6024_v46 = vpack.c.bf16 %v1582_v45, %v1581_v43  ;;  %v1584_v48 = vld [vmem:[%s9514_s14 + $0x28] sm:$0xff] }
 0x236   : > { %6398 = vsinq.f32 %v1099_v47  ;;  %v1583_v47 = vld [vmem:[%s9514_s14 + $0x20] sm:$0xff] }
 0x237   : > { %v1195_v50 = vand.u32 2147483647, %v1194_v51  ;;  %v6028_v49 = vpack.c.bf16 %v1584_v48, %v1583_v47  ;;  %v1585_v51 = vld [vmem:[%s9514_s14 + $0x30] sm:$0xff] }
 0x239   : > { %v1198_v56 = vmul.f32 %v1197_v53, %v1195_v50  ;;  %v6032_v50 = vpack.c.bf16 %v1586_v52, %v1585_v51  ;;  %v1587_v53 = vld [vmem:[%s9514_s14 + $0x40] sm:$0xff] }
 0x23a   : > { %v6036_v55 = vpack.c.bf16 %v1588_v54, %v1587_v53 }
 0x23b   : > { %v1199_v59 = vxor.u32 2147483648, %v1198_v56 }
 0x23d   : > { %v1200_v58 = vsel %vm1117_vm0, %v1199_v59, %v1198_v56  ;;  %vm1207_vm0 = vweird.f32 %v7208_v26  ;;  %v1589_v56 = vld [vmem:[%s9514_s14 + $0x50] sm:$0xff] }
 0x23e   : > { %v1203_v40 = vsel %vm1116_vm1, %v7208_v26, %v1200_v58  ;;  %v1579_v26 = vld [vmem:[%s9514_s14] sm:$0xff]  ;;  %v6040_v59 = vpack.c.bf16 %v1590_v57, %v1589_v56  ;;  %v1593_v58 = vld [vmem:[%s9514_s14 + $0x70] sm:$0xff] }
 0x23f   : > { %v6397_v63 = vpop.eup %6396  ;;  %6400 = vcosq.f32 %v1203_v40  ;;  %v6020_v44 = vpack.c.bf16 %v1580_v38, %v1579_v26 }
 0x240   : > { %v6399_v0 = vpop.eup %6398  ;;  %v1111_v1 = vxor.u32 2147483648, %v6397_v63  ;;  %6402 = vsinq.f32 %v1203_v40  ;;  %v5172_v40 = vld [vmem:[%s9513_s13] ss:$0 sm:$0xff] }
 0x241   : > { %v1108_v3 = vxor.u32 2147483648, %v6399_v0  ;;  %6021 = vmatprep.subr.bf16.mxu1 %v6020_v44 }
 0x242   : > { %v1112_v4 = vsel %vm1110_vm4, %v1111_v1, %v6399_v0  ;;  %v1319_v5 = vsel %vm1317_vm3, %v1111_v1, %v6399_v0  ;;  %6023 = vmatpush3.bf16.msra.mxu1 %v6020_v44  ;;  %v5192_v1 = vld [vmem:[%s9518_s18] ss:$0 sm:$0xff] }
 0x243   : > { %v1109_v33 = vsel %vm1107_vm5, %v6397_v63, %v1108_v3  ;;  %v1316_v6 = vsel %vm1314_vm6, %v6397_v63, %v1108_v3  ;;  %6025 = vmatprep.subr.bf16.mxu1 %v6024_v46  ;;  %v6048_v63 = vpack.c.bf16 %v1594_v62, %v1593_v58 }
 0x244   : > { %v1113_v8 = vsel %vm1106_vm7, %v1109_v33, %v1112_v4  ;;  %v1320_v9 = vsel %vm1313_vm8, %v1316_v6, %v1319_v5 }
 0x245   : > { %v1114_v10 = vsel %vm1103_vm9, nan, %v1113_v8  ;;  %v1321_v11 = vsel %vm1103_vm9, nan, %v1320_v9 }
 0x246   : > { %v1425_v12 = vsel %vm1010_vm2, %v1114_v10, %v1321_v11  ;;  %6027 = vmatpush3.bf16.msra.mxu1 %v6024_v46 }
 0x247   : > { %v5190_v13 = vmul.f32 -1.442695, %v1425_v12  ;;  %6029 = vmatprep.subr.bf16.mxu1 %v6028_v49 }
 0x249   : > { %6404 = vpow2.f32 %v5190_v13  ;;  %v6401_v18 = vpop.eup %6400 }
 0x24a   : > { %v6403_v19 = vpop.eup %6402  ;;  %v1215_v20 = vxor.u32 2147483648, %v6401_v18  ;;  %6031 = vmatpush3.bf16.msra.mxu1 %v6028_v49 }
 0x24b   : > { %v1212_v23 = vxor.u32 2147483648, %v6403_v19  ;;  %6033 = vmatprep.subr.bf16.mxu1 %v6032_v50 }
 0x24c   : > { %v1216_v24 = vsel %vm1214_vm10, %v1215_v20, %v6403_v19  ;;  %v1422_v21 = vsel %vm1420_vm11, %v1215_v20, %v6403_v19 }
 0x24d   : > { %v1213_v25 = vsel %vm1211_vm12, %v6401_v18, %v1212_v23  ;;  %v1419_v27 = vsel %vm1417_vm13, %v6401_v18, %v1212_v23 }
 0x24e   : > { %v1217_v28 = vsel %vm1210_vm14, %v1213_v25, %v1216_v24  ;;  %v1423_v29 = vsel %vm1416_vm15, %v1419_v27, %v1422_v21  ;;  %6035 = vmatpush3.bf16.msra.mxu1 %v6032_v50 }
 0x24f   : > { %v1218_v30 = vsel %vm1207_vm0, nan, %v1217_v28  ;;  %v1424_v31 = vsel %vm1207_vm0, nan, %v1423_v29  ;;  %6037 = vmatprep.subr.bf16.mxu1 %v6036_v55 }
 0x250   : > { %v1426_v32 = vsel %vm1010_vm2, %v1218_v30, %v1424_v31 }
 0x251   : > { %v5191_v34 = vmul.f32 -1.442695, %v1426_v32 }
 0x252   : > { %6039 = vmatpush3.bf16.msra.mxu1 %v6036_v55 }
 0x253   : > { %v6405_v35 = vpop.eup %6404  ;;  %6406 = vpow2.f32 %v5191_v34  ;;  %6041 = vmatprep.subr.bf16.mxu1 %v6040_v59 }
 0x254   : > { %v1433_v36 = vadd.f32 1.0, %v6405_v35 }
 0x256   : > { %6408 = vrcp.f32 %v1433_v36  ;;  %6043 = vmatpush3.bf16.msra.mxu1 %v6040_v59 }
 0x257   : > { %6045 = vmatprep.subr.bf16.mxu1 %v6044_v22 }
 0x25a   : > { %6047 = vmatpush3.bf16.msra.mxu1 %v6044_v22 }
 0x25b   : > { %6049 = vmatprep.subr.bf16.mxu1 %v6048_v63 }
 0x25d   : > { %v6407_v37 = vpop.eup %6406 }
 0x25e   : > { %v1434_v39 = vadd.f32 1.0, %v6407_v37  ;;  %6051 = vmatpush3.bf16.msra.mxu1 %v6048_v63 }
 0x260   : > { %v6409_v16 = vpop.eup %6408  ;;  %6410 = vrcp.f32 %v1434_v39 }
 0x261   : > { %v1439_v17 = vmul.f32 %v6409_v16, %v1425_v12 }
 0x263   : > { %5669 = vmatprep.mubr.f32.mxu0 %v1439_v17 }
 0x26a   : > { %v6411_v41 = vpop.eup %6410 }
 0x26b   : > { %v1440_v42 = vmul.f32 %v6411_v41, %v1426_v32 }
 0x26d   : > { %5670 = vmatmul.mubr.f32.vlgmr.msra.gmra.mrb[0].mxu0 %v1440_v42 }
 0x340   : > { %v5671_v0 = vpop.f32.mrb[0].mxu0 }
 0x341   : > { %v6188_v2 = vadd.f32 %v5671_v0, %v5172_v40  ;;  %v1530_v3 = vpop.f32.mrb[1].mxu0 }
 0x342   : > { %v6190_v4 = vadd.f32 %v5172_v40, %v1530_v3 }
 0x343   : > { %v6189_v5 = vadd.f32 %v6188_v2, %v5192_v1 }
 0x344   : > { %v6191_v33 = vadd.f32 %v6190_v4, %v5192_v1 }
 0x345   : > { %v1548_v6 = vand.u32 2147483647, %v6189_v5  ;;  %v1542_v30 = vmax.f32 %v6189_v5, 0.0  ;;  %vm1544_vm3 = vcmp.ne.f32.partialorder %v6189_v5, %v6189_v5 }
 0x346   : > { %v1547_v7 = vand.u32 2147483647, %v6191_v33  ;;  %v1541_v34 = vmax.f32 %v6191_v33, 0.0  ;;  %vm1543_vm4 = vcmp.ne.f32.partialorder %v6191_v33, %v6191_v33 }
 0x347   : > { %v1550_v8 = vsub.f32 0.0, %v1548_v6 }
 0x348   : > { %v1549_v9 = vsub.f32 0.0, %v1547_v7 }
 0x349   : > { %v1553_v10 = vmul.f32 1.442695, %v1550_v8 }
 0x34a   : > { %v1551_v11 = vmul.f32 1.442695, %v1549_v9 }
 0x34b   : > { %6412 = vpow2.f32 %v1553_v10 }
 0x34c   : > { %6414 = vpow2.f32 %v1551_v11 }
 0x355   : > { %v6413_v12 = vpop.eup %6412 }
 0x356   : > { %v6415_v13 = vpop.eup %6414  ;;  %v1564_v14 = vadd.f32 1.0, %v6413_v12  ;;  %v1567_v18 = vmul.f32 -0.5, %v6413_v12  ;;  %v1570_v24 = vand.u32 2147483647, %v6413_v12 }
 0x357   : > { %v1555_v15 = vadd.f32 1.0, %v6415_v13  ;;  %v1558_v19 = vmul.f32 -0.5, %v6415_v13  ;;  %v1561_v21 = vand.u32 2147483647, %v6415_v13 }
 0x358   : > { %6416 = vlog2.f32 %v1564_v14  ;;  %v1568_v20 = vadd.f32 1.0, %v1567_v18  ;;  %vm1571_vm1 = vcmp.lt.f32.partialorder %v1570_v24, 0.0004427343 }
 0x359   : > { %6418 = vlog2.f32 %v1555_v15  ;;  %v1559_v23 = vadd.f32 1.0, %v1558_v19  ;;  %vm1562_vm2 = vcmp.lt.f32.partialorder %v1561_v21, 0.0004427343 }
 0x35a   : > { %v1569_v29 = vmul.f32 %v6413_v12, %v1568_v20 }
 0x35b   : > { %v1560_v32 = vmul.f32 %v6415_v13, %v1559_v23 }
 0x362   : > { %v6417_v25 = vpop.eup %6416 }
 0x363   : > { %v6419_v27 = vpop.eup %6418  ;;  %v1566_v28 = vmul.f32 0.6931472, %v6417_v25 }
 0x364   : > { %v1557_v31 = vmul.f32 0.6931472, %v6419_v27 }
 0x365   : > { %v1572_v35 = vsel %vm1571_vm1, %v1569_v29, %v1566_v28 }
 0x366   : > { %v1563_v36 = vsel %vm1562_vm2, %v1560_v32, %v1557_v31  ;;  %v1574_v37 = vadd.f32 %v1572_v35, %v1542_v30 }
 0x367   : > { %v1573_v39 = vadd.f32 %v1563_v36, %v1541_v34 }
 0x368   : > { %v1576_v16 = vsel %vm1544_vm3, %v6189_v5, %v1574_v37 }
 0x369   : > { %v1575_v17 = vsel %vm1543_vm4, %v6191_v33, %v1573_v39  ;;  %v5194_v42 = vadd.f32 -0.6931472, %v1576_v16 }
 0x36a   : > { %v5193_v41 = vadd.f32 -0.6931472, %v1575_v17 }
 0x36c   : > { %5704 = vmatprep.mubr.f32.mxu1 %v5193_v41 }
 0x36d   : > { %5705 = vmatmul.mubr.f32.vlgmr.msra.gmra.mrb[0].mxu1 %v5194_v42 }
 0x440   : > { %v5706_v26 = vpop.f32.mrb[0].mxu1 }
 0x441   : > { %1671 = vst [vmem:[#allocation3 + $0x8] sm:$0xff] %v5706_v26  ;;  %v1661_v38 = vpop.f32.mrb[1].mxu1 }
 0x442   : > { %1670 = vst [vmem:[#allocation3] sm:$0xff] %v1661_v38 }
 0x443 PF: > { %p5195_p12 = scmp.ne.s32.totalorder %s6716_s3, 0 }
 0x445   : > { %1676 = sbr.rel (%p5195_p12) target bundleno = 1933 (0x78d), region = 124 }
 0x44c   : > { %v3533_v43 = vld [vmem:[%s9507_s7] sm:$0xff]  ;;  %v3534_v44 = vld [vmem:[%s9507_s7 + $0x8] sm:$0xff]  ;;  %vm3542_vm5 = vcmask 130048   ;;  %v3519_v48 = vld [vmem:[%s7038_s26 + $0x10] sm:$0xff]  ;;  %s9685_s1 = sld [smem:[#allocation32_spill]]  ;;  %s9686_s23 = sshll.u32 %s6712_s27, 7 }
 0x44d   : > { %v3517_v45 = vld [vmem:[%s7038_s26] sm:$0xff]  ;;  %v6052_v46 = vpack.c.bf16 %v3534_v44, %v3533_v43  ;;  %v3518_v47 = vld [vmem:[%s7038_s26 + $0x8] sm:$0xff]  ;;  %v3520_v49 = vld [vmem:[%s7038_s26 + $0x18] sm:$0xff]  ;;  %s9256_s25 = scalar_lea.vmem [#allocation2], %s9686_s23 }
 0x44e   : > { %5711 = vmatprep.mubr.msk.f32.mxu0 %vm3542_vm5, %v3517_v45  ;;  %v3521_v51 = vld [vmem:[%s7038_s26 + $0x20] sm:$0xff]  ;;  %v3522_v52 = vld [vmem:[%s7038_s26 + $0x28] sm:$0xff]  ;;  %v3523_v50 = vld [vmem:[%s7038_s26 + $0x30] sm:$0xff]  ;;  %v9550_v45 = vmov 2102212464  }
 0x44f   : > { %6053 = vmatprep.subr.bf16.mxu0 %v6052_v46  ;;  %v3524_v53 = vld [vmem:[%s7038_s26 + $0x38] sm:$0xff]  ;;  %v3525_v54 = vld [vmem:[%s7038_s26 + $0x40] sm:$0xff]  ;;  %v3526_v55 = vld [vmem:[%s7038_s26 + $0x48] sm:$0xff] }
 0x450   : > { %6055 = vmatpush3.bf16.msra.mxu0 %v6052_v46  ;;  %v3527_v56 = vld [vmem:[%s7038_s26 + $0x50] sm:$0xff]  ;;  %v3528_v57 = vld [vmem:[%s7038_s26 + $0x58] sm:$0xff]  ;;  %v3529_v59 = vld [vmem:[%s7038_s26 + $0x60] sm:$0xff] }
 0x451   : > { %v3530_v60 = vld [vmem:[%s7038_s26 + $0x68] sm:$0xff]  ;;  %v3531_v61 = vld [vmem:[%s7038_s26 + $0x70] sm:$0xff]  ;;  %v3532_v22 = vld [vmem:[%s7038_s26 + $0x78] sm:$0xff] }
 0x452   : > { %v4040_v58 = vld [vmem:[%s9509_s9] sm:$0xff]  ;;  %v4041_v62 = vld [vmem:[%s9509_s9 + $0x8] sm:$0xff]  ;;  %v4042_v40 = vld [vmem:[%s9509_s9 + $0x10] sm:$0xff] }
 0x453   : > { %5712 = vmatmul.mubr.msk.f32.vlgmr.msra.gmra.mrb[0].mxu0 %vm3542_vm5, %v3518_v47  ;;  %v6056_v63 = vpack.c.bf16 %v4041_v62, %v4040_v58  ;;  %v4043_v0 = vld [vmem:[%s9509_s9 + $0x18] sm:$0xff]  ;;  %v4044_v2 = vld [vmem:[%s9509_s9 + $0x20] sm:$0xff]  ;;  %v4045_v3 = vld [vmem:[%s9509_s9 + $0x28] sm:$0xff] }
 0x454   : > { %5714 = vmatprep.mubr.msk.f32.mxu0 %vm3542_vm5, %v3519_v48  ;;  %v6060_v1 = vpack.c.bf16 %v4043_v0, %v4042_v40  ;;  %v6064_v4 = vpack.c.bf16 %v4045_v3, %v4044_v2  ;;  %v4046_v5 = vld [vmem:[%s9509_s9 + $0x30] sm:$0xff]  ;;  %v4047_v33 = vld [vmem:[%s9509_s9 + $0x38] sm:$0xff]  ;;  %v4048_v7 = vld [vmem:[%s9509_s9 + $0x40] sm:$0xff] }
 0x455   : > { %6057 = vmatprep.subr.bf16.mxu0 %v6056_v63  ;;  %6194 = vmatprep.subr.bf16.mxu1 %v6056_v63  ;;  %v6068_v6 = vpack.c.bf16 %v4047_v33, %v4046_v5  ;;  %v4049_v8 = vld [vmem:[%s9509_s9 + $0x48] sm:$0xff]  ;;  %v4050_v10 = vld [vmem:[%s9509_s9 + $0x50] sm:$0xff]  ;;  %v4051_v11 = vld [vmem:[%s9509_s9 + $0x58] sm:$0xff] }
 0x456   : > { %6059 = vmatpush3.bf16.msra.mxu0 %v6056_v63  ;;  %6202 = vmatpush3.bf16.msra.mxu1 %v6056_v63  ;;  %v6072_v9 = vpack.c.bf16 %v4049_v8, %v4048_v7  ;;  %v6076_v12 = vpack.c.bf16 %v4051_v11, %v4050_v10  ;;  %v4052_v13 = vld [vmem:[%s9509_s9 + $0x60] sm:$0xff]  ;;  %v4053_v14 = vld [vmem:[%s9509_s9 + $0x68] sm:$0xff]  ;;  %v4054_v18 = vld [vmem:[%s9509_s9 + $0x70] sm:$0xff]  ;;  %v9546_v63 = vmov 1326507024  }
 0x457   : > { %5715 = vmatmul.mubr.msk.f32.gmra.mrb[2].mxu0 %vm3542_vm5, %v3520_v49  ;;  %6061 = vmatprep.subr.bf16.mxu0 %v6060_v1  ;;  %v6080_v15 = vpack.c.bf16 %v4053_v14, %v4052_v13  ;;  %v4055_v19 = vld [vmem:[%s9509_s9 + $0x78] sm:$0xff]  ;;  %v7408_v23 = vld [vmem:[%s7033_s29 + $0x10] sm:$0xff]  ;;  %v7411_v24 = vld [vmem:[%s7033_s29] sm:$0xff]  ;;  %v9541_v49 = vmov 683565275  }
 0x458   : > { %5717 = vmatprep.mubr.msk.f32.mxu0 %vm3542_vm5, %v3521_v51  ;;  %6195 = vmatprep.subr.bf16.mxu1 %v6060_v1  ;;  %v6084_v20 = vpack.c.bf16 %v4055_v19, %v4054_v18  ;;  %v7414_v21 = vmul.f32 0.31415927, %v7408_v23  ;;  %v7417_v25 = vmul.f32 0.31415927, %v7411_v24  ;;  %v1680_v29 = vld [vmem:[%s7033_s29 + $0x18] sm:$0xff] }
 0x459   : > { %v7422_v32 = vmul.f32 0.31415927, %v1680_v29 }
 0x45a   : > { %6063 = vmatpush3.bf16.msra.mxu0 %v6060_v1  ;;  %6203 = vmatpush3.bf16.msra.mxu1 %v6060_v1  ;;  %v1918_v27 = vand.u32 2139095040, %v7414_v21  ;;  %v1712_v28 = vand.u32 2139095040, %v7417_v25  ;;  %v1915_v44 = vand.u32 2147483647, %v7414_v21  ;;  %v1709_v7 = vand.u32 2147483647, %v7417_v25 }
 0x45b   : > { %5718 = vmatmul.mubr.msk.f32.gmra.mrb[4].mxu0 %vm3542_vm5, %v3522_v52  ;;  %6065 = vmatprep.subr.bf16.mxu0 %v6064_v4  ;;  %v2021_v36 = vand.u32 2139095040, %v7422_v32  ;;  %v9539_v52 = vmov 2475754826  }
 0x45c   : > { %5720 = vmatprep.mubr.msk.f32.mxu0 %vm3542_vm5, %v3523_v50  ;;  %6196 = vmatprep.subr.bf16.mxu1 %v6064_v4  ;;  %v1919_v30 = vshrl.u32 %v1918_v27, 23  ;;  %v1713_v31 = vshrl.u32 %v1712_v28, 23  ;;  %v1922_v47 = vand.u32 8388607, %v1915_v44 }
 0x45d   : > { %v2022_v16 = vshrl.u32 %v2021_v36, 23 }
 0x45e   : > { %6067 = vmatpush3.bf16.msra.mxu0 %v6064_v4  ;;  %6204 = vmatpush3.bf16.msra.mxu1 %v6064_v4  ;;  %v5204_v34 = vadd.s32 4294967169, %v1919_v30  ;;  %v5196_v35 = vadd.s32 4294967169, %v1713_v31  ;;  %v1716_v31 = vand.u32 8388607, %v1709_v7 }
 0x45f   : > { %5721 = vmatmul.mubr.msk.f32.gmra.mrb[6].mxu0 %vm3542_vm5, %v3524_v53  ;;  %6069 = vmatprep.subr.bf16.mxu0 %v6068_v6  ;;  %v5208_v43 = vadd.s32 4294967169, %v2022_v16 }
 0x460   : > { %5723 = vmatprep.mubr.msk.f32.mxu0 %vm3542_vm5, %v3525_v54  ;;  %6197 = vmatprep.subr.bf16.mxu1 %v6068_v6  ;;  %v1925_v37 = vadd.s32 1, %v5204_v34  ;;  %v1719_v39 = vadd.s32 1, %v5196_v35  ;;  %v9552_v54 = vmov 2131351028  }
 0x461   : > { %v7440_v2 = vadd.s32 1, %v5208_v43 }
 0x462   : > { %6071 = vmatpush3.bf16.msra.mxu0 %v6068_v6  ;;  %6205 = vmatpush3.bf16.msra.mxu1 %v6068_v6  ;;  %vm1926_vm6 = vcmp.gt.s32.totalorder %v1925_v37, 0  ;;  %vm1720_vm7 = vcmp.gt.s32.totalorder %v1719_v39, 0 }
 0x463   : > { %5724 = vmatmul.mubr.msk.f32.gmra.mrb[8].mxu0 %vm3542_vm5, %v3526_v55  ;;  %6073 = vmatprep.subr.bf16.mxu0 %v6072_v9  ;;  %v1927_v17 = vsel %vm1926_vm6, %v1925_v37, 0  ;;  %v1721_v41 = vsel %vm1720_vm7, %v1719_v39, 0  ;;  %vm2029_vm1 = vcmp.gt.s32.totalorder %v7440_v2, 0 }
 0x464   : > { %5726 = vmatprep.mubr.msk.f32.mxu0 %vm3542_vm5, %v3527_v56  ;;  %6198 = vmatprep.subr.bf16.mxu1 %v6072_v9  ;;  %v1929_v42 = vand.u32 31, %v1927_v17  ;;  %v7425_v38 = vand.u32 31, %v1721_v41  ;;  %v1928_v48 = vshrl.u32 %v1927_v17, 5 }
 0x466   : > { %6075 = vmatpush3.bf16.msra.mxu0 %v6072_v9  ;;  %6206 = vmatpush3.bf16.msra.mxu1 %v6072_v9  ;;  %v1930_v26 = vsub.s32 32, %v1929_v42  ;;  %v1941_v46 = vshll.u32 %v9550_v45, %v1929_v42  ;;  %v1932_v51 = vshll.u32 %v9541_v49, %v1929_v42  ;;  %v1935_v53 = vshll.u32 %v9539_v52, %v1929_v42 }
 0x467   : > { %5727 = vmatmul.mubr.msk.f32.gmra.mrb[10].mxu0 %vm3542_vm5, %v3528_v57  ;;  %6077 = vmatprep.subr.bf16.mxu0 %v6076_v12  ;;  %v1938_v56 = vshll.u32 %v9552_v54, %v1929_v42  ;;  %v1923_v57 = vor.u32 8388608, %v1922_v47  ;;  %vm1947_vm8 = vcmp.lt.s32.totalorder %v1928_v48, 1  ;;  %vm1949_vm9 = vcmp.lt.s32.totalorder %v1928_v48, 3 }
 0x468   : > { %5729 = vmatprep.mubr.msk.f32.mxu0 %vm3542_vm5, %v3529_v59  ;;  %6199 = vmatprep.subr.bf16.mxu1 %v6076_v12  ;;  %v1933_v50 = vshrl.u32 %v9539_v52, %v1930_v26  ;;  %v1936_v55 = vshrl.u32 %v9552_v54, %v1930_v26  ;;  %v1939_v59 = vshrl.u32 %v9550_v45, %v1930_v26  ;;  %vm1948_vm10 = vcmp.lt.s32.totalorder %v1928_v48, 2 }
 0x469   : > { %v1945_v40 = vshrl.u32 %v9546_v63, %v1930_v26  ;;  %vm1950_vm11 = vcmp.lt.s32.totalorder %v1928_v48, 4  ;;  %v1963_v6 = vshll.u32 %v1923_v57, 8  ;;  %v1931_v8 = vshrl.u32 %v9541_v49, %v1930_v26 }
 0x46a   : > { %6079 = vmatpush3.bf16.msra.mxu0 %v6076_v12  ;;  %6207 = vmatpush3.bf16.msra.mxu1 %v6076_v12  ;;  %v1934_v58 = vor.u32 %v1933_v50, %v1932_v51  ;;  %v1937_v62 = vor.u32 %v1936_v55, %v1935_v53  ;;  %v1940_v0 = vor.u32 %v1939_v59, %v1938_v56  ;;  %v1724_v11 = vsub.s32 32, %v7425_v38 }
 0x46b   : > { %5730 = vmatmul.mubr.msk.f32.gmra.mrb[12].mxu0 %vm3542_vm5, %v3530_v60  ;;  %6081 = vmatprep.subr.bf16.mxu0 %v6080_v15  ;;  %v9548_v60 = vmov 920167782   ;;  %v1726_v27 = vshll.u32 %v9541_v49, %v7425_v38  ;;  %v1729_v39 = vshll.u32 %v9539_v52, %v7425_v38  ;;  %v1732_v17 = vshll.u32 %v9552_v54, %v7425_v38 }
 0x46c   : > { %5732 = vmatprep.mubr.msk.f32.mxu0 %vm3542_vm5, %v3531_v61  ;;  %6200 = vmatprep.subr.bf16.mxu1 %v6080_v15  ;;  %v1942_v61 = vshrl.u32 %v9548_v60, %v1930_v26  ;;  %v1955_v4 = vsel %vm1947_vm8, %v1934_v58, %v1937_v62  ;;  %v1959_v33 = vsel %vm1947_vm8, %v1937_v62, %v1940_v0  ;;  %v1952_v12 = vsel %vm1950_vm11, %v1940_v0, 2102212464 }
 0x46d   : > { %v1951_v18 = vsel %vm1947_vm8, %v1931_v8, %v1934_v58  ;;  %v1953_v19 = vsel %vm1949_vm9, %v1937_v62, %v1952_v12  ;;  %v1727_v37 = vshrl.u32 %v9539_v52, %v1724_v11  ;;  %v1730_v16 = vshrl.u32 %v9552_v54, %v1724_v11 }
 0x46e   : > { %6083 = vmatpush3.bf16.msra.mxu0 %v6080_v15  ;;  %6208 = vmatpush3.bf16.msra.mxu1 %v6080_v15  ;;  %v1943_v1 = vor.u32 %v1942_v61, %v1941_v46  ;;  %v7450_v15 = vshrl.u32 %v1721_v41, 5  ;;  %v1954_v28 = vsel %vm1948_vm10, %v1951_v18, %v1953_v19  ;;  %v1733_v41 = vshrl.u32 %v9550_v45, %v1724_v11 }
 0x46f   : > { %5733 = vmatmul.mubr.msk.f32.gmra.mrb[14].mxu0 %vm3542_vm5, %v3532_v22  ;;  %6085 = vmatprep.subr.bf16.mxu0 %v6084_v20  ;;  %v1944_v22 = vshll.u32 %v9548_v60, %v1929_v42  ;;  %v1970_v36 = vmul.u32 %v1963_v6, %v1954_v28  ;;  %v1728_v42 = vor.u32 %v1727_v37, %v1726_v27  ;;  %v1717_v53 = vor.u32 8388608, %v1716_v31 }
 0x470   : > { %6201 = vmatprep.subr.bf16.mxu1 %v6084_v20  ;;  %v1956_v5 = vsel %vm1950_vm11, %v1943_v1, 920167782  ;;  %v1735_v26 = vshll.u32 %v9550_v45, %v7425_v38  ;;  %v1736_v43 = vshrl.u32 %v9548_v60, %v1724_v11  ;;  %v1738_v46 = vshll.u32 %v9548_v60, %v7425_v38 }
 0x471   : > { %v1946_v3 = vor.u32 %v1945_v40, %v1944_v22  ;;  %v1957_v9 = vsel %vm1949_vm9, %v1940_v0, %v1956_v5  ;;  %v1731_v47 = vor.u32 %v1730_v16, %v1729_v39  ;;  %v1734_v48 = vor.u32 %v1733_v41, %v1732_v17  ;;  %v1678_v22 = vld [vmem:[%s7033_s29 + $0x8] sm:$0xff] }
 0x472   : > { %6087 = vmatpush3.bf16.msra.mxu0 %v6084_v20  ;;  %6209 = vmatpush3.bf16.msra.mxu1 %v6084_v20  ;;  %v1958_v13 = vsel %vm1948_vm10, %v1955_v4, %v1957_v9  ;;  %v1739_v51 = vshrl.u32 %v9546_v63, %v1724_v11  ;;  %v1737_v55 = vor.u32 %v1736_v43, %v1735_v26  ;;  %vm1741_vm13 = vcmp.lt.s32.totalorder %v7450_v15, 1 }
 0x473   : > { %v1960_v10 = vsel %vm1950_vm11, %v1946_v3, 1326507024  ;;  %v7463_v34 = vmul.u32.u64.low %v1963_v6, %v1958_v13  ;;  %v7464_v35 = vmul.u32.u64.high %v1963_v6, %v1958_v13, %v7463_v34  ;;  %vm1742_vm14 = vcmp.lt.s32.totalorder %v7450_v15, 2 }
 0x474   : > { %v1961_v14 = vsel %vm1949_vm9, %v1943_v1, %v1960_v10  ;;  %v1740_v56 = vor.u32 %v1739_v51, %v1738_v46  ;;  %vm1743_vm15 = vcmp.lt.s32.totalorder %v7450_v15, 3  ;;  %vm1744_vm0 = vcmp.lt.s32.totalorder %v7450_v15, 4 }
 0x475   : > { %v1962_v20 = vsel %vm1948_vm10, %v1959_v33, %v1961_v14  ;;  %v1973_v50 = vadd.s32 1, %v7464_v35  ;;  %v1725_v57 = vshrl.u32 %v9541_v49, %v1724_v11  ;;  %v1749_v59 = vsel %vm1741_vm13, %v1728_v42, %v1731_v47 }
 0x476   : > { %v7458_v29 = vmul.u32.u64.low %v1963_v6, %v1962_v20  ;;  %v7459_v30 = vmul.u32.u64.high %v1963_v6, %v1962_v20, %v7458_v29  ;;  %v1750_v61 = vsel %vm1744_vm0, %v1737_v55, 920167782  ;;  %v1753_v40 = vsel %vm1741_vm13, %v1731_v47, %v1734_v48 }
 0x477   : > { %v1751_v62 = vsel %vm1743_vm15, %v1734_v48, %v1750_v61  ;;  %v1746_v0 = vsel %vm1744_vm0, %v1734_v48, 2102212464  ;;  %v1754_v3 = vsel %vm1744_vm0, %v1740_v56, 1326507024  ;;  %v1757_v4 = vshll.u32 %v1717_v53, 8 }
 0x478   : > { %vm1972_vm12 = vc.u32 %v7459_v30, %v7463_v34  ;;  %v1752_v1 = vsel %vm1742_vm14, %v1749_v59, %v1751_v62  ;;  %v1755_v33 = vsel %vm1743_vm15, %v1737_v55, %v1754_v3  ;;  %v7501_v6 = vmul.f32 0.31415927, %v1678_v22 }
 0x479   : > { %v1974_v38 = vsel %vm1972_vm12, %v1973_v50, %v7464_v35  ;;  %v1745_v8 = vsel %vm1741_vm13, %v1725_v57, %v1728_v42  ;;  %v1756_v9 = vsel %vm1742_vm14, %v1753_v40, %v1755_v33  ;;  %v1747_v13 = vsel %vm1743_vm15, %v1731_v47, %v1746_v0 }
 0x47a   : > { %v1975_v58 = vadd.s32 %v1974_v38, %v1970_v36  ;;  %9593 = vst [vmem:[#allocation21_spill] sm:$0xff] %v7501_v6  ;;  %v7507_v10 = vmul.u32.u64.low %v1757_v4, %v1752_v1  ;;  %v7508_v11 = vmul.u32.u64.high %v1757_v4, %v1752_v1, %v7507_v10  ;;  %v6749_v19 = vmov 0  }
 0x47b   : > { %v7515_v14 = vmul.u32.u64.low %v1757_v4, %v1756_v9  ;;  %v7516_v18 = vmul.u32.u64.high %v1757_v4, %v1756_v9, %v7515_v14  ;;  %6421 = vset.pattern.permute.xlu1 %v6749_v19  ;;  %6420 = vset.pattern.permute.xlu0 %v6749_v19  ;;  %v1748_v27 = vsel %vm1742_vm14, %v1745_v8, %v1747_v13  ;;  %v2030_v28 = vsel %vm2029_vm1, %v7440_v2, 0 }
 0x47c   : > { %v1976_v5 = vadd.s32 536870912, %v1975_v58  ;;  %v1815_v29 = vand.u32 2139095040, %v7501_v6  ;;  %v1764_v35 = vmul.u32 %v1757_v4, %v1748_v27  ;;  %v1767_v36 = vadd.s32 1, %v7508_v11 }
 0x47d   : > { %vm1766_vm2 = vc.u32 %v7516_v18, %v7507_v10  ;;  %v2032_v37 = vand.u32 31, %v2030_v28  ;;  %v9545_v17 = vand.u32 2147483647, %v7422_v32  ;;  %v1971_v48 = vadd.s32 %v7463_v34, %v7459_v30 }
 0x47e   : > { %v7511_v12 = vshrl.u32 %v1976_v5, 30  ;;  %v1768_v16 = vsel %vm1766_vm2, %v1767_v36, %v7508_v11  ;;  %v1816_v41 = vshrl.u32 %v1815_v29, 23  ;;  %v7532_v50 = vshrl.u32 %v2030_v28, 5 }
 0x47f   : > { %v1769_v42 = vadd.s32 %v1768_v16, %v1764_v35  ;;  %v2033_v26 = vsub.s32 32, %v2032_v37  ;;  %v2025_v46 = vand.u32 8388607, %v9545_v17  ;;  %v2035_v53 = vshll.u32 %v9541_v49, %v2032_v37 }
 0x480   : > { %v1978_v20 = vshll.u32 %v7511_v12, 30  ;;  %v5200_v47 = vadd.s32 4294967169, %v1816_v41  ;;  %v2038_v38 = vshll.u32 %v9539_v52, %v2032_v37  ;;  %v2041_v59 = vshll.u32 %v9552_v54, %v2032_v37 }
 0x481   : > { %v1770_v43 = vadd.s32 536870912, %v1769_v42  ;;  %v2036_v56 = vshrl.u32 %v9539_v52, %v2033_v26  ;;  %v2039_v57 = vshrl.u32 %v9552_v54, %v2033_v26  ;;  %v2044_v61 = vshll.u32 %v9550_v45, %v2032_v37 }
 0x482   : > { %v1979_v31 = vsub.s32 %v1975_v58, %v1978_v20  ;;  %v2045_v30 = vshrl.u32 %v9548_v60, %v2033_v26  ;;  %v2042_v58 = vshrl.u32 %v9550_v45, %v2033_v26  ;;  %v2047_v62 = vshll.u32 %v9548_v60, %v2032_v37 }
 0x483   : > { %v7535_v55 = vshrl.u32 %v1770_v43, 30  ;;  %v2048_v3 = vshrl.u32 %v9546_v63, %v2033_v26  ;;  %v2037_v5 = vor.u32 %v2036_v56, %v2035_v53  ;;  %v2040_v33 = vor.u32 %v2039_v57, %v2038_v38 }
 0x484   : > { %v1981_v39 = vsub.s32 0, %v1979_v31  ;;  %v7549_v8 = vadd.s32 1, %v5200_v47  ;;  %v2046_v13 = vor.u32 %v2045_v30, %v2044_v61  ;;  %vm2050_vm4 = vcmp.lt.s32.totalorder %v7532_v50, 1 }
 0x485   : > { %v1772_v22 = vshll.u32 %v7535_v55, 30  ;;  %v2026_v19 = vor.u32 8388608, %v2025_v46  ;;  %v2043_v20 = vor.u32 %v2042_v58, %v2041_v59  ;;  %vm2053_vm5 = vcmp.lt.s32.totalorder %v7532_v50, 4 }
 0x486   : > { %v5205_v15 = vmin.u32 %v1981_v39, %v1979_v31  ;;  %v2049_v29 = vor.u32 %v2048_v3, %v2047_v62  ;;  %vm2052_vm6 = vcmp.lt.s32.totalorder %v7532_v50, 3  ;;  %v2034_v35 = vshrl.u32 %v9541_v49, %v2033_v26 }
 0x487   : > { %v7547_v4 = vsub.s32 %v1769_v42, %v1772_v22  ;;  %vm2051_vm7 = vcmp.lt.s32.totalorder %v7532_v50, 2  ;;  %v2058_v36 = vsel %vm2050_vm4, %v2037_v5, %v2040_v33  ;;  %v2055_v16 = vsel %vm2053_vm5, %v2043_v20, 2102212464 }
 0x488   : > { %v1983_v2 = vclz %v5205_v15  ;;  %v2059_v41 = vsel %vm2053_vm5, %v2046_v13, 920167782  ;;  %v2001_v15 = vsub.s32 4, %v7511_v12  ;;  %v2062_v26 = vsel %vm2050_vm4, %v2040_v33, %v2043_v20 }
 0x489   : > { %v1775_v14 = vsub.s32 0, %v7547_v4  ;;  %v2063_v47 = vsel %vm2053_vm5, %v2049_v29, 1326507024  ;;  %v2054_v53 = vsel %vm2050_vm4, %v2034_v35, %v2037_v5  ;;  %v2056_v56 = vsel %vm2052_vm6, %v2040_v33, %v2055_v16 }
 0x48a   : > { %v5206_v51 = vadd.s32 4294967294, %v1983_v2  ;;  %v2060_v2 = vsel %vm2052_vm6, %v2043_v20, %v2059_v41  ;;  %v2064_v38 = vsel %vm2052_vm6, %v2046_v13, %v2063_v47  ;;  %vm1917_vm9 = vcmp.lt.s32.totalorder %v7414_v21, 0 }
 0x48b   : > { %v2061_v46 = vsel %vm2051_vm7, %v2058_v36, %v2060_v2  ;;  %v2065_v59 = vsel %vm2051_vm7, %v2062_v26, %v2064_v38  ;;  %vm7598_vm10 = vcmp.le.f32.partialorder %v1915_v44, 0.7853982  ;;  %vm1823_vm11 = vcmp.gt.s32.totalorder %v7549_v8, 0 }
 0x48c   : > { %vm5207_vm3 = vcmp.lt.s32.totalorder %v5206_v51, 0  ;;  %vm3391_vm12 = vcmp.le.f32.partialorder %v7408_v23, 10.0  ;;  %vm3455_vm13 = vcmp.ge.f32.partialorder %v7408_v23, 0.0  ;;  %v1795_v13 = vsub.s32 4, %v7535_v55 }
 0x48d   : > { %v1986_v34 = vsel %vm5207_vm3, 0, %v5206_v51  ;;  %vm7627_vm15 = vcmp.le.f32.partialorder %v1709_v7, 0.7853982  ;;  %vm1711_vm0 = vcmp.lt.s32.totalorder %v7417_v25, 0  ;;  %vm3389_vm1 = vcmp.le.f32.partialorder %v7411_v24, 10.0 }
 0x48e   : > { %v1987_v40 = vsub.s32 32, %v1986_v34  ;;  %v1988_v0 = vshll.u32 %v1979_v31, %v1986_v34  ;;  %v1991_v1 = vsub.s32 4294967266, %v1986_v34  ;;  %v5197_v31 = vmin.u32 %v1775_v14, %v7547_v4 }
 0x48f   : > { %vm3453_vm2 = vcmp.ge.f32.partialorder %v7411_v24, 0.0  ;;  %vm2007_vm6 = vweird.f32 %v7414_v21 }
 0x490   : > { %v1989_v9 = vshrl.u32 %v1971_v48, %v1987_v40  ;;  %v1992_v11 = vadd.s32 127, %v1991_v1  ;;  %v1777_v42 = vclz %v5197_v31  ;;  %v2066_v48 = vshll.u32 %v2026_v19, 8  ;;  %v7618_v19 = vld [vmem:[%s9508_s8] ss:$0 sm:$0xff] }
 0x491   : > { %v2057_v40 = vsel %vm2051_vm7, %v2054_v53, %v2056_v56  ;;  %v1765_v1 = vadd.s32 %v7507_v10, %v7516_v18 }
 0x492   : > { %v1990_v27 = vor.u32 %v1989_v9, %v1988_v0  ;;  %v1993_v28 = vshll.u32 %v1992_v11, 23  ;;  %v5198_v51 = vadd.s32 4294967294, %v1777_v42  ;;  %v2002_v0 = vsel %vm1917_vm9, %v2001_v15, %v7511_v12 }
 0x493   : > { %v7581_v61 = vmul.u32.u64.low %v2066_v48, %v2061_v46  ;;  %v7582_v30 = vmul.u32.u64.high %v2066_v48, %v2061_v46, %v7581_v61  ;;  %v7585_v34 = vmul.u32.u64.low %v2066_v48, %v2065_v59  ;;  %v7586_v22 = vmul.u32.u64.high %v2066_v48, %v2065_v59, %v7585_v34 }
 0x494   : > { %v1994_v37 = vor.u32 4788187, %v1993_v28  ;;  %v1997_v39 = vcvt.s32.f32 %v1990_v27  ;;  %vm5199_vm8 = vcmp.lt.s32.totalorder %v5198_v51, 0  ;;  %v2073_v11 = vmul.u32 %v2066_v48, %v2057_v40 }
 0x495   : > { %v1780_v62 = vsel %vm5199_vm8, 0, %v5198_v51  ;;  %v2076_v9 = vadd.s32 1, %v7582_v30  ;;  %v2004_v10 = vsel %vm7598_vm10, 0, %v2002_v0  ;;  %vm2075_vm14 = vc.u32 %v7586_v22, %v7581_v61 }
 0x496   : > { %v1995_v43 = vand.u32 2147483647, %v1994_v37  ;;  %v1781_v3 = vsub.s32 32, %v1780_v62  ;;  %v1785_v5 = vsub.s32 4294967266, %v1780_v62  ;;  %v1782_v44 = vshll.u32 %v7547_v4, %v1780_v62 }
 0x497   : > { %v2077_v14 = vsel %vm2075_vm14, %v2076_v9, %v7582_v30  ;;  %v9538_v27 = vand.u32 2147483647, %v7501_v6  ;;  %v1824_v28 = vsel %vm1823_vm11, %v7549_v8, 0  ;;  %v7634_v36 = vand.u32 3, %v2004_v10 }
 0x498   : > { %v1998_v57 = vmul.f32 %v1997_v39, %v1995_v43  ;;  %v1786_v50 = vadd.s32 127, %v1785_v5  ;;  %v1783_v18 = vshrl.u32 %v1765_v1, %v1781_v3  ;;  %v7632_v31 = vadd.s32 %v2077_v14, %v2073_v11 }
 0x499   : > { %v9543_v37 = vmov 0.0   ;;  %v1796_v15 = vsel %vm1711_vm0, %v1795_v13, %v7535_v55  ;;  %v7657_v2 = vand.u32 31, %v1824_v28  ;;  %v7669_v51 = vand.u32 8388607, %v9538_v27 }
 0x49a   : > { %v1999_v58 = vxor.u32 2147483648, %v1998_v57  ;;  %v1787_v20 = vshll.u32 %v1786_v50, 23  ;;  %v7639_v8 = vsel %vm3391_vm12, 1.0, %v9543_v37  ;;  %v7644_v7 = vsel %vm3455_vm13, 1.0, %v9543_v37 }
 0x49b   : > { %v1784_v41 = vor.u32 %v1783_v18, %v1782_v44  ;;  %v7661_v43 = vsel %vm3389_vm1, 1.0, %v9543_v37  ;;  %v2079_v46 = vadd.s32 536870912, %v7632_v31  ;;  %v1798_v48 = vsel %vm7627_vm15, 0, %v1796_v15  ;;  %9599 = vst [vmem:[#allocation23_spill] sm:$0xff] %v7669_v51 }
 0x49c   : > { %v2000_v12 = vsel %vm1917_vm9, %v1999_v58, %v1998_v57  ;;  %v1788_v23 = vor.u32 4788187, %v1787_v20  ;;  %9598 = vst [vmem:[#allocation22_spill] sm:$0xff] %v7661_v43  ;;  %v7677_v59 = vsel %vm3453_vm2, 1.0, %v9543_v37  ;;  %v7683_v62 = vsub.s32 32, %v7657_v2 }
 0x49d   : > { %v2003_v29 = vsel %vm7598_vm10, %v7414_v21, %v2000_v12  ;;  %v1791_v57 = vcvt.s32.f32 %v1784_v41  ;;  %9600 = vst [vmem:[#allocation24_spill] sm:$0xff] %v7677_v59  ;;  %v7686_v1 = vand.u32 3, %v1798_v48  ;;  %v7688_v3 = vshrl.u32 %v2079_v46, 30 }
 0x49e   : > { %6422 = vcosq.f32 %v2003_v29  ;;  %v1789_v58 = vand.u32 2147483647, %v1788_v23  ;;  %v7693_v9 = vadd.s32 %v7581_v61, %v7586_v22  ;;  %vm2010_vm3 = vcmp.eq.s32.totalorder %v7634_v36, 0 }
 0x49f   : > { %6424 = vsinq.f32 %v2003_v29  ;;  %9601 = vst [vmem:[#allocation25_spill] sm:$0xff] %v7688_v3  ;;  %vm2013_vm4 = vcmp.eq.s32.totalorder %v7634_v36, 2  ;;  %v7701_v10 = vshrl.u32 %v1824_v28, 5  ;;  %v1829_v44 = vshll.u32 %v9541_v49, %v7657_v2 }
 0x4a0   : > { %v7708_v22 = vmul.f32 %v1791_v57, %v1789_v58  ;;  %v1830_v13 = vshrl.u32 %v9539_v52, %v7683_v62  ;;  %v2081_v29 = vshll.u32 %v7688_v3, 30  ;;  %v7720_v41 = vshll.u32 %v9539_v52, %v7657_v2 }
 0x4a1   : > { %v7724_v15 = vshll.u32 %v9552_v54, %v7657_v2  ;;  %v7728_v23 = vshll.u32 %v9550_v45, %v7657_v2  ;;  %vm2009_vm5 = vcmp.lt.s32.totalorder %v7634_v36, 2 }
 0x4a8   : > { %v6423_v28 = vpop.eup %6422 }
 0x526   : > { %v5713_v35 = vpop.f32.mrb[0].mxu0 }
 0x527   : > { %v7648_v39 = vadd.f32 %v5713_v35, %v7618_v19  ;;  %v3657_v16 = vpop.f32.mrb[1].mxu0 }
 0x528   : > { %v7655_v42 = vadd.f32 %v7618_v19, %v3657_v16  ;;  %v7716_v16 = vshrl.u32 %v9541_v49, %v7683_v62 }
 0x529   : > { %v3785_v26 = vand.u32 2147483647, %v7648_v39  ;;  %vm3753_vm8 = vcmp.ne.f32.partialorder %v7648_v39, %v7648_v39 }
 0x52a   : > { %v3784_v47 = vand.u32 2147483647, %v7655_v42  ;;  %v5716_v55 = vpop.f32.mrb[2].mxu0  ;;  %vm3752_vm9 = vcmp.ne.f32.partialorder %v7655_v42, %v7655_v42 }
 0x52b   : > { %v3801_v53 = vsub.f32 0.0, %v3785_v26  ;;  %v7672_v56 = vadd.f32 %v5716_v55, %v7618_v19  ;;  %v3667_v38 = vpop.f32.mrb[3].mxu0  ;;  %v6425_v26 = vpop.eup %6424 }
 0x52c   : > { %v3800_v30 = vsub.f32 0.0, %v3784_v47  ;;  %v7680_v34 = vadd.f32 %v7618_v19, %v3667_v38 }
 0x52d   : > { %v3818_v40 = vmul.f32 1.442695, %v3801_v53  ;;  %v3787_v0 = vand.u32 2147483647, %v7672_v56  ;;  %vm3755_vm12 = vcmp.ne.f32.partialorder %v7672_v56, %v7672_v56 }
 0x52e   : > { %v3816_v5 = vmul.f32 1.442695, %v3800_v30  ;;  %v3786_v24 = vand.u32 2147483647, %v7680_v34  ;;  %v5719_v33 = vpop.f32.mrb[4].mxu0  ;;  %vm3754_vm11 = vcmp.ne.f32.partialorder %v7680_v34, %v7680_v34 }
 0x52f   : > { %6426 = vpow2.f32 %v3818_v40  ;;  %v7697_v11 = vadd.f32 %v5719_v33, %v7618_v19  ;;  %v3677_v12 = vpop.f32.mrb[5].mxu0  ;;  %v3803_v18 = vsub.f32 0.0, %v3787_v0 }
 0x530   : > { %v7706_v61 = vadd.f32 %v7618_v19, %v3677_v12  ;;  %6428 = vpow2.f32 %v3816_v5  ;;  %v3802_v14 = vsub.f32 0.0, %v3786_v24  ;;  %v7743_v5 = vsub.s32 %v7632_v31, %v2081_v29 }
 0x531   : > { %v3789_v20 = vand.u32 2147483647, %v7697_v11  ;;  %v3822_v57 = vmul.f32 1.442695, %v3803_v18  ;;  %v7745_v24 = vor.u32 %v1830_v13, %v1829_v44  ;;  %v2011_v18 = vxor.u32 2147483648, %v6425_v26 }
 0x532   : > { %v5722_v35 = vpop.f32.mrb[6].mxu0  ;;  %v3788_v55 = vand.u32 2147483647, %v7706_v61  ;;  %v3820_v40 = vmul.f32 1.442695, %v3802_v14  ;;  %vm3756_vm2 = vcmp.ne.f32.partialorder %v7706_v61, %v7706_v61 }
 0x533   : > { %v3805_v47 = vsub.f32 0.0, %v3789_v20  ;;  %v7733_v48 = vadd.f32 %v5722_v35, %v7618_v19  ;;  %v3687_v53 = vpop.f32.mrb[7].mxu0  ;;  %v2014_v35 = vxor.u32 2147483648, %v6423_v28  ;;  %6430 = vpow2.f32 %v3822_v57 }
 0x534   : > { %v7738_v30 = vadd.f32 %v7618_v19, %v3687_v53  ;;  %v3804_v14 = vsub.f32 0.0, %v3788_v55  ;;  %6432 = vpow2.f32 %v3820_v40 }
 0x535   : > { %v3791_v0 = vand.u32 2147483647, %v7733_v48  ;;  %v3826_v27 = vmul.f32 1.442695, %v3805_v47  ;;  %v2015_v57 = vsel %vm2013_vm4, %v2014_v35, %v6425_v26  ;;  %vm3757_vm4 = vcmp.ne.f32.partialorder %v7697_v11, %v7697_v11 }
 0x536   : > { %v3790_v12 = vand.u32 2147483647, %v7738_v30  ;;  %v5725_v20 = vpop.f32.mrb[8].mxu0  ;;  %v3824_v60 = vmul.f32 1.442695, %v3804_v14 }
 0x537   : > { %v7752_v52 = vadd.f32 %v5725_v20, %v7618_v19  ;;  %v3697_v31 = vpop.f32.mrb[9].mxu0  ;;  %v3807_v37 = vsub.f32 0.0, %v3791_v0  ;;  %v2012_v20 = vsel %vm2010_vm3, %v6423_v28, %v2011_v18  ;;  %6434 = vpow2.f32 %v3826_v27 }
 0x538   : > { %v7757_v29 = vadd.f32 %v7618_v19, %v3697_v31  ;;  %v3806_v50 = vsub.f32 0.0, %v3790_v12  ;;  %v2016_v0 = vsel %vm2009_vm5, %v2012_v20, %v2015_v57  ;;  %vm3758_vm5 = vcmp.ne.f32.partialorder %v7738_v30, %v7738_v30 }
 0x539   : > { %v6427_v49 = vpop.eup %6426  ;;  %v3793_v17 = vand.u32 2147483647, %v7752_v52  ;;  %v3830_v58 = vmul.f32 1.442695, %v3807_v37 }
 0x53a   : > { %v3857_v47 = vadd.f32 1.0, %v6427_v49  ;;  %v3860_v55 = vmul.f32 -0.5, %v6427_v49  ;;  %v7764_v63 = vpop.eup %6428  ;;  %v3792_v45 = vand.u32 2147483647, %v7757_v29  ;;  %v5728_v40 = vpop.f32.mrb[10].mxu0 }
 0x53b   : > { %v3809_v31 = vsub.f32 0.0, %v3793_v17  ;;  %v7769_v12 = vadd.f32 %v5728_v40, %v7618_v19  ;;  %v3707_v54 = vpop.f32.mrb[11].mxu0  ;;  %v3863_v18 = vand.u32 2147483647, %v6427_v49  ;;  %v3828_v26 = vmul.f32 1.442695, %v3806_v50 }
 0x53c   : > { %6436 = vlog2.f32 %v3857_v47  ;;  %v7773_v35 = vadd.f32 %v7618_v19, %v3707_v54  ;;  %v3861_v27 = vadd.f32 1.0, %v3860_v55  ;;  %v3848_v47 = vadd.f32 1.0, %v7764_v63 }
 0x53d   : > { %v3795_v17 = vand.u32 2147483647, %v7769_v12  ;;  %6438 = vpow2.f32 %v3824_v60  ;;  %v3834_v40 = vmul.f32 1.442695, %v3809_v31  ;;  %v3808_v44 = vsub.f32 0.0, %v3792_v45  ;;  %v7792_v45 = vpop.eup %6430 }
 0x53e   : > { %v5731_v14 = vpop.f32.mrb[12].mxu0  ;;  %v3794_v28 = vand.u32 2147483647, %v7773_v35  ;;  %6440 = vlog2.f32 %v3848_v47  ;;  %v7790_v60 = vsel %vm2007_vm6, nan, %v2016_v0  ;;  %vm7794_vm7 = vcmp.lt.f32.partialorder %v3863_v18, 0.0004427343 }
 0x53f   : > { %v3717_v13 = vpop.f32.mrb[13].mxu0  ;;  %v3811_v37 = vsub.f32 0.0, %v3795_v17  ;;  %v7781_v50 = vadd.f32 %v5731_v14, %v7618_v19  ;;  %6442 = vpow2.f32 %v3830_v58  ;;  %v3851_v57 = vmul.f32 -0.5, %v7764_v63  ;;  %v7800_v58 = vpop.eup %6432 }
 0x540   : > { %v7784_v54 = vadd.f32 %v7618_v19, %v3717_v13  ;;  %6444 = vpow2.f32 %v3828_v26  ;;  %v3862_v31 = vmul.f32 %v6427_v49, %v3861_v27  ;;  %v3832_v17 = vmul.f32 1.442695, %v3808_v44 }
 0x541   : > { %v3797_v13 = vand.u32 2147483647, %v7781_v50  ;;  %6446 = vpow2.f32 %v3834_v40  ;;  %v3838_v47 = vmul.f32 1.442695, %v3811_v37  ;;  %v3810_v18 = vsub.f32 0.0, %v3794_v28  ;;  %v7807_v36 = vpop.eup %6434 }
 0x542   : > { %v3796_v21 = vand.u32 2147483647, %v7784_v54  ;;  %v5734_v0 = vpop.f32.mrb[14].mxu0  ;;  %v3854_v44 = vand.u32 2147483647, %v7764_v63  ;;  %v3852_v37 = vadd.f32 1.0, %v3851_v57  ;;  %6448 = vpow2.f32 %v3832_v17 }
 0x543   : > { %v7805_v55 = vadd.f32 %v5734_v0, %v7618_v19  ;;  %v3727_v26 = vpop.f32.mrb[15].mxu0  ;;  %v3813_v53 = vsub.f32 0.0, %v3797_v13  ;;  %v3866_v0 = vadd.f32 1.0, %v7800_v58  ;;  %6450 = vpow2.f32 %v3838_v47 }
 0x544   : > { %v7811_v49 = vadd.f32 %v7618_v19, %v3727_v26  ;;  %v3812_v40 = vsub.f32 0.0, %v3796_v21  ;;  %v3836_v19 = vmul.f32 1.442695, %v3810_v18  ;;  %v3869_v17 = vmul.f32 -0.5, %v7800_v58 }
 0x545   : > { %v3799_v28 = vand.u32 2147483647, %v7805_v55  ;;  %v3842_v46 = vmul.f32 1.442695, %v3813_v53  ;;  %v3853_v6 = vmul.f32 %v7764_v63, %v3852_v37  ;;  %vm7830_vm10 = vcmp.lt.f32.partialorder %v3854_v44, 0.0004427343 }
 0x546   : > { %v6437_v27 = vpop.eup %6436  ;;  %v3798_v38 = vand.u32 2147483647, %v7811_v49  ;;  %v3840_v13 = vmul.f32 1.442695, %v3812_v40  ;;  %6452 = vlog2.f32 %v3866_v0  ;;  %v3878_v63 = vmul.f32 -0.5, %v7792_v45 }
 0x547   : > { %v3859_v14 = vmul.f32 0.6931472, %v6437_v27  ;;  %v3815_v26 = vsub.f32 0.0, %v3799_v28  ;;  %v7823_v21 = vpop.eup %6438  ;;  %v3875_v27 = vadd.f32 1.0, %v7792_v45  ;;  %v9606_v28 = vmax.f32 %v7648_v39, 0.0 }
 0x548   : > { %v6441_v33 = vpop.eup %6440  ;;  %v3870_v37 = vadd.f32 1.0, %v3869_v17  ;;  %v3884_v0 = vadd.f32 1.0, %v7823_v21  ;;  %v3879_v17 = vadd.f32 1.0, %v3878_v63  ;;  %v9616_v40 = vmax.f32 %v7680_v34, 0.0 }
 0x549   : > { %v3865_v57 = vsel %vm7794_vm7, %v3862_v31, %v3859_v14  ;;  %v7834_v18 = vpop.eup %6442  ;;  %v3814_v31 = vsub.f32 0.0, %v3798_v38  ;;  %v3850_v53 = vmul.f32 0.6931472, %v6441_v33  ;;  %6454 = vlog2.f32 %v3875_v27 }
 0x54a   : > { %v3993_v20 = vadd.f32 %v3865_v57, %v9606_v28  ;;  %v7838_v14 = vpop.eup %6444  ;;  %6456 = vpow2.f32 %v3836_v19  ;;  %v3846_v59 = vmul.f32 1.442695, %v3815_v26  ;;  %v9607_v38 = vmax.f32 %v7655_v42, 0.0 }
 0x54b   : > { %6458 = vpow2.f32 %v3842_v46  ;;  %v3856_v44 = vsel %vm7830_vm10, %v3853_v6, %v3850_v53  ;;  %v7845_v43 = vpop.eup %6446  ;;  %v3872_v19 = vand.u32 2147483647, %v7800_v58  ;;  %v3887_v57 = vmul.f32 -0.5, %v7823_v21 }
 0x54c   : > { %6460 = vpow2.f32 %v3840_v13  ;;  %v3992_v33 = vadd.f32 %v3856_v44, %v9607_v38  ;;  %v4009_v46 = vsel %vm3753_vm8, %v7648_v39, %v3993_v20  ;;  %v3844_v26 = vmul.f32 1.442695, %v3814_v31  ;;  %v7861_v47 = vpop.eup %6448 }
 0x54d   : > { %6462 = vlog2.f32 %v3884_v0  ;;  %v3893_v6 = vadd.f32 1.0, %v7807_v36  ;;  %v3881_v27 = vand.u32 2147483647, %v7792_v45  ;;  %v3871_v39 = vmul.f32 %v7800_v58, %v3870_v37 }
 0x54e   : > { %6464 = vpow2.f32 %v3846_v59  ;;  %v4008_v13 = vsel %vm3752_vm9, %v7655_v42, %v3992_v33  ;;  %v3890_v20 = vand.u32 2147483647, %v7823_v21  ;;  %v7867_v59 = vpop.eup %6450  ;;  %v5310_v31 = vadd.f32 -0.6931472, %v4009_v46 }
 0x54f   : > { %v5309_v28 = vadd.f32 -0.6931472, %v4008_v13  ;;  %6466 = vlog2.f32 %v3893_v6  ;;  %v3888_v42 = vadd.f32 1.0, %v3887_v57  ;;  %v3896_v53 = vmul.f32 -0.5, %v7807_v36 }
 0x550   : > { %v3902_v63 = vadd.f32 1.0, %v7838_v14  ;;  %6468 = vpow2.f32 %v3844_v26  ;;  %v3899_v44 = vand.u32 2147483647, %v7807_v36  ;;  %v3905_v58 = vmul.f32 -0.5, %v7838_v14  ;;  %v6453_v0 = vpop.eup %6452 }
 0x551   : > { %5767 = vmatprep.mubr.f32.mxu0 %v5309_v28  ;;  %v3911_v37 = vadd.f32 1.0, %v7834_v18  ;;  %vm7876_vm13 = vcmp.lt.f32.partialorder %v3872_v19, 0.0004427343  ;;  %v3880_v33 = vmul.f32 %v7792_v45, %v3879_v17  ;;  %vm7881_vm14 = vcmp.lt.f32.partialorder %v3881_v27, 0.0004427343 }
 0x552   : > { %5768 = vmatmul.mubr.f32.vlgmr.msra.gmra.mrb[16].mxu0 %v5310_v31  ;;  %6470 = vlog2.f32 %v3902_v63  ;;  %v3868_v26 = vmul.f32 0.6931472, %v6453_v0  ;;  %vm7885_vm1 = vcmp.lt.f32.partialorder %v3890_v20, 0.0004427343  ;;  %v3914_v13 = vmul.f32 -0.5, %v7834_v18 }
 0x553   : > { %v6455_v46 = vpop.eup %6454  ;;  %6472 = vlog2.f32 %v3911_v37  ;;  %v3889_v45 = vmul.f32 %v7823_v21, %v3888_v42  ;;  %v3897_v17 = vadd.f32 1.0, %v3896_v53  ;;  %v3920_v27 = vadd.f32 1.0, %v7861_v47 }
 0x554   : > { %v7890_v19 = vpop.eup %6456  ;;  %v3877_v28 = vmul.f32 0.6931472, %v6455_v46  ;;  %v3874_v20 = vsel %vm7876_vm13, %v3871_v39, %v3868_v26  ;;  %vm7900_vm3 = vcmp.lt.f32.partialorder %v3899_v44, 0.0004427343  ;;  %v3906_v37 = vadd.f32 1.0, %v3905_v58 }
 0x555   : > { %v7896_v31 = vpop.eup %6458  ;;  %v3908_v0 = vand.u32 2147483647, %v7838_v14  ;;  %v3994_v21 = vadd.f32 %v3874_v20, %v9616_v40  ;;  %6474 = vlog2.f32 %v3920_v27  ;;  %v3929_v39 = vadd.f32 1.0, %v7845_v43 }
 0x556   : > { %v7905_v46 = vpop.eup %6460  ;;  %v3883_v42 = vsel %vm7881_vm14, %v3880_v33, %v3877_v28  ;;  %v9617_v44 = vmax.f32 %v7672_v56, 0.0  ;;  %v3915_v38 = vadd.f32 1.0, %v3914_v13  ;;  %v3917_v26 = vand.u32 2147483647, %v7834_v18 }
 0x557   : > { %v6463_v53 = vpop.eup %6462  ;;  %v3923_v3 = vmul.f32 -0.5, %v7861_v47  ;;  %v4010_v40 = vsel %vm3754_vm11, %v7680_v34, %v3994_v21  ;;  %6476 = vlog2.f32 %v3929_v39  ;;  %v3932_v57 = vmul.f32 -0.5, %v7845_v43 }
 0x558   : > { %v3995_v58 = vadd.f32 %v3883_v42, %v9617_v44  ;;  %v7918_v51 = vpop.eup %6464  ;;  %v3886_v33 = vmul.f32 0.6931472, %v6463_v53  ;;  %v5311_v27 = vadd.f32 -0.6931472, %v4010_v40  ;;  %v3898_v20 = vmul.f32 %v7807_v36, %v3897_v17 }
 0x559   : > { %v6467_v28 = vpop.eup %6466  ;;  %vm7932_vm6 = vcmp.lt.f32.partialorder %v3908_v0, 0.0004427343  ;;  %v3907_v53 = vmul.f32 %v7838_v14, %v3906_v37  ;;  %vm3759_vm7 = vcmp.ne.f32.partialorder %v7733_v48, %v7733_v48  ;;  %v9620_v36 = vmax.f32 %v7706_v61, 0.0 }
 0x55a   : > { %v4011_v13 = vsel %vm3755_vm12, %v7672_v56, %v3995_v58  ;;  %v3892_v21 = vsel %vm7885_vm1, %v3889_v45, %v3886_v33  ;;  %v3895_v39 = vmul.f32 0.6931472, %v6467_v28  ;;  %v7941_v56 = vpop.eup %6468  ;;  %5770 = vmatprep.mubr.f32.mxu0 %v5311_v27  ;;  %vm7945_vm8 = vcmp.lt.f32.partialorder %v3917_v26, 0.0004427343 }
 0x55b   : > { %v5312_v34 = vadd.f32 -0.6931472, %v4011_v13  ;;  %v3996_v17 = vadd.f32 %v3892_v21, %v9620_v36  ;;  %v3926_v44 = vand.u32 2147483647, %v7861_v47  ;;  %v3938_v6 = vadd.f32 1.0, %v7890_v19 }
 0x55c   : > { %v6471_v45 = vpop.eup %6470  ;;  %v3901_v14 = vsel %vm7900_vm3, %v3898_v20, %v3895_v39  ;;  %v3916_v37 = vmul.f32 %v7834_v18, %v3915_v38  ;;  %v3924_v58 = vadd.f32 1.0, %v3923_v3  ;;  %v3933_v40 = vadd.f32 1.0, %v3932_v57 }
 0x55d   : > { %5771 = vmatmul.mubr.f32.gmra.mrb[18].mxu0 %v5312_v34  ;;  %v6473_v33 = vpop.eup %6472  ;;  %v4012_v26 = vsel %vm3756_vm2, %v7706_v61, %v3996_v17  ;;  %v9623_v28 = vmax.f32 %v7697_v11, 0.0  ;;  %v3904_v13 = vmul.f32 0.6931472, %v6471_v45  ;;  %vm3760_vm9 = vcmp.ne.f32.partialorder %v7757_v29, %v7757_v29 }
 0x55e   : > { %6478 = vlog2.f32 %v3938_v6  ;;  %v5313_v63 = vadd.f32 -0.6931472, %v4012_v26  ;;  %v3913_v20 = vmul.f32 0.6931472, %v6473_v33  ;;  %v3941_v18 = vmul.f32 -0.5, %v7890_v19 }
 0x55f   : > { %v3997_v27 = vadd.f32 %v3901_v14, %v9623_v28  ;;  %v3947_v3 = vadd.f32 1.0, %v7867_v59  ;;  %v3910_v61 = vsel %vm7932_vm6, %v3907_v53, %v3904_v13  ;;  %vm7970_vm10 = vcmp.lt.f32.partialorder %v3926_v44, 0.0004427343  ;;  %v6475_v21 = vpop.eup %6474 }
 0x560   : > { %vm3761_vm11 = vcmp.ne.f32.partialorder %v7752_v52, %v7752_v52  ;;  %v3935_v34 = vand.u32 2147483647, %v7845_v43  ;;  %5773 = vmatprep.mubr.f32.mxu0 %v5313_v63  ;;  %v9626_v36 = vmax.f32 %v7738_v30, 0.0  ;;  %v3925_v42 = vmul.f32 %v7861_v47, %v3924_v58 }
 0x561   : > { %v4013_v38 = vsel %vm3757_vm4, %v7697_v11, %v3997_v27  ;;  %v3919_v11 = vsel %vm7945_vm8, %v3916_v37, %v3913_v20  ;;  %v9627_v53 = vmax.f32 %v7733_v48, 0.0  ;;  %v3922_v6 = vmul.f32 0.6931472, %v6475_v21  ;;  %v6477_v14 = vpop.eup %6476 }
 0x562   : > { %v5314_v39 = vadd.f32 -0.6931472, %v4013_v38  ;;  %v3998_v17 = vadd.f32 %v3910_v61, %v9626_v36  ;;  %v3934_v45 = vmul.f32 %v7845_v43, %v3933_v40  ;;  %6480 = vlog2.f32 %v3947_v3 }
 0x563   : > { %v3999_v44 = vadd.f32 %v3919_v11, %v9627_v53  ;;  %v3942_v26 = vadd.f32 1.0, %v3941_v18  ;;  %v3950_v0 = vmul.f32 -0.5, %v7867_v59  ;;  %v3956_v37 = vadd.f32 1.0, %v7905_v46 }
 0x564   : > { %5774 = vmatmul.mubr.f32.gmra.mrb[20].mxu0 %v5314_v39  ;;  %v4014_v33 = vsel %vm3758_vm5, %v7738_v30, %v3998_v17  ;;  %v3928_v43 = vsel %vm7970_vm10, %v3925_v42, %v3922_v6  ;;  %v3931_v40 = vmul.f32 0.6931472, %v6477_v14  ;;  %v3750_v28 = vmax.f32 %v7811_v49, 0.0 }
 0x565   : > { %v5315_v47 = vadd.f32 -0.6931472, %v4014_v33  ;;  %v4015_v58 = vsel %vm3759_vm7, %v7733_v48, %v3999_v44  ;;  %v9628_v30 = vmax.f32 %v7757_v29, 0.0  ;;  %vm3936_vm12 = vcmp.lt.f32.partialorder %v3935_v34, 0.0004427343 }
 0x566   : > { %v5316_v27 = vadd.f32 -0.6931472, %v4015_v58  ;;  %v3937_v63 = vsel %vm3936_vm12, %v3934_v45, %v3931_v40  ;;  %v3944_v20 = vand.u32 2147483647, %v7890_v19  ;;  %6482 = vlog2.f32 %v3956_v37 }
 0x567   : > { %v4000_v13 = vadd.f32 %v3928_v43, %v9628_v30  ;;  %5776 = vmatprep.mubr.f32.mxu1 %v5315_v47  ;;  %v3959_v18 = vmul.f32 -0.5, %v7905_v46  ;;  %v9629_v3 = vmax.f32 %v7752_v52, 0.0  ;;  %v3943_v61 = vmul.f32 %v7890_v19, %v3942_v26 }
 0x568   : > { %5777 = vmatmul.mubr.f32.vlgmr.msra.gmra.mrb[0].mxu1 %v5316_v27  ;;  %v3965_v57 = vadd.f32 1.0, %v7896_v31  ;;  %v6479_v34 = vpop.eup %6478  ;;  %v3951_v39 = vadd.f32 1.0, %v3950_v0  ;;  %v3953_v36 = vand.u32 2147483647, %v7867_v59  ;;  %v3968_v17 = vmul.f32 -0.5, %v7896_v31 }
 0x569   : > { %v4016_v48 = vsel %vm3760_vm9, %v7757_v29, %v4000_v13  ;;  %v4001_v38 = vadd.f32 %v3937_v63, %v9629_v3  ;;  %v3940_v29 = vmul.f32 0.6931472, %v6479_v34  ;;  %v3962_v42 = vand.u32 2147483647, %v7905_v46 }
 0x56a   : > { %v5317_v21 = vadd.f32 -0.6931472, %v4016_v48  ;;  %6484 = vlog2.f32 %v3965_v57  ;;  %vm3762_vm13 = vcmp.ne.f32.partialorder %v7773_v35, %v7773_v35  ;;  %vm3945_vm14 = vcmp.lt.f32.partialorder %v3944_v20, 0.0004427343 }
 0x56b   : > { %v4017_v11 = vsel %vm3761_vm11, %v7752_v52, %v4001_v38  ;;  %v3960_v53 = vadd.f32 1.0, %v3959_v18  ;;  %v3946_v44 = vsel %vm3945_vm14, %v3943_v61, %v3940_v29  ;;  %vm3763_vm1 = vcmp.ne.f32.partialorder %v7769_v12, %v7769_v12 }
 0x56c   : > { %5779 = vmatprep.mubr.f32.mxu1 %v5317_v21  ;;  %v5318_v19 = vadd.f32 -0.6931472, %v4017_v11  ;;  %v3969_v6 = vadd.f32 1.0, %v3968_v17  ;;  %v3974_v45 = vadd.f32 1.0, %v7941_v56  ;;  %v6481_v14 = vpop.eup %6480  ;;  %v9630_v52 = vmax.f32 %v7773_v35, 0.0 }
 0x56d   : > { %v3952_v26 = vmul.f32 %v7867_v59, %v3951_v39  ;;  %vm8025_vm2 = vcmp.lt.f32.partialorder %v3953_v36, 0.0004427343  ;;  %v3977_v37 = vmul.f32 -0.5, %v7941_v56  ;;  %v3949_v47 = vmul.f32 0.6931472, %v6481_v14 }
 0x56e   : > { %5780 = vmatmul.mubr.f32.gmra.mrb[2].mxu1 %v5318_v19  ;;  %v4002_v33 = vadd.f32 %v3946_v44, %v9630_v52  ;;  %vm3764_vm3 = vcmp.ne.f32.partialorder %v7784_v54, %v7784_v54  ;;  %vm8032_vm4 = vcmp.lt.f32.partialorder %v3962_v42, 0.0004427343  ;;  %6486 = vlog2.f32 %v3974_v45 }
 0x56f   : > { %v3983_v43 = vadd.f32 1.0, %v7918_v51  ;;  %v3961_v40 = vmul.f32 %v7905_v46, %v3960_v53  ;;  %v3971_v27 = vand.u32 2147483647, %v7896_v31  ;;  %v3986_v30 = vmul.f32 -0.5, %v7918_v51 }
 0x570   : > { %v4018_v59 = vsel %vm3762_vm13, %v7773_v35, %v4002_v33  ;;  %v3955_v63 = vsel %vm8025_vm2, %v3952_v26, %v3949_v47  ;;  %v3970_v20 = vmul.f32 %v7896_v31, %v3969_v6  ;;  %v6483_v18 = vpop.eup %6482  ;;  %v9635_v48 = vmax.f32 %v7769_v12, 0.0 }
 0x571   : > { %v5319_v13 = vadd.f32 -0.6931472, %v4018_v59  ;;  %6488 = vlog2.f32 %v3983_v43  ;;  %vm3765_vm5 = vcmp.ne.f32.partialorder %v7781_v50, %v7781_v50  ;;  %v3978_v35 = vadd.f32 1.0, %v3977_v37 }
 0x572   : > { %v4003_v3 = vadd.f32 %v3955_v63, %v9635_v48  ;;  %v3980_v46 = vand.u32 2147483647, %v7941_v56  ;;  %v3359_v38 = vadd.f32 1.0, %v7790_v60  ;;  %v3958_v61 = vmul.f32 0.6931472, %v6483_v18 }
 0x573   : > { %5782 = vmatprep.mubr.f32.mxu1 %v5319_v13  ;;  %v3989_v57 = vand.u32 2147483647, %v7918_v51  ;;  %v9636_v31 = vxor.u32 2147483648, %v7708_v22  ;;  %v2084_v21 = vsub.s32 0, %v7743_v5  ;;  %v3987_v36 = vadd.f32 1.0, %v3986_v30 }
 0x574   : > { %v4019_v39 = vsel %vm3763_vm1, %v7769_v12, %v4003_v3  ;;  %v3375_v17 = vmul.f32 0.5, %v3359_v38  ;;  %v6485_v11 = vpop.eup %6484  ;;  %v3964_v42 = vsel %vm8032_vm4, %v3961_v40, %v3958_v61  ;;  %v9637_v19 = vmax.f32 %v7784_v54, 0.0 }
 0x575   : > { %v1794_v34 = vsel %vm1711_vm0, %v9636_v31, %v7708_v22  ;;  %v5320_v29 = vadd.f32 -0.6931472, %v4019_v39  ;;  %v5209_v22 = vmin.u32 %v2084_v21, %v7743_v5  ;;  %v3967_v44 = vmul.f32 0.6931472, %v6485_v11 }
 0x576   : > { %v1797_v60 = vsel %vm7627_vm15, %v7417_v25, %v1794_v34  ;;  %v4004_v53 = vadd.f32 %v3964_v42, %v9637_v19  ;;  %v3439_v12 = vmul.f32 %v7639_v8, %v3375_v17  ;;  %vm3972_vm0 = vcmp.lt.f32.partialorder %v3971_v27, 0.0004427343 }
 0x577   : > { %6490 = vcosq.f32 %v1797_v60  ;;  %5783 = vmatmul.mubr.f32.gmra.mrb[4].mxu1 %v5320_v29  ;;  %vm3766_vm15 = vcmp.ne.f32.partialorder %v7811_v49, %v7811_v49  ;;  %vm1807_vm6 = vcmp.eq.s32.totalorder %v7686_v1, 2  ;;  %v2086_v4 = vclz %v5209_v22 }
 0x578   : > { %6492 = vsinq.f32 %v1797_v60  ;;  %v9638_v6 = vmov 2131351028   ;;  %v4020_v14 = vsel %vm3764_vm3, %v7784_v54, %v4004_v53  ;;  %v3973_v52 = vsel %vm3972_vm0, %v3970_v20, %v3967_v44  ;;  %v6487_v26 = vpop.eup %6486 }
 0x579   : > { %v1833_v45 = vshrl.u32 %v9638_v6, %v7683_v62  ;;  %vm8082_vm7 = vcmp.lt.f32.partialorder %v3980_v46, 0.0004427343  ;;  %vm3767_vm8 = vcmp.ne.f32.partialorder %v7805_v55, %v7805_v55  ;;  %v3503_v33 = vmul.f32 %v7644_v7, %v3439_v12 }
 0x57a   : > { %vm1804_vm9 = vcmp.eq.s32.totalorder %v7686_v1, 0  ;;  %v5321_v0 = vadd.f32 -0.6931472, %v4020_v14  ;;  %v9641_v37 = vmax.f32 %v7781_v50, 0.0  ;;  %v3979_v58 = vmul.f32 %v7941_v56, %v3978_v35 }
 0x57b   : > { %vm1803_vm10 = vcmp.lt.s32.totalorder %v7686_v1, 2  ;;  %v5210_v54 = vadd.s32 4294967294, %v2086_v4  ;;  %vm1844_vm11 = vcmp.lt.s32.totalorder %v7701_v10, 1  ;;  %v3976_v43 = vmul.f32 0.6931472, %v6487_v26  ;;  %4220 = vperm.xlu1 %6421, %v3503_v33   ;;  %v6489_v56 = vpop.eup %6488 }
 0x57c   : > { %v4005_v47 = vadd.f32 %v3973_v52, %v9641_v37  ;;  %v3988_v59 = vmul.f32 %v7918_v51, %v3987_v36  ;;  %vm8096_vm12 = vcmp.lt.f32.partialorder %v3989_v57, 0.0004427343  ;;  %vm1801_vm13 = vweird.f32 %v7417_v25  ;;  %5785 = vmatprep.mubr.f32.mxu1 %v5321_v0 }
 0x57d   : > { %v9644_v7 = vmov 2102212464   ;;  %vm1846_vm14 = vcmp.lt.s32.totalorder %v7701_v10, 3  ;;  %vm5211_vm1 = vcmp.lt.s32.totalorder %v5210_v54, 0  ;;  %v1834_v51 = vor.u32 %v1833_v45, %v7720_v41 }
 0x57e   : > { %v1836_v27 = vshrl.u32 %v9644_v7, %v7683_v62  ;;  %v4021_v30 = vsel %vm3765_vm5, %v7781_v50, %v4005_v47  ;;  %v9645_v13 = vmov 920167782   ;;  %vm1845_vm2 = vcmp.lt.s32.totalorder %v7701_v10, 2 }
 0x57f   : > { %v1839_v63 = vshrl.u32 %v9645_v13, %v7683_v62  ;;  %v5322_v20 = vadd.f32 -0.6931472, %v4021_v30  ;;  %v3982_v18 = vsel %vm8082_vm7, %v3979_v58, %v3976_v43  ;;  %v3985_v48 = vmul.f32 0.6931472, %v6489_v56  ;;  %v9651_v58 = vld [vmem:[#allocation23_spill] sm:$0xff] }
 0x580   : > { %v2089_v3 = vsel %vm5211_vm1, 0, %v5210_v54  ;;  %v4006_v35 = vadd.f32 %v3982_v18, %v3750_v28  ;;  %v1837_v61 = vor.u32 %v1836_v27, %v7724_v15  ;;  %v1841_v57 = vshll.u32 %v9645_v13, %v7657_v2  ;;  %v8180_v27 = vld [vmem:[%s7033_s29 + $0x28] sm:$0xff] }
 0x581   : > { %v2090_v46 = vsub.s32 32, %v2089_v3  ;;  %v2091_v50 = vshll.u32 %v7743_v5, %v2089_v3  ;;  %v2094_v38 = vsub.s32 4294967266, %v2089_v3  ;;  %5786 = vmatmul.mubr.f32.gmra.mrb[6].mxu1 %v5322_v20  ;;  %v3991_v41 = vsel %vm8096_vm12, %v3988_v59, %v3985_v48  ;;  %v6491_v21 = vpop.eup %6490  ;;  %v9653_v18 = vld [vmem:[#allocation25_spill] sm:$0xff] }
 0x582   : > { %v9646_v31 = vmov 1326507024   ;;  %v4022_v28 = vsel %vm3766_vm15, %v7811_v49, %v4006_v35  ;;  %v9647_v5 = vmax.f32 %v7805_v55, 0.0  ;;  %v6493_v60 = vpop.eup %6492  ;;  %v1808_v11 = vxor.u32 2147483648, %v6491_v21 }
 0x583   : > { %v1842_v34 = vshrl.u32 %v9646_v31, %v7683_v62  ;;  %v2092_v36 = vshrl.u32 %v7693_v9, %v2090_v46  ;;  %v2095_v17 = vadd.s32 127, %v2094_v38  ;;  %v5323_v15 = vadd.f32 -0.6931472, %v4022_v28  ;;  %v9654_v46 = vld [vmem:[#allocation22_spill] sm:$0xff] }
 0x584   : > { %v4007_v39 = vadd.f32 %v3991_v41, %v9647_v5  ;;  %v1840_v2 = vor.u32 %v1839_v63, %v7728_v23  ;;  %vm1847_vm3 = vcmp.lt.s32.totalorder %v7701_v10, 4  ;;  %v1805_v29 = vxor.u32 2147483648, %v6493_v60 }
 0x585   : > { %v9648_v49 = vand.u32 2147483647, %v7422_v32  ;;  %v2093_v9 = vor.u32 %v2092_v36, %v2091_v50  ;;  %v2096_v22 = vshll.u32 %v2095_v17, 23  ;;  %5788 = vmatprep.mubr.f32.mxu1 %v5323_v15  ;;  %v1809_v23 = vsel %vm1807_vm6, %v1808_v11, %v6493_v60 }
 0x586   : > { %v4023_v62 = vsel %vm3767_vm8, %v7805_v55, %v4007_v39  ;;  %v1843_v53 = vor.u32 %v1842_v34, %v1841_v57  ;;  %v1849_v44 = vsel %vm1847_vm3, %v1837_v61, 2102212464  ;;  %v1806_v55 = vsel %vm1804_vm9, %v6491_v21, %v1805_v29  ;;  %v8208_v39 = vld [vmem:[%s7033_s29 + $0x20] sm:$0xff] }
 0x587   : > { %vm8139_vm4 = vcmp.le.f32.partialorder %v9648_v49, 0.7853982  ;;  %v5324_v19 = vadd.f32 -0.6931472, %v4023_v62  ;;  %v2097_v12 = vor.u32 4788187, %v2096_v22  ;;  %v2100_v4 = vcvt.s32.f32 %v2093_v9 }
 0x588   : > { %v1848_v45 = vsel %vm1844_vm11, %v7716_v16, %v7745_v24  ;;  %v1810_v14 = vsel %vm1803_vm10, %v1806_v55, %v1809_v23  ;;  %v1850_v52 = vsel %vm1846_vm14, %v1834_v51, %v1849_v44  ;;  %v1852_v8 = vsel %vm1844_vm11, %v7745_v24, %v1834_v51 }
 0x589   : > { %5789 = vmatmul.mubr.f32.gmra.mrb[8].mxu1 %v5324_v19  ;;  %v1853_v33 = vsel %vm1847_vm3, %v1840_v2, 920167782  ;;  %v1811_v26 = vsel %vm1801_vm13, nan, %v1810_v14  ;;  %v2098_v0 = vand.u32 2147483647, %v2097_v12  ;;  %v1856_v1 = vsel %vm1844_vm11, %v1834_v51, %v1837_v61  ;;  %v6550_v19 = vld [vmem:[%s7033_s29 + $0x18] sm:$0xff] }
 0x58a   : > { %v1854_v16 = vsel %vm1846_vm14, %v1837_v61, %v1853_v33  ;;  %v3357_v37 = vadd.f32 1.0, %v1811_v26  ;;  %v1857_v24 = vsel %vm1847_vm3, %v1843_v53, 1326507024  ;;  %v9652_v54 = vor.u32 8388608, %v9651_v58  ;;  %v9655_v61 = vld [vmem:[#allocation24_spill] sm:$0xff] }
 0x58b   : > { %v1855_v47 = vsel %vm1845_vm2, %v1852_v8, %v1854_v16  ;;  %vm2020_vm5 = vcmp.lt.s32.totalorder %v7422_v32, 0  ;;  %v2101_v25 = vmul.f32 %v2100_v4, %v2098_v0  ;;  %v1851_v59 = vsel %vm1845_vm2, %v1848_v45, %v1850_v52 }
 0x58c   : > { %v1860_v43 = vshll.u32 %v9652_v54, 8  ;;  %v1858_v40 = vsel %vm1846_vm14, %v1840_v2, %v1857_v24  ;;  %v3373_v56 = vmul.f32 0.5, %v3357_v37  ;;  %v2104_v48 = vsub.s32 4, %v9653_v18 }
 0x58d   : > { %v1859_v30 = vsel %vm1845_vm2, %v1856_v1, %v1858_v40  ;;  %v2102_v20 = vxor.u32 2147483648, %v2101_v25  ;;  %v8193_v38 = vmul.f32 0.31415927, %v8180_v27  ;;  %v8215_v2 = vmul.f32 0.31415927, %v8208_v39 }
 0x58e   : > { %v8184_v51 = vmul.u32.u64.low %v1860_v43, %v1855_v47  ;;  %v8185_v63 = vmul.u32.u64.high %v1860_v43, %v1855_v47, %v8184_v51  ;;  %v8188_v3 = vmul.u32.u64.low %v1860_v43, %v1859_v30  ;;  %v8189_v35 = vmul.u32.u64.high %v1860_v43, %v1859_v30, %v8188_v3 }
 0x58f   : > { %v3437_v50 = vmul.f32 %v9654_v46, %v3373_v56  ;;  %v2103_v41 = vsel %vm2020_vm5, %v2102_v20, %v2101_v25  ;;  %v1867_v10 = vmul.u32 %v1860_v43, %v1851_v59  ;;  %v2105_v28 = vsel %vm2020_vm5, %v2104_v48, %v9653_v18 }
 0x590   : > { %v2106_v34 = vsel %vm8139_vm4, %v7422_v32, %v2103_v41  ;;  %v1870_v21 = vadd.s32 1, %v8185_v63  ;;  %vm1869_vm0 = vc.u32 %v8189_v35, %v8184_v51  ;;  %v2224_v5 = vand.u32 2147483647, %v8193_v38 }
 0x591   : > { %v3501_v57 = vmul.f32 %v9655_v61, %v3437_v50  ;;  %6494 = vcosq.f32 %v2106_v34  ;;  %v2227_v17 = vand.u32 2139095040, %v8193_v38  ;;  %v2107_v15 = vsel %vm8139_vm4, 0, %v2105_v28 }
 0x592   : > { %6496 = vsinq.f32 %v2106_v34  ;;  %v1871_v36 = vsel %vm1869_vm0, %v1870_v21, %v8185_v63  ;;  %v2231_v29 = vand.u32 8388607, %v2224_v5  ;;  %v2124_v9 = vand.u32 2139095040, %v8215_v2 }
 0x593   : > { %4210 = vperm.xlu0 %6420, %v3501_v57   ;;  %v1872_v60 = vadd.s32 %v1871_v36, %v1867_v10  ;;  %v2228_v11 = vshrl.u32 %v2227_v17, 23  ;;  %v2111_v22 = vand.u32 3, %v2107_v15  ;;  %vm3392_vm15 = vcmp.le.f32.partialorder %v6550_v19, 10.0 }
 0x594   : > { %vm3456_vm6 = vcmp.ge.f32.partialorder %v6550_v19, 0.0  ;;  %v2125_v42 = vshrl.u32 %v2124_v9, 23  ;;  %vm2110_vm7 = vweird.f32 %v7422_v32  ;;  %v2232_v55 = vor.u32 8388608, %v2231_v29 }
 0x595   : > { %v1873_v62 = vadd.s32 536870912, %v1872_v60  ;;  %v5216_v49 = vadd.s32 4294967169, %v2228_v11  ;;  %v9656_v12 = vmov 0.0   ;;  %v2121_v14 = vand.u32 2147483647, %v8215_v2 }
 0x596   : > { %v5263_v4 = vsel %vm3392_vm15, 1.0, %v9656_v12  ;;  %v5279_v45 = vsel %vm3456_vm6, 1.0, %v9656_v12  ;;  %vm2112_vm9 = vcmp.lt.s32.totalorder %v2111_v22, 2  ;;  %vm2116_vm10 = vcmp.eq.s32.totalorder %v2111_v22, 2 }
 0x597   : > { %v8221_v23 = vshrl.u32 %v1873_v62, 30  ;;  %v2234_v53 = vadd.s32 1, %v5216_v49  ;;  %vm2113_vm11 = vcmp.eq.s32.totalorder %v2111_v22, 0  ;;  %v5212_v1 = vadd.s32 4294967169, %v2125_v42  ;;  %v9659_v62 = vld [vmem:[#allocation21_spill] sm:$0xff] }
 0x598   : > { %v1868_v47 = vadd.s32 %v8184_v51, %v8189_v35  ;;  %v8232_v58 = vshll.u32 %v2232_v55, 8  ;;  %v9657_v25 = vmov 683565275   ;;  %v8237_v40 = vand.u32 8388607, %v2121_v14 }
 0x599   : > { %v1875_v44 = vshll.u32 %v8221_v23, 30  ;;  %vm2235_vm8 = vcmp.gt.s32.totalorder %v2234_v53, 0  ;;  %v9658_v20 = vmov 2475754826   ;;  %v2131_v35 = vadd.s32 1, %v5212_v1 }
 0x59a   : > { %v2236_v33 = vsel %vm2235_vm8, %v2234_v53, 0  ;;  %vm1814_vm13 = vcmp.lt.s32.totalorder %v9659_v62, 0 }
 0x59b   : > { %v6495_v52 = vpop.eup %6494  ;;  %v8228_v8 = vsub.s32 %v1872_v60, %v1875_v44  ;;  %v2238_v16 = vand.u32 31, %v2236_v33  ;;  %v2237_v63 = vshrl.u32 %v2236_v33, 5  ;;  %vm2132_vm4 = vcmp.gt.s32.totalorder %v2131_v35, 0 }
 0x59c   : > { %v6497_v26 = vpop.eup %6496  ;;  %v2117_v0 = vxor.u32 2147483648, %v6495_v52 }
 0x59d   : > { %v2114_v37 = vxor.u32 2147483648, %v6497_v26  ;;  %v1878_v24 = vsub.s32 0, %v8228_v8  ;;  %v2239_v43 = vsub.s32 32, %v2238_v16  ;;  %v2241_v59 = vshll.u32 %v9657_v25, %v2238_v16 }
 0x59e   : > { %v2118_v54 = vsel %vm2116_vm10, %v2117_v0, %v6497_v26  ;;  %v2244_v18 = vshll.u32 %v9658_v20, %v2238_v16  ;;  %v2247_v10 = vshll.u32 %v9638_v6, %v2238_v16  ;;  %v2250_v21 = vshll.u32 %v9644_v7, %v2238_v16 }
 0x59f   : > { %v2115_v56 = vsel %vm2113_vm11, %v6495_v52, %v2114_v37  ;;  %v5201_v30 = vmin.u32 %v1878_v24, %v8228_v8  ;;  %v2240_v48 = vshrl.u32 %v9657_v25, %v2239_v43  ;;  %v2242_v3 = vshrl.u32 %v9658_v20, %v2239_v43 }
 0x5a0   : > { %v2119_v51 = vsel %vm2112_vm9, %v2115_v56, %v2118_v54  ;;  %v2245_v41 = vshrl.u32 %v9638_v6, %v2239_v43  ;;  %v2248_v34 = vshrl.u32 %v9644_v7, %v2239_v43  ;;  %v2251_v17 = vshrl.u32 %v9645_v13, %v2239_v43 }
 0x5a1   : > { %v2120_v46 = vsel %vm2110_vm7, nan, %v2119_v51  ;;  %v1880_v50 = vclz %v5201_v30  ;;  %v2243_v57 = vor.u32 %v2242_v3, %v2241_v59  ;;  %v2253_v60 = vshll.u32 %v9645_v13, %v2238_v16 }
 0x5a2   : > { %v3360_v61 = vadd.f32 1.0, %v2120_v46  ;;  %v2246_v36 = vor.u32 %v2245_v41, %v2244_v18  ;;  %v2249_v32 = vor.u32 %v2248_v34, %v2247_v10  ;;  %v2254_v11 = vshrl.u32 %v9646_v31, %v2239_v43 }
 0x5a3   : > { %v5202_v28 = vadd.s32 4294967294, %v1880_v50  ;;  %vm2256_vm12 = vcmp.lt.s32.totalorder %v2237_v63, 1  ;;  %v2252_v29 = vor.u32 %v2251_v17, %v2250_v21  ;;  %vm2257_vm1 = vcmp.lt.s32.totalorder %v2237_v63, 2  ;;  %v8278_v50 = vld [vmem:[%s7033_s29 + $0x38] sm:$0xff] }
 0x5a4   : > { %v3376_v15 = vmul.f32 0.5, %v3360_v61  ;;  %vm2258_vm2 = vcmp.lt.s32.totalorder %v2237_v63, 3  ;;  %v2255_v22 = vor.u32 %v2254_v11, %v2253_v60  ;;  %vm2259_vm3 = vcmp.lt.s32.totalorder %v2237_v63, 4 }
 0x5a5   : > { %vm5203_vm14 = vcmp.lt.s32.totalorder %v5202_v28, 0  ;;  %v2260_v44 = vsel %vm2256_vm12, %v2240_v48, %v2243_v57  ;;  %v2261_v52 = vsel %vm2259_vm3, %v2249_v32, 2102212464  ;;  %v2264_v33 = vsel %vm2256_vm12, %v2243_v57, %v2246_v36 }
 0x5a6   : > { %v3440_v49 = vmul.f32 %v5263_v4, %v3376_v15  ;;  %v1883_v9 = vsel %vm5203_vm14, 0, %v5202_v28  ;;  %v2265_v26 = vsel %vm2259_vm3, %v2252_v29, 920167782  ;;  %v2262_v4 = vsel %vm2258_vm2, %v2246_v36, %v2261_v52  ;;  %v6551_v28 = vld [vmem:[%s7033_s29 + $0x8] sm:$0xff] }
 0x5a7   : > { %v1884_v19 = vsub.s32 32, %v1883_v9  ;;  %v1885_v53 = vshll.u32 %v8228_v8, %v1883_v9  ;;  %v1888_v42 = vsub.s32 4294967266, %v1883_v9  ;;  %v2266_v1 = vsel %vm2258_vm2, %v2249_v32, %v2265_v26 }
 0x5a8   : > { %v3504_v55 = vmul.f32 %v5279_v45, %v3440_v49  ;;  %v1898_v8 = vsub.s32 4, %v8221_v23  ;;  %v2267_v37 = vsel %vm2257_vm1, %v2264_v33, %v2266_v1  ;;  %v2268_v45 = vsel %vm2256_vm12, %v2246_v36, %v2249_v32 }
 0x5a9   : > { %v1886_v0 = vshrl.u32 %v1868_v47, %v1884_v19  ;;  %v1889_v16 = vadd.s32 127, %v1888_v42  ;;  %v2269_v24 = vsel %vm2259_vm3, %v2255_v22, 1326507024  ;;  %v2263_v47 = vsel %vm2257_vm1, %v2260_v44, %v2262_v4 }
 0x5aa   : > { %4225 = vperm.xlu1 %6421, %v3504_v55   ;;  %v2270_v59 = vsel %vm2258_vm2, %v2252_v29, %v2269_v24  ;;  %v8269_v30 = vmul.u32.u64.low %v8232_v58, %v2267_v37  ;;  %v8270_v18 = vmul.u32.u64.high %v8232_v58, %v2267_v37, %v8269_v30  ;;  %v8283_v41 = vsel %vm1814_vm13, %v1898_v8, %v8221_v23 }
 0x5ab   : > { %v1887_v54 = vor.u32 %v1886_v0, %v1885_v53  ;;  %v1890_v43 = vshll.u32 %v1889_v16, 23  ;;  %v2271_v56 = vsel %vm2257_vm1, %v2268_v45, %v2270_v59  ;;  %v2133_v63 = vsel %vm2132_vm4, %v2131_v35, 0 }
 0x5ac   : > { %v8274_v3 = vmul.u32.u64.low %v8232_v58, %v2271_v56  ;;  %v8275_v46 = vmul.u32.u64.high %v8232_v58, %v2271_v56, %v8274_v3  ;;  %v9660_v10 = vand.u32 2147483647, %v9659_v62  ;;  %v2279_v34 = vmul.u32 %v8232_v58, %v2263_v47 }
 0x5ad   : > { %v1891_v51 = vor.u32 4788187, %v1890_v43  ;;  %v1894_v48 = vcvt.s32.f32 %v1887_v54  ;;  %v2135_v21 = vand.u32 31, %v2133_v63  ;;  %vm3390_vm0 = vcmp.le.f32.partialorder %v6551_v28, 10.0 }
 0x5ae   : > { %vm8287_vm5 = vcmp.le.f32.partialorder %v9660_v10, 0.7853982  ;;  %v2282_v36 = vadd.s32 1, %v8270_v18  ;;  %v2129_v17 = vor.u32 8388608, %v8237_v40  ;;  %v8296_v23 = vmul.f32 0.31415927, %v8278_v50 }
 0x5af   : > { %v1892_v57 = vand.u32 2147483647, %v1891_v51  ;;  %v1901_v60 = vsel %vm8287_vm5, 0, %v8283_v41  ;;  %vm2281_vm15 = vc.u32 %v8275_v46, %v8269_v30  ;;  %v2136_v15 = vsub.s32 32, %v2135_v21 }
 0x5b0   : > { %vm3454_vm6 = vcmp.ge.f32.partialorder %v6551_v28, 0.0  ;;  %v2283_v58 = vsel %vm2281_vm15, %v2282_v36, %v8270_v18  ;;  %v2138_v32 = vshll.u32 %v9657_v25, %v2135_v21  ;;  %v2141_v11 = vshll.u32 %v9658_v20, %v2135_v21 }
 0x5b1   : > { %v1895_v35 = vmul.f32 %v1894_v48, %v1892_v57  ;;  %v2144_v40 = vshll.u32 %v9638_v6, %v2135_v21  ;;  %v2284_v49 = vadd.s32 %v2283_v58, %v2279_v34  ;;  %v2134_v9 = vshrl.u32 %v2133_v63, 5 }
 0x5b2   : > { %v2139_v22 = vshrl.u32 %v9658_v20, %v2136_v15  ;;  %v2142_v19 = vshrl.u32 %v9638_v6, %v2136_v15  ;;  %v2145_v53 = vshrl.u32 %v9644_v7, %v2136_v15  ;;  %v2147_v42 = vshll.u32 %v9644_v7, %v2135_v21 }
 0x5b3   : > { %v1896_v29 = vxor.u32 2147483648, %v1895_v35  ;;  %v2148_v44 = vshrl.u32 %v9645_v13, %v2136_v15  ;;  %v2285_v52 = vadd.s32 536870912, %v2284_v49  ;;  %v2150_v26 = vshll.u32 %v9645_v13, %v2135_v21 }
 0x5b4   : > { %v2140_v33 = vor.u32 %v2139_v22, %v2138_v32  ;;  %v2143_v16 = vor.u32 %v2142_v19, %v2141_v11  ;;  %v2146_v4 = vor.u32 %v2145_v53, %v2144_v40  ;;  %v2151_v37 = vshrl.u32 %v9646_v31, %v2136_v15 }
 0x5b5   : > { %v1897_v55 = vsel %vm1814_vm13, %v1896_v29, %v1895_v35  ;;  %v2149_v1 = vor.u32 %v2148_v44, %v2147_v42  ;;  %v8318_v8 = vshrl.u32 %v2285_v52, 30  ;;  %vm2153_vm7 = vcmp.lt.s32.totalorder %v2134_v9, 1 }
 0x5b6   : > { %v1900_v0 = vsel %vm8287_vm5, %v9659_v62, %v1897_v55  ;;  %v2137_v45 = vshrl.u32 %v9657_v25, %v2136_v15  ;;  %vm2155_vm8 = vcmp.lt.s32.totalorder %v2134_v9, 3  ;;  %vm2156_vm9 = vcmp.lt.s32.totalorder %v2134_v9, 4 }
 0x5b7   : > { %6498 = vcosq.f32 %v1900_v0  ;;  %v2287_v24 = vshll.u32 %v8318_v8, 30  ;;  %v2152_v54 = vor.u32 %v2151_v37, %v2150_v26  ;;  %vm2154_vm10 = vcmp.lt.s32.totalorder %v2134_v9, 2 }
 0x5b8   : > { %6500 = vsinq.f32 %v1900_v0  ;;  %v2169_v43 = vshll.u32 %v2129_v17, 8  ;;  %v2158_v47 = vsel %vm2156_vm9, %v2146_v4, 2102212464  ;;  %v2161_v59 = vsel %vm2153_vm7, %v2140_v33, %v2143_v16 }
 0x5b9   : > { %v2162_v56 = vsel %vm2156_vm9, %v2149_v1, 920167782  ;;  %v2433_v18 = vand.u32 2139095040, %v8296_v23  ;;  %v8329_v51 = vsel %vm3390_vm0, 1.0, %v9656_v12  ;;  %v8331_v48 = vsub.s32 %v2284_v49, %v2287_v24 }
 0x5ba   : > { %v2163_v3 = vsel %vm2155_vm8, %v2146_v4, %v2162_v56  ;;  %v2165_v41 = vsel %vm2153_vm7, %v2143_v16, %v2146_v4  ;;  %vm1904_vm11 = vweird.f32 %v9659_v62  ;;  %v2157_v63 = vsel %vm2153_vm7, %v2137_v45, %v2140_v33 }
 0x5bb   : > { %v2159_v10 = vsel %vm2155_vm8, %v2143_v16, %v2158_v47  ;;  %v2164_v61 = vsel %vm2154_vm10, %v2161_v59, %v2163_v3  ;;  %v2166_v57 = vsel %vm2156_vm9, %v2152_v54, 1326507024  ;;  %v1905_v34 = vand.u32 3, %v1901_v60 }
 0x5bc   : > { %v8342_v21 = vsel %vm3454_vm6, 1.0, %v9656_v12  ;;  %v2290_v36 = vsub.s32 0, %v8331_v48  ;;  %v2167_v17 = vsel %vm2155_vm8, %v2149_v1, %v2166_v57  ;;  %vm3394_vm12 = vcmp.le.f32.partialorder %v8180_v27, 10.0 }
 0x5bd   : > { %v2168_v35 = vsel %vm2154_vm10, %v2165_v41, %v2167_v17  ;;  %v8348_v15 = vmul.u32.u64.low %v2169_v43, %v2164_v61  ;;  %v8349_v58 = vmul.u32.u64.high %v2169_v43, %v2164_v61, %v8348_v15  ;;  %v2434_v32 = vshrl.u32 %v2433_v18, 23 }
 0x5be   : > { %v5217_v11 = vmin.u32 %v2290_v36, %v8331_v48  ;;  %vm3458_vm13 = vcmp.ge.f32.partialorder %v8180_v27, 0.0  ;;  %v2160_v28 = vsel %vm2154_vm10, %v2157_v63, %v2159_v10  ;;  %v2430_v60 = vand.u32 2147483647, %v8296_v23 }
 0x5bf   : > { %vm2226_vm14 = vcmp.lt.s32.totalorder %v8193_v38, 0  ;;  %v8357_v40 = vmul.u32.u64.low %v2169_v43, %v2168_v35  ;;  %v8358_v29 = vmul.u32.u64.high %v2169_v43, %v2168_v35, %v8357_v40  ;;  %v5224_v49 = vadd.s32 4294967169, %v2434_v32 }
 0x5c0   : > { %vm1907_vm1 = vcmp.eq.s32.totalorder %v1905_v34, 0  ;;  %vm1910_vm2 = vcmp.eq.s32.totalorder %v1905_v34, 2  ;;  %v2292_v19 = vclz %v5217_v11  ;;  %v2310_v53 = vsub.s32 4, %v8318_v8  ;;  %v8404_v40 = vld [vmem:[%s7033_s29 + $0x30] sm:$0xff] }
 0x5c1   : > { %v6499_v22 = vpop.eup %6498  ;;  %v2176_v55 = vmul.u32 %v2169_v43, %v2160_v28  ;;  %v2179_v9 = vadd.s32 1, %v8349_v58  ;;  %v2440_v52 = vadd.s32 1, %v5224_v49  ;;  %vm1906_vm3 = vcmp.lt.s32.totalorder %v1905_v34, 2 }
 0x5c2   : > { %v6501_v42 = vpop.eup %6500  ;;  %v1911_v44 = vxor.u32 2147483648, %v6499_v22  ;;  %v5218_v26 = vadd.s32 4294967294, %v2292_v19  ;;  %v2437_v0 = vand.u32 8388607, %v2430_v60  ;;  %v2280_v4 = vadd.s32 %v8269_v30, %v8275_v46 }
 0x5c3   : > { %v1908_v33 = vxor.u32 2147483648, %v6501_v42  ;;  %vm2178_vm4 = vc.u32 %v8358_v29, %v8348_v15  ;;  %vm2441_vm5 = vcmp.gt.s32.totalorder %v2440_v52, 0  ;;  %v8373_v43 = vsel %vm2226_vm14, %v2310_v53, %v8318_v8 }
 0x5c4   : > { %v1912_v16 = vsel %vm1910_vm2, %v1911_v44, %v6501_v42  ;;  %vm5219_vm0 = vcmp.lt.s32.totalorder %v5218_v26, 0  ;;  %v2180_v37 = vsel %vm2178_vm4, %v2179_v9, %v8349_v58  ;;  %v2442_v45 = vsel %vm2441_vm5, %v2440_v52, 0 }
 0x5c5   : > { %v1909_v1 = vsel %vm1907_vm1, %v6499_v22, %v1908_v33  ;;  %v2295_v54 = vsel %vm5219_vm0, 0, %v5218_v26  ;;  %v2181_v47 = vadd.s32 %v2180_v37, %v2176_v55  ;;  %vm8380_vm15 = vcmp.le.f32.partialorder %v2224_v5, 0.7853982 }
 0x5c6   : > { %v1913_v24 = vsel %vm1906_vm3, %v1909_v1, %v1912_v16  ;;  %v2296_v46 = vsub.s32 32, %v2295_v54  ;;  %v2297_v59 = vshll.u32 %v8331_v48, %v2295_v54  ;;  %v2300_v56 = vsub.s32 4294967266, %v2295_v54 }
 0x5c7   : > { %v1914_v30 = vsel %vm1904_vm11, nan, %v1913_v24  ;;  %v2182_v41 = vadd.s32 536870912, %v2181_v47  ;;  %v2444_v63 = vand.u32 31, %v2442_v45  ;;  %v8387_v62 = vsel %vm3394_vm12, 1.0, %v9656_v12 }
 0x5c8   : > { %v3358_v18 = vadd.f32 1.0, %v1914_v30  ;;  %v2298_v10 = vshrl.u32 %v2280_v4, %v2296_v46  ;;  %v2301_v8 = vadd.s32 127, %v2300_v56  ;;  %v8392_v48 = vsel %vm3458_vm13, 1.0, %v9656_v12 }
 0x5c9   : > { %v2313_v5 = vsel %vm8380_vm15, 0, %v8373_v43  ;;  %v8397_v57 = vshrl.u32 %v2182_v41, 30  ;;  %v2445_v34 = vsub.s32 32, %v2444_v63  ;;  %v2438_v35 = vor.u32 8388608, %v2437_v0 }
 0x5ca   : > { %v3374_v61 = vmul.f32 0.5, %v3358_v18  ;;  %v2299_v36 = vor.u32 %v2298_v10, %v2297_v59  ;;  %v2302_v17 = vshll.u32 %v2301_v8, 23  ;;  %v2443_v58 = vshrl.u32 %v2442_v45, 5 }
 0x5cb   : > { %v2184_v11 = vshll.u32 %v8397_v57, 30  ;;  %v2447_v27 = vshll.u32 %v9657_v25, %v2444_v63  ;;  %v2450_v28 = vshll.u32 %v9658_v20, %v2444_v63  ;;  %v2448_v19 = vshrl.u32 %v9658_v20, %v2445_v34 }
 0x5cc   : > { %v3438_v32 = vmul.f32 %v8329_v51, %v3374_v61  ;;  %v2303_v49 = vor.u32 4788187, %v2302_v17  ;;  %v2306_v22 = vcvt.s32.f32 %v2299_v36  ;;  %v2451_v53 = vshrl.u32 %v9638_v6, %v2445_v34 }
 0x5cd   : > { %v8409_v44 = vsub.s32 %v2181_v47, %v2184_v11  ;;  %v2453_v51 = vshll.u32 %v9638_v6, %v2444_v63  ;;  %v2454_v55 = vshrl.u32 %v9644_v7, %v2445_v34  ;;  %v2446_v52 = vshrl.u32 %v9657_v25, %v2445_v34 }
 0x5ce   : > { %v3502_v42 = vmul.f32 %v8342_v21, %v3438_v32  ;;  %v2304_v9 = vand.u32 2147483647, %v2303_v49  ;;  %vm2462_vm6 = vcmp.lt.s32.totalorder %v2443_v58, 1  ;;  %v8415_v33 = vmul.f32 0.31415927, %v8404_v40 }
 0x5cf   : > { %v2187_v26 = vsub.s32 0, %v8409_v44  ;;  %v2449_v0 = vor.u32 %v2448_v19, %v2447_v27  ;;  %v2452_v16 = vor.u32 %v2451_v53, %v2450_v28  ;;  %v2456_v21 = vshll.u32 %v9644_v7, %v2444_v63 }
 0x5d0   : > { %4215 = vperm.xlu0 %6420, %v3502_v42   ;;  %v2307_v4 = vmul.f32 %v2306_v22, %v2304_v9  ;;  %v2457_v1 = vshrl.u32 %v9645_v13, %v2445_v34  ;;  %v2459_v37 = vshll.u32 %v9645_v13, %v2444_v63  ;;  %v2460_v45 = vshrl.u32 %v9646_v31, %v2445_v34 }
 0x5d1   : > { %v5213_v24 = vmin.u32 %v2187_v26, %v8409_v44  ;;  %v2455_v54 = vor.u32 %v2454_v55, %v2453_v51  ;;  %vm2464_vm7 = vcmp.lt.s32.totalorder %v2443_v58, 3  ;;  %v8423_v47 = vshll.u32 %v2438_v35, 8 }
 0x5d2   : > { %v2308_v30 = vxor.u32 2147483648, %v2307_v4  ;;  %v2458_v46 = vor.u32 %v2457_v1, %v2456_v21  ;;  %v2461_v59 = vor.u32 %v2460_v45, %v2459_v37  ;;  %vm2465_vm8 = vcmp.lt.s32.totalorder %v2443_v58, 4 }
 0x5d3   : > { %v2189_v56 = vclz %v5213_v24  ;;  %vm2463_vm9 = vcmp.lt.s32.totalorder %v2443_v58, 2  ;;  %v2467_v18 = vsel %vm2465_vm8, %v2455_v54, 2102212464  ;;  %v2470_v41 = vsel %vm2462_vm6, %v2449_v0, %v2452_v16 }
 0x5d4   : > { %v2309_v63 = vsel %vm2226_vm14, %v2308_v30, %v2307_v4  ;;  %v2466_v10 = vsel %vm2462_vm6, %v2446_v52, %v2449_v0  ;;  %v2468_v8 = vsel %vm2464_vm7, %v2452_v16, %v2467_v18  ;;  %v2471_v61 = vsel %vm2465_vm8, %v2458_v46, 920167782 }
 0x5d5   : > { %v2312_v34 = vsel %vm8380_vm15, %v8193_v38, %v2309_v63  ;;  %v5214_v36 = vadd.s32 4294967294, %v2189_v56  ;;  %v2472_v17 = vsel %vm2464_vm7, %v2455_v54, %v2471_v61  ;;  %v2474_v35 = vsel %vm2462_vm6, %v2452_v16, %v2455_v54  ;;  %v8463_v16 = vld [vmem:[%s7033_s29 + $0x48] sm:$0xff] }
 0x5d6   : > { %6502 = vcosq.f32 %v2312_v34  ;;  %v2177_v32 = vadd.s32 %v8348_v15, %v8358_v29  ;;  %v2473_v11 = vsel %vm2463_vm9, %v2470_v41, %v2472_v17  ;;  %v2475_v27 = vsel %vm2465_vm8, %v2461_v59, 1326507024 }
 0x5d7   : > { %6504 = vsinq.f32 %v2312_v34  ;;  %vm5215_vm10 = vcmp.lt.s32.totalorder %v5214_v36, 0  ;;  %v2469_v28 = vsel %vm2463_vm9, %v2466_v10, %v2468_v8  ;;  %v2476_v49 = vsel %vm2464_vm7, %v2458_v46, %v2475_v27 }
 0x5d8   : > { %v2192_v22 = vsel %vm5215_vm10, 0, %v5214_v36  ;;  %v2477_v19 = vsel %vm2463_vm9, %v2474_v35, %v2476_v49  ;;  %v8445_v53 = vmul.u32.u64.low %v8423_v47, %v2473_v11  ;;  %v8446_v42 = vmul.u32.u64.high %v8423_v47, %v2473_v11, %v8445_v53 }
 0x5d9   : > { %v2193_v15 = vsub.s32 32, %v2192_v22  ;;  %v2194_v29 = vshll.u32 %v8409_v44, %v2192_v22  ;;  %v2197_v51 = vsub.s32 4294967266, %v2192_v22  ;;  %v2330_v55 = vand.u32 2139095040, %v8415_v33 }
 0x5da   : > { %v2317_v9 = vand.u32 3, %v2313_v5  ;;  %vm3393_vm11 = vcmp.le.f32.partialorder %v8208_v39, 10.0  ;;  %v8457_v58 = vmul.u32.u64.low %v8423_v47, %v2477_v19  ;;  %v8458_v52 = vmul.u32.u64.high %v8423_v47, %v2477_v19, %v8457_v58 }
 0x5db   : > { %vm2316_vm12 = vweird.f32 %v8193_v38  ;;  %v2195_v26 = vshrl.u32 %v2177_v32, %v2193_v15  ;;  %v2198_v0 = vadd.s32 127, %v2197_v51  ;;  %vm3457_vm13 = vcmp.ge.f32.partialorder %v8208_v39, 0.0 }
 0x5dc   : > { %v2331_v44 = vshrl.u32 %v2330_v55, 23  ;;  %vm2123_vm14 = vcmp.lt.s32.totalorder %v8215_v2, 0  ;;  %v2207_v43 = vsub.s32 4, %v8397_v57  ;;  %v2485_v3 = vmul.u32 %v8423_v47, %v2469_v28 }
 0x5dd   : > { %v2488_v5 = vadd.s32 1, %v8446_v42  ;;  %v2196_v21 = vor.u32 %v2195_v26, %v2194_v29  ;;  %v2199_v4 = vshll.u32 %v2198_v0, 23  ;;  %v2327_v1 = vand.u32 2147483647, %v8415_v33 }
 0x5de   : > { %v5220_v37 = vadd.s32 4294967169, %v2331_v44  ;;  %vm2318_vm1 = vcmp.lt.s32.totalorder %v2317_v9, 2  ;;  %vm8472_vm2 = vcmp.le.f32.partialorder %v2121_v14, 0.7853982  ;;  %vm2487_vm3 = vc.u32 %v8458_v52, %v8445_v53 }
 0x5df   : > { %v8479_v24 = vmul.f32 0.31415927, %v8463_v16  ;;  %v2200_v54 = vor.u32 4788187, %v2199_v4  ;;  %v2203_v47 = vcvt.s32.f32 %v2196_v21  ;;  %v2489_v30 = vsel %vm2487_vm3, %v2488_v5, %v8446_v42 }
 0x5e0   : > { %v2337_v46 = vadd.s32 1, %v5220_v37  ;;  %v6503_v59 = vpop.eup %6502  ;;  %vm2319_vm4 = vcmp.eq.s32.totalorder %v2317_v9, 0  ;;  %vm2322_vm5 = vcmp.eq.s32.totalorder %v2317_v9, 2  ;;  %v2208_v14 = vsel %vm2123_vm14, %v2207_v43, %v8397_v57 }
 0x5e1   : > { %v2490_v56 = vadd.s32 %v2489_v30, %v2485_v3  ;;  %v6505_v18 = vpop.eup %6504  ;;  %v2323_v41 = vxor.u32 2147483648, %v6503_v59  ;;  %v2201_v63 = vand.u32 2147483647, %v2200_v54  ;;  %v2334_v10 = vand.u32 8388607, %v2327_v1 }
 0x5e2   : > { %vm2338_vm0 = vcmp.gt.s32.totalorder %v2337_v46, 0  ;;  %v2320_v8 = vxor.u32 2147483648, %v6505_v18  ;;  %v2639_v36 = vand.u32 2139095040, %v8479_v24  ;;  %v2210_v32 = vsel %vm8472_vm2, 0, %v2208_v14 }
 0x5e3   : > { %v2491_v61 = vadd.s32 536870912, %v2490_v56  ;;  %v2339_v34 = vsel %vm2338_vm0, %v2337_v46, 0  ;;  %v2324_v17 = vsel %vm2322_vm5, %v2323_v41, %v6505_v18  ;;  %v2204_v35 = vmul.f32 %v2203_v47, %v2201_v63 }
 0x5e4   : > { %v2341_v11 = vand.u32 31, %v2339_v34  ;;  %v2321_v57 = vsel %vm2319_vm4, %v6503_v59, %v2320_v8  ;;  %v8494_v27 = vsel %vm3393_vm11, 1.0, %v9656_v12  ;;  %v8499_v28 = vsel %vm3457_vm13, 1.0, %v9656_v12 }
 0x5e5   : > { %v8501_v49 = vshrl.u32 %v2491_v61, 30  ;;  %v2325_v22 = vsel %vm2318_vm1, %v2321_v57, %v2324_v17  ;;  %v2205_v19 = vxor.u32 2147483648, %v2204_v35  ;;  %v2335_v42 = vor.u32 8388608, %v2334_v10 }
 0x5e6   : > { %v2342_v15 = vsub.s32 32, %v2341_v11  ;;  %v2326_v29 = vsel %vm2316_vm12, nan, %v2325_v22  ;;  %v8506_v51 = vand.u32 3, %v2210_v32  ;;  %v2640_v58 = vshrl.u32 %v2639_v36, 23 }
 0x5e7   : > { %v2493_v55 = vshll.u32 %v8501_v49, 30  ;;  %v3362_v26 = vadd.f32 1.0, %v2326_v29  ;;  %v2206_v39 = vsel %vm2123_vm14, %v2205_v19, %v2204_v35  ;;  %v2344_v0 = vshll.u32 %v9657_v25, %v2341_v11 }
 0x5e8   : > { %v2347_v9 = vshll.u32 %v9658_v20, %v2341_v11  ;;  %v2209_v44 = vsel %vm8472_vm2, %v8215_v2, %v2206_v39  ;;  %v2345_v38 = vshrl.u32 %v9658_v20, %v2342_v15  ;;  %v2348_v3 = vshrl.u32 %v9638_v6, %v2342_v15 }
 0x5e9   : > { %v8516_v43 = vsub.s32 %v2490_v56, %v2493_v55  ;;  %v3378_v5 = vmul.f32 0.5, %v3362_v26  ;;  %6506 = vcosq.f32 %v2209_v44  ;;  %v2486_v21 = vadd.s32 %v8445_v53, %v8458_v52 }
 0x5ea   : > { %v8522_v4 = vshll.u32 %v2335_v42, 8  ;;  %6508 = vsinq.f32 %v2209_v44  ;;  %v2340_v54 = vshrl.u32 %v2339_v34, 5  ;;  %v2343_v45 = vshrl.u32 %v9657_v25, %v2342_v15 }
 0x5eb   : > { %v2496_v37 = vsub.s32 0, %v8516_v43  ;;  %v3442_v47 = vmul.f32 %v8387_v62, %v3378_v5  ;;  %vm2219_vm15 = vcmp.eq.s32.totalorder %v8506_v51, 2  ;;  %v2350_v30 = vshll.u32 %v9638_v6, %v2341_v11 }
 0x5ec   : > { %v2351_v46 = vshrl.u32 %v9644_v7, %v2342_v15  ;;  %v2353_v59 = vshll.u32 %v9644_v7, %v2341_v11  ;;  %vm2216_vm6 = vcmp.eq.s32.totalorder %v8506_v51, 0  ;;  %v2346_v52 = vor.u32 %v2345_v38, %v2344_v0 }
 0x5ed   : > { %v5225_v53 = vmin.u32 %v2496_v37, %v8516_v43  ;;  %v2349_v14 = vor.u32 %v2348_v3, %v2347_v9  ;;  %v5232_v56 = vadd.s32 4294967169, %v2640_v58  ;;  %v3506_v18 = vmul.f32 %v8392_v48, %v3442_v47 }
 0x5ee   : > { %vm2215_vm7 = vcmp.lt.s32.totalorder %v8506_v51, 2  ;;  %v2352_v62 = vor.u32 %v2351_v46, %v2350_v30  ;;  %v2354_v41 = vshrl.u32 %v9645_v13, %v2342_v15  ;;  %v2356_v63 = vshll.u32 %v9645_v13, %v2341_v11 }
 0x5ef   : > { %vm2213_vm8 = vweird.f32 %v8215_v2  ;;  %v2498_v10 = vclz %v5225_v53  ;;  %v2357_v8 = vshrl.u32 %v9646_v31, %v2342_v15  ;;  %vm2359_vm9 = vcmp.lt.s32.totalorder %v2340_v54, 1  ;;  %4235 = vperm.xlu1 %6421, %v3506_v18  }
 0x5f0   : > { %vm2360_vm10 = vcmp.lt.s32.totalorder %v2340_v54, 2  ;;  %v2355_v61 = vor.u32 %v2354_v41, %v2353_v59  ;;  %vm2361_vm11 = vcmp.lt.s32.totalorder %v2340_v54, 3  ;;  %vm2362_vm12 = vcmp.lt.s32.totalorder %v2340_v54, 4 }
 0x5f1   : > { %v2363_v34 = vsel %vm2359_vm9, %v2343_v45, %v2346_v52  ;;  %v5226_v48 = vadd.s32 4294967294, %v2498_v10  ;;  %v2358_v36 = vor.u32 %v2357_v8, %v2356_v63  ;;  %v2364_v17 = vsel %vm2362_vm12, %v2352_v62, 2102212464 }
 0x5f2   : > { %v2367_v35 = vsel %vm2359_vm9, %v2346_v52, %v2349_v14  ;;  %v2365_v32 = vsel %vm2361_vm11, %v2349_v14, %v2364_v17  ;;  %v2368_v57 = vsel %vm2362_vm12, %v2355_v61, 920167782  ;;  %v2371_v11 = vsel %vm2359_vm9, %v2349_v14, %v2352_v62 }
 0x5f3   : > { %v2636_v22 = vand.u32 2147483647, %v8479_v24  ;;  %vm5227_vm13 = vcmp.lt.s32.totalorder %v5226_v48, 0  ;;  %v2369_v19 = vsel %vm2361_vm11, %v2352_v62, %v2368_v57  ;;  %v2372_v42 = vsel %vm2362_vm12, %v2358_v36, 1326507024  ;;  %v6507_v29 = vpop.eup %6506 }
 0x5f4   : > { %v2646_v15 = vadd.s32 1, %v5232_v56  ;;  %v2501_v55 = vsel %vm5227_vm13, 0, %v5226_v48  ;;  %v2366_v58 = vsel %vm2360_vm10, %v2363_v34, %v2365_v32  ;;  %v2370_v26 = vsel %vm2360_vm10, %v2367_v35, %v2369_v19  ;;  %v6509_v0 = vpop.eup %6508 }
 0x5f5   : > { %v2373_v39 = vsel %vm2361_vm11, %v2355_v61, %v2372_v42  ;;  %v2220_v9 = vxor.u32 2147483648, %v6507_v29  ;;  %v2502_v44 = vsub.s32 32, %v2501_v55  ;;  %v2503_v38 = vshll.u32 %v8516_v43, %v2501_v55 }
 0x5f6   : > { %v2506_v3 = vsub.s32 4294967266, %v2501_v55  ;;  %v2217_v5 = vxor.u32 2147483648, %v6509_v0  ;;  %v2374_v37 = vsel %vm2360_vm10, %v2371_v11, %v2373_v39  ;;  %vm2647_vm14 = vcmp.gt.s32.totalorder %v2646_v15, 0 }
 0x5f7   : > { %v8548_v45 = vmul.u32.u64.low %v8522_v4, %v2370_v26  ;;  %v8549_v47 = vmul.u32.u64.high %v8522_v4, %v2370_v26, %v8548_v45  ;;  %v2221_v30 = vsel %vm2219_vm15, %v2220_v9, %v6509_v0  ;;  %v2504_v46 = vshrl.u32 %v2486_v21, %v2502_v44 }
 0x5f8   : > { %v2507_v59 = vadd.s32 127, %v2506_v3  ;;  %v2218_v53 = vsel %vm2216_vm6, %v6507_v29, %v2217_v5  ;;  %v8557_v43 = vmul.u32.u64.low %v8522_v4, %v2374_v37  ;;  %v8558_v52 = vmul.u32.u64.high %v8522_v4, %v2374_v37, %v8557_v43 }
 0x5f9   : > { %v2648_v54 = vsel %vm2647_vm14, %v2646_v15, 0  ;;  %v2222_v14 = vsel %vm2215_vm7, %v2218_v53, %v2221_v30  ;;  %vm8564_vm1 = vcmp.le.f32.partialorder %v2430_v60, 0.7853982  ;;  %vm2432_vm2 = vcmp.lt.s32.totalorder %v8296_v23, 0 }
 0x5fa   : > { %v2505_v21 = vor.u32 %v2504_v46, %v2503_v38  ;;  %v2508_v18 = vshll.u32 %v2507_v59, 23  ;;  %v2223_v62 = vsel %vm2213_vm8, nan, %v2222_v14  ;;  %v2382_v41 = vmul.u32 %v8522_v4, %v2366_v58 }
 0x5fb   : > { %v2385_v63 = vadd.s32 1, %v8549_v47  ;;  %v2650_v10 = vand.u32 31, %v2648_v54  ;;  %v3361_v51 = vadd.f32 1.0, %v2223_v62  ;;  %v2643_v60 = vand.u32 8388607, %v2636_v22 }
 0x5fc   : > { %v2509_v8 = vor.u32 4788187, %v2508_v18  ;;  %v2512_v61 = vcvt.s32.f32 %v2505_v21  ;;  %v2516_v34 = vsub.s32 4, %v8501_v49  ;;  %vm2384_vm3 = vc.u32 %v8558_v52, %v8548_v45 }
 0x5fd   : > { %v2649_v48 = vshrl.u32 %v2648_v54, 5  ;;  %v2651_v36 = vsub.s32 32, %v2650_v10  ;;  %v3377_v2 = vmul.f32 0.5, %v3361_v51  ;;  %v2386_v4 = vsel %vm2384_vm3, %v2385_v63, %v8549_v47 }
 0x5fe   : > { %v2510_v17 = vand.u32 2147483647, %v2509_v8  ;;  %v2653_v35 = vshll.u32 %v9657_v25, %v2650_v10  ;;  %v2387_v32 = vadd.s32 %v2386_v4, %v2382_v41  ;;  %v2656_v11 = vshll.u32 %v9658_v20, %v2650_v10  ;;  %v8614_v4 = vld [vmem:[%s7033_s29 + $0x40] sm:$0xff] }
 0x5ff   : > { %v2654_v57 = vshrl.u32 %v9658_v20, %v2651_v36  ;;  %v2657_v19 = vshrl.u32 %v9638_v6, %v2651_v36  ;;  %v3441_v42 = vmul.f32 %v8494_v27, %v3377_v2  ;;  %v2659_v29 = vshll.u32 %v9638_v6, %v2650_v10 }
 0x600   : > { %v2513_v15 = vmul.f32 %v2512_v61, %v2510_v17  ;;  %v2660_v55 = vshrl.u32 %v9644_v7, %v2651_v36  ;;  %v2517_v58 = vsel %vm2432_vm2, %v2516_v34, %v8501_v49  ;;  %v2388_v26 = vadd.s32 536870912, %v2387_v32 }
 0x601   : > { %v2644_v39 = vor.u32 8388608, %v2643_v60  ;;  %v2662_v0 = vshll.u32 %v9644_v7, %v2650_v10  ;;  %v3505_v9 = vmul.f32 %v8499_v28, %v3441_v42  ;;  %v2655_v38 = vor.u32 %v2654_v57, %v2653_v35 }
 0x602   : > { %v2514_v44 = vxor.u32 2147483648, %v2513_v15  ;;  %v2663_v3 = vshrl.u32 %v9645_v13, %v2651_v36  ;;  %v8592_v27 = vshrl.u32 %v2388_v26, 30  ;;  %v2658_v5 = vor.u32 %v2657_v19, %v2656_v11 }
 0x603   : > { %v2665_v37 = vshll.u32 %v9645_v13, %v2650_v10  ;;  %v2666_v47 = vshrl.u32 %v9646_v31, %v2651_v36  ;;  %4230 = vperm.xlu0 %6420, %v3505_v9   ;;  %v2661_v30 = vor.u32 %v2660_v55, %v2659_v29  ;;  %vm2668_vm4 = vcmp.lt.s32.totalorder %v2649_v48, 1 }
 0x604   : > { %v2515_v49 = vsel %vm2432_vm2, %v2514_v44, %v2513_v15  ;;  %v2664_v46 = vor.u32 %v2663_v3, %v2662_v0  ;;  %v2390_v59 = vshll.u32 %v8592_v27, 30  ;;  %vm2671_vm5 = vcmp.lt.s32.totalorder %v2649_v48, 4 }
 0x605   : > { %v2518_v28 = vsel %vm8564_vm1, %v8296_v23, %v2515_v49  ;;  %v2667_v53 = vor.u32 %v2666_v47, %v2665_v37  ;;  %v2652_v43 = vshrl.u32 %v9657_v25, %v2651_v36  ;;  %vm2669_vm0 = vcmp.lt.s32.totalorder %v2649_v48, 2 }
 0x606   : > { %6510 = vcosq.f32 %v2518_v28  ;;  %vm2670_vm15 = vcmp.lt.s32.totalorder %v2649_v48, 3  ;;  %v8603_v54 = vsub.s32 %v2387_v32, %v2390_v59  ;;  %v2673_v14 = vsel %vm2671_vm5, %v2661_v30, 2102212464 }
 0x607   : > { %6512 = vsinq.f32 %v2518_v28  ;;  %v2676_v21 = vsel %vm2668_vm4, %v2655_v38, %v2658_v5  ;;  %v2519_v18 = vsel %vm8564_vm1, 0, %v2517_v58  ;;  %v2677_v62 = vsel %vm2671_vm5, %v2664_v46, 920167782 }
 0x608   : > { %v2684_v41 = vshll.u32 %v2644_v39, 8  ;;  %v2393_v63 = vsub.s32 0, %v8603_v54  ;;  %v2678_v10 = vsel %vm2670_vm15, %v2661_v30, %v2677_v62  ;;  %v2680_v51 = vsel %vm2668_vm4, %v2658_v5, %v2661_v30 }
 0x609   : > { %v2681_v8 = vsel %vm2671_vm5, %v2667_v53, 1326507024  ;;  %v2672_v61 = vsel %vm2668_vm4, %v2652_v43, %v2655_v38  ;;  %v2674_v60 = vsel %vm2670_vm15, %v2658_v5, %v2673_v14  ;;  %v2679_v34 = vsel %vm2669_vm0, %v2676_v21, %v2678_v10 }
 0x60a   : > { %v2682_v36 = vsel %vm2670_vm15, %v2664_v46, %v2681_v8  ;;  %v2523_v2 = vand.u32 3, %v2519_v18  ;;  %v5221_v17 = vmin.u32 %v2393_v63, %v8603_v54  ;;  %v2675_v11 = vsel %vm2669_vm0, %v2672_v61, %v2674_v60 }
 0x60b   : > { %v2683_v56 = vsel %vm2669_vm0, %v2680_v51, %v2682_v36  ;;  %v8617_v35 = vmul.u32.u64.low %v2684_v41, %v2679_v34  ;;  %v8618_v32 = vmul.u32.u64.high %v2684_v41, %v2679_v34, %v8617_v35  ;;  %vm2522_vm6 = vweird.f32 %v8296_v23 }
 0x60c   : > { %v2395_v57 = vclz %v5221_v17  ;;  %v8622_v19 = vmul.u32.u64.low %v2684_v41, %v2683_v56  ;;  %v8623_v42 = vmul.u32.u64.high %v2684_v41, %v2683_v56, %v8622_v19  ;;  %vm3396_vm7 = vcmp.le.f32.partialorder %v8278_v50, 10.0 }
 0x60d   : > { %v8628_v15 = vmul.f32 0.31415927, %v8614_v4  ;;  %vm2524_vm8 = vcmp.lt.s32.totalorder %v2523_v2, 2  ;;  %vm2525_vm9 = vcmp.eq.s32.totalorder %v2523_v2, 0  ;;  %vm2528_vm10 = vcmp.eq.s32.totalorder %v2523_v2, 2 }
 0x60e   : > { %v5222_v29 = vadd.s32 4294967294, %v2395_v57  ;;  %v2383_v58 = vadd.s32 %v8548_v45, %v8558_v52  ;;  %v2691_v48 = vmul.u32 %v2684_v41, %v2675_v11  ;;  %v2694_v26 = vadd.s32 1, %v8618_v32  ;;  %v8670_v11 = vld [vmem:[%s7033_s29 + $0x58] sm:$0xff] }
 0x60f   : > { %v2536_v39 = vand.u32 2139095040, %v8628_v15  ;;  %v2413_v44 = vsub.s32 4, %v8592_v27  ;;  %vm2693_vm12 = vc.u32 %v8623_v42, %v8617_v35  ;;  %v2533_v37 = vand.u32 2147483647, %v8628_v15 }
 0x610   : > { %v6511_v55 = vpop.eup %6510  ;;  %vm5223_vm11 = vcmp.lt.s32.totalorder %v5222_v29, 0  ;;  %v2695_v5 = vsel %vm2693_vm12, %v2694_v26, %v8618_v32  ;;  %vm3460_vm13 = vcmp.ge.f32.partialorder %v8278_v50, 0.0  ;;  %vm2329_vm14 = vcmp.lt.s32.totalorder %v8415_v33, 0 }
 0x611   : > { %v6513_v0 = vpop.eup %6512  ;;  %v2529_v9 = vxor.u32 2147483648, %v6511_v55  ;;  %v2398_v3 = vsel %vm5223_vm11, 0, %v5222_v29  ;;  %v2696_v46 = vadd.s32 %v2695_v5, %v2691_v48  ;;  %v2537_v28 = vshrl.u32 %v2536_v39, 23 }
 0x612   : > { %v2526_v38 = vxor.u32 2147483648, %v6513_v0  ;;  %v2399_v52 = vsub.s32 32, %v2398_v3  ;;  %v2400_v47 = vshll.u32 %v8603_v54, %v2398_v3  ;;  %v2403_v49 = vsub.s32 4294967266, %v2398_v3 }
 0x613   : > { %v2530_v45 = vsel %vm2528_vm10, %v2529_v9, %v6513_v0  ;;  %v2697_v21 = vadd.s32 536870912, %v2696_v46  ;;  %v5228_v18 = vadd.s32 4294967169, %v2537_v28  ;;  %v2540_v54 = vand.u32 8388607, %v2533_v37 }
 0x614   : > { %v2527_v30 = vsel %vm2525_vm9, %v6511_v55, %v2526_v38  ;;  %v2401_v53 = vshrl.u32 %v2383_v58, %v2399_v52  ;;  %v2404_v43 = vadd.s32 127, %v2403_v49  ;;  %v2414_v10 = vsel %vm2329_vm14, %v2413_v44, %v8592_v27 }
 0x615   : > { %v2531_v59 = vsel %vm2524_vm8, %v2527_v30, %v2530_v45  ;;  %v5267_v51 = vsel %vm3396_vm7, 1.0, %v9656_v12  ;;  %v5283_v23 = vsel %vm3460_vm13, 1.0, %v9656_v12  ;;  %v8658_v8 = vshrl.u32 %v2697_v21, 30 }
 0x616   : > { %v2532_v14 = vsel %vm2522_vm6, nan, %v2531_v59  ;;  %v2402_v41 = vor.u32 %v2401_v53, %v2400_v47  ;;  %v2405_v63 = vshll.u32 %v2404_v43, 23  ;;  %v2543_v61 = vadd.s32 1, %v5228_v18 }
 0x617   : > { %v3364_v62 = vadd.f32 1.0, %v2532_v14  ;;  %vm8662_vm1 = vcmp.le.f32.partialorder %v2327_v1, 0.7853982  ;;  %v2699_v17 = vshll.u32 %v8658_v8, 30  ;;  %v2541_v56 = vor.u32 8388608, %v2540_v54 }
 0x618   : > { %v2406_v27 = vor.u32 4788187, %v2405_v63  ;;  %v2409_v36 = vcvt.s32.f32 %v2402_v41  ;;  %v2416_v2 = vsel %vm8662_vm1, 0, %v2414_v10  ;;  %vm2544_vm2 = vcmp.gt.s32.totalorder %v2543_v61, 0 }
 0x619   : > { %v3380_v60 = vmul.f32 0.5, %v3364_v62  ;;  %v2545_v57 = vsel %vm2544_vm2, %v2543_v61, 0  ;;  %v8672_v19 = vsub.s32 %v2696_v46, %v2699_v17  ;;  %v8674_v58 = vand.u32 3, %v2416_v2 }
 0x61a   : > { %v2407_v32 = vand.u32 2147483647, %v2406_v27  ;;  %v2547_v1 = vand.u32 31, %v2545_v57  ;;  %v2692_v48 = vadd.s32 %v8617_v35, %v8623_v42  ;;  %v8679_v0 = vshll.u32 %v2541_v56, 8 }
 0x61b   : > { %v3444_v50 = vmul.f32 %v5267_v51, %v3380_v60  ;;  %v2702_v26 = vsub.s32 0, %v8672_v19  ;;  %v8682_v9 = vmul.f32 0.31415927, %v8670_v11  ;;  %v2722_v38 = vsub.s32 4, %v8658_v8 }
 0x61c   : > { %v2410_v55 = vmul.f32 %v2409_v36, %v2407_v32  ;;  %v2548_v39 = vsub.s32 32, %v2547_v1  ;;  %v2550_v3 = vshll.u32 %v9657_v25, %v2547_v1  ;;  %v2553_v5 = vshll.u32 %v9658_v20, %v2547_v1 }
 0x61d   : > { %v3508_v29 = vmul.f32 %v5283_v23, %v3444_v50  ;;  %v5233_v45 = vmin.u32 %v2702_v26, %v8672_v19  ;;  %v2546_v52 = vshrl.u32 %v2545_v57, 5  ;;  %v2556_v35 = vshll.u32 %v9638_v6, %v2547_v1 }
 0x61e   : > { %v2411_v44 = vxor.u32 2147483648, %v2410_v55  ;;  %v2559_v42 = vshll.u32 %v9644_v7, %v2547_v1  ;;  %v2549_v49 = vshrl.u32 %v9657_v25, %v2548_v39  ;;  %v2551_v30 = vshrl.u32 %v9658_v20, %v2548_v39 }
 0x61f   : > { %4245 = vperm.xlu1 %6421, %v3508_v29   ;;  %v2554_v46 = vshrl.u32 %v9638_v6, %v2548_v39  ;;  %v2704_v59 = vclz %v5233_v45  ;;  %v2557_v53 = vshrl.u32 %v9644_v7, %v2548_v39  ;;  %v2560_v43 = vshrl.u32 %v9645_v13, %v2548_v39 }
 0x620   : > { %v2412_v47 = vsel %vm2329_vm14, %v2411_v44, %v2410_v55  ;;  %v2552_v14 = vor.u32 %v2551_v30, %v2550_v3  ;;  %v2562_v18 = vshll.u32 %v9645_v13, %v2547_v1  ;;  %v2563_v63 = vshrl.u32 %v9646_v31, %v2548_v39 }
 0x621   : > { %v2415_v28 = vsel %vm8662_vm1, %v8415_v33, %v2412_v47  ;;  %v2555_v21 = vor.u32 %v2554_v46, %v2553_v5  ;;  %v5234_v54 = vadd.s32 4294967294, %v2704_v59  ;;  %v2558_v62 = vor.u32 %v2557_v53, %v2556_v35 }
 0x622   : > { %6514 = vcosq.f32 %v2415_v28  ;;  %v2561_v41 = vor.u32 %v2560_v43, %v2559_v42  ;;  %vm2565_vm3 = vcmp.lt.s32.totalorder %v2546_v52, 1  ;;  %vm2566_vm4 = vcmp.lt.s32.totalorder %v2546_v52, 2 }
 0x623   : > { %6516 = vsinq.f32 %v2415_v28  ;;  %vm2567_vm5 = vcmp.lt.s32.totalorder %v2546_v52, 3  ;;  %vm5235_vm0 = vcmp.lt.s32.totalorder %v5234_v54, 0  ;;  %vm2568_vm15 = vcmp.lt.s32.totalorder %v2546_v52, 4 }
 0x624   : > { %v2569_v10 = vsel %vm2565_vm3, %v2549_v49, %v2552_v14  ;;  %v2573_v51 = vsel %vm2565_vm3, %v2552_v14, %v2555_v21  ;;  %vm2638_vm6 = vcmp.lt.s32.totalorder %v8479_v24, 0  ;;  %v2707_v23 = vsel %vm5235_vm0, 0, %v5234_v54 }
 0x625   : > { %v2564_v61 = vor.u32 %v2563_v63, %v2562_v18  ;;  %v2570_v60 = vsel %vm2568_vm15, %v2558_v62, 2102212464  ;;  %v2574_v34 = vsel %vm2568_vm15, %v2561_v41, 920167782  ;;  %vm2419_vm7 = vweird.f32 %v8415_v33 }
 0x626   : > { %v2708_v27 = vsub.s32 32, %v2707_v23  ;;  %v2709_v36 = vshll.u32 %v8672_v19, %v2707_v23  ;;  %v2712_v2 = vsub.s32 4294967266, %v2707_v23  ;;  %v2571_v17 = vsel %vm2567_vm5, %v2555_v21, %v2570_v60 }
 0x627   : > { %v2575_v56 = vsel %vm2567_vm5, %v2558_v62, %v2574_v34  ;;  %v2577_v50 = vsel %vm2565_vm3, %v2555_v21, %v2558_v62  ;;  %v2578_v32 = vsel %vm2568_vm15, %v2564_v61, 1326507024  ;;  %v2845_v57 = vand.u32 2139095040, %v8682_v9 }
 0x628   : > { %vm3395_vm8 = vcmp.le.f32.partialorder %v8404_v40, 10.0  ;;  %v2710_v1 = vshrl.u32 %v2692_v48, %v2708_v27  ;;  %v2713_v29 = vadd.s32 127, %v2712_v2  ;;  %v2576_v55 = vsel %vm2566_vm4, %v2573_v51, %v2575_v56 }
 0x629   : > { %v2579_v26 = vsel %vm2567_vm5, %v2561_v41, %v2578_v32  ;;  %v2572_v19 = vsel %vm2566_vm4, %v2569_v10, %v2571_v17  ;;  %v8717_v44 = vmul.u32.u64.low %v8679_v0, %v2576_v55  ;;  %v8718_v3 = vmul.u32.u64.high %v8679_v0, %v2576_v55, %v8717_v44  ;;  %v8773_v55 = vld [vmem:[%s7033_s29 + $0x50] sm:$0xff] }
 0x62a   : > { %v2580_v39 = vsel %vm2566_vm4, %v2577_v50, %v2579_v26  ;;  %v2711_v5 = vor.u32 %v2710_v1, %v2709_v36  ;;  %v2714_v45 = vshll.u32 %v2713_v29, 23  ;;  %vm2421_vm9 = vcmp.lt.s32.totalorder %v8674_v58, 2 }
 0x62b   : > { %v8722_v35 = vmul.u32.u64.low %v8679_v0, %v2580_v39  ;;  %v8723_v42 = vmul.u32.u64.high %v8679_v0, %v2580_v39, %v8722_v35  ;;  %vm2422_vm10 = vcmp.eq.s32.totalorder %v8674_v58, 0  ;;  %vm2425_vm11 = vcmp.eq.s32.totalorder %v8674_v58, 2 }
 0x62c   : > { %v6515_v48 = vpop.eup %6514  ;;  %v2846_v52 = vshrl.u32 %v2845_v57, 23  ;;  %v2715_v30 = vor.u32 4788187, %v2714_v45  ;;  %v2718_v46 = vcvt.s32.f32 %v2711_v5  ;;  %v2588_v28 = vmul.u32 %v8679_v0, %v2572_v19 }
 0x62d   : > { %v6517_v47 = vpop.eup %6516  ;;  %v2426_v49 = vxor.u32 2147483648, %v6515_v48  ;;  %v2591_v53 = vadd.s32 1, %v8718_v3  ;;  %v2842_v43 = vand.u32 2147483647, %v8682_v9  ;;  %v2723_v54 = vsel %vm2638_vm6, %v2722_v38, %v8658_v8 }
 0x62e   : > { %v2423_v59 = vxor.u32 2147483648, %v6517_v47  ;;  %v5240_v14 = vadd.s32 4294967169, %v2846_v52  ;;  %v2716_v18 = vand.u32 2147483647, %v2715_v30  ;;  %vm2590_vm12 = vc.u32 %v8723_v42, %v8717_v44 }
 0x62f   : > { %v2427_v21 = vsel %vm2425_vm11, %v2426_v49, %v6517_v47  ;;  %vm3459_vm13 = vcmp.ge.f32.partialorder %v8404_v40, 0.0  ;;  %v2592_v62 = vsel %vm2590_vm12, %v2591_v53, %v8718_v3  ;;  %vm8746_vm14 = vcmp.le.f32.partialorder %v2636_v22, 0.7853982 }
 0x630   : > { %v2424_v0 = vsel %vm2422_vm10, %v6515_v48, %v2423_v59  ;;  %v2852_v41 = vadd.s32 1, %v5240_v14  ;;  %v2719_v8 = vmul.f32 %v2718_v46, %v2716_v18  ;;  %v2593_v38 = vadd.s32 %v2592_v62, %v2588_v28 }
 0x631   : > { %v2428_v63 = vsel %vm2421_vm9, %v2424_v0, %v2427_v21  ;;  %v2725_v23 = vsel %vm8746_vm14, 0, %v2723_v54  ;;  %v2849_v61 = vand.u32 8388607, %v2842_v43  ;;  %v5266_v27 = vsel %vm3395_vm8, 1.0, %v9656_v12 }
 0x632   : > { %v2429_v51 = vsel %vm2419_vm7, nan, %v2428_v63  ;;  %vm2853_vm1 = vcmp.gt.s32.totalorder %v2852_v41, 0  ;;  %v2720_v60 = vxor.u32 2147483648, %v2719_v8  ;;  %v2594_v34 = vadd.s32 536870912, %v2593_v38 }
 0x633   : > { %v3363_v58 = vadd.f32 1.0, %v2429_v51  ;;  %v2854_v22 = vsel %vm2853_vm1, %v2852_v41, 0  ;;  %v5282_v33 = vsel %vm3459_vm13, 1.0, %v9656_v12  ;;  %v8764_v56 = vand.u32 3, %v2725_v23 }
 0x634   : > { %v2856_v36 = vand.u32 31, %v2854_v22  ;;  %v2721_v17 = vsel %vm2638_vm6, %v2720_v60, %v2719_v8  ;;  %v8766_v50 = vshrl.u32 %v2594_v34, 30  ;;  %v2850_v57 = vor.u32 8388608, %v2849_v61 }
 0x635   : > { %v3379_v2 = vmul.f32 0.5, %v3363_v58  ;;  %v2724_v32 = vsel %vm8746_vm14, %v8479_v24, %v2721_v17  ;;  %v2855_v39 = vshrl.u32 %v2854_v22, 5  ;;  %v8783_v52 = vmul.f32 0.31415927, %v8773_v55 }
 0x636   : > { %v2857_v1 = vsub.s32 32, %v2856_v36  ;;  %v2859_v29 = vshll.u32 %v9657_v25, %v2856_v36  ;;  %6518 = vcosq.f32 %v2724_v32  ;;  %v2596_v26 = vshll.u32 %v8766_v50, 30 }
 0x637   : > { %v3443_v40 = vmul.f32 %v5266_v27, %v3379_v2  ;;  %v2862_v19 = vshll.u32 %v9658_v20, %v2856_v36  ;;  %6520 = vsinq.f32 %v2724_v32  ;;  %v2865_v48 = vshll.u32 %v9638_v6, %v2856_v36 }
 0x638   : > { %v2860_v3 = vshrl.u32 %v9658_v20, %v2857_v1  ;;  %v2863_v5 = vshrl.u32 %v9638_v6, %v2857_v1  ;;  %v8779_v35 = vsub.s32 %v2593_v38, %v2596_v26  ;;  %vm2731_vm2 = vcmp.eq.s32.totalorder %v8764_v56, 0 }
 0x639   : > { %v3507_v45 = vmul.f32 %v5282_v33, %v3443_v40  ;;  %vm2734_vm3 = vcmp.eq.s32.totalorder %v8764_v56, 2  ;;  %v2858_v47 = vshrl.u32 %v9657_v25, %v2857_v1  ;;  %v2866_v30 = vshrl.u32 %v9644_v7, %v2857_v1 }
 0x63a   : > { %v2861_v49 = vor.u32 %v2860_v3, %v2859_v29  ;;  %vm2730_vm4 = vcmp.lt.s32.totalorder %v8764_v56, 2  ;;  %v2599_v46 = vsub.s32 0, %v8779_v35  ;;  %v2864_v28 = vor.u32 %v2863_v5, %v2862_v19 }
 0x63b   : > { %4240 = vperm.xlu0 %6420, %v3507_v45   ;;  %v2868_v59 = vshll.u32 %v9644_v7, %v2856_v36  ;;  %v2869_v53 = vshrl.u32 %v9645_v13, %v2857_v1  ;;  %vm2728_vm5 = vweird.f32 %v8479_v24  ;;  %v2867_v14 = vor.u32 %v2866_v30, %v2865_v48 }
 0x63c   : > { %v2871_v21 = vshll.u32 %v9645_v13, %v2856_v36  ;;  %v2872_v18 = vshrl.u32 %v9646_v31, %v2857_v1  ;;  %vm2874_vm0 = vcmp.lt.s32.totalorder %v2855_v39, 1  ;;  %v2589_v54 = vadd.s32 %v8717_v44, %v8723_v42 }
 0x63d   : > { %v5229_v0 = vmin.u32 %v2599_v46, %v8779_v35  ;;  %v2890_v62 = vshll.u32 %v2850_v57, 8  ;;  %v2742_v41 = vand.u32 2139095040, %v8783_v52  ;;  %v2870_v63 = vor.u32 %v2869_v53, %v2868_v59 }
 0x63e   : > { %v2873_v10 = vor.u32 %v2872_v18, %v2871_v21  ;;  %vm2875_vm15 = vcmp.lt.s32.totalorder %v2855_v39, 2  ;;  %vm2876_vm6 = vcmp.lt.s32.totalorder %v2855_v39, 3  ;;  %vm2877_vm7 = vcmp.lt.s32.totalorder %v2855_v39, 4 }
 0x63f   : > { %v2601_v8 = vclz %v5229_v0  ;;  %v2878_v38 = vsel %vm2874_vm0, %v2858_v47, %v2861_v49  ;;  %v2882_v51 = vsel %vm2874_vm0, %v2861_v49, %v2864_v28  ;;  %v2879_v23 = vsel %vm2877_vm7, %v2867_v14, 2102212464 }
 0x640   : > { %v2883_v61 = vsel %vm2877_vm7, %v2870_v63, 920167782  ;;  %v2886_v58 = vsel %vm2874_vm0, %v2864_v28, %v2867_v14  ;;  %v2887_v60 = vsel %vm2877_vm7, %v2873_v10, 1326507024  ;;  %v6519_v34 = vpop.eup %6518  ;;  %v2880_v44 = vsel %vm2876_vm6, %v2864_v28, %v2879_v23 }
 0x641   : > { %v5230_v22 = vadd.s32 4294967294, %v2601_v8  ;;  %v2884_v42 = vsel %vm2876_vm6, %v2867_v14, %v2883_v61  ;;  %v2888_v27 = vsel %vm2876_vm6, %v2870_v63, %v2887_v60  ;;  %v6521_v33 = vpop.eup %6520  ;;  %v2735_v36 = vxor.u32 2147483648, %v6519_v34 }
 0x642   : > { %v2881_v2 = vsel %vm2875_vm15, %v2878_v38, %v2880_v44  ;;  %v2885_v17 = vsel %vm2875_vm15, %v2882_v51, %v2884_v42  ;;  %v2889_v32 = vsel %vm2875_vm15, %v2886_v58, %v2888_v27  ;;  %v2732_v57 = vxor.u32 2147483648, %v6521_v33 }
 0x643   : > { %vm5231_vm8 = vcmp.lt.s32.totalorder %v5230_v22, 0  ;;  %v8803_v1 = vmul.u32.u64.low %v2890_v62, %v2889_v32  ;;  %v8804_v29 = vmul.u32.u64.high %v2890_v62, %v2889_v32, %v8803_v1  ;;  %v2736_v40 = vsel %vm2734_vm3, %v2735_v36, %v6521_v33 }
 0x644   : > { %v2604_v26 = vsel %vm5231_vm8, 0, %v5230_v22  ;;  %v8808_v19 = vmul.u32.u64.low %v2890_v62, %v2885_v17  ;;  %v8809_v3 = vmul.u32.u64.high %v2890_v62, %v2885_v17, %v8808_v19  ;;  %v2733_v5 = vsel %vm2731_vm2, %v6519_v34, %v2732_v57 }
 0x645   : > { %v2605_v45 = vsub.s32 32, %v2604_v26  ;;  %v2606_v39 = vshll.u32 %v8779_v35, %v2604_v26  ;;  %v2609_v48 = vsub.s32 4294967266, %v2604_v26  ;;  %v2737_v47 = vsel %vm2730_vm4, %v2733_v5, %v2736_v40 }
 0x646   : > { %vm3398_vm9 = vcmp.le.f32.partialorder %v8463_v16, 10.0  ;;  %vm3462_vm10 = vcmp.ge.f32.partialorder %v8463_v16, 0.0  ;;  %v2743_v49 = vshrl.u32 %v2742_v41, 23  ;;  %v2738_v30 = vsel %vm2728_vm5, nan, %v2737_v47 }
 0x647   : > { %v2607_v46 = vshrl.u32 %v2589_v54, %v2605_v45  ;;  %v2610_v28 = vadd.s32 127, %v2609_v48  ;;  %v2897_v59 = vmul.u32 %v2890_v62, %v2881_v2  ;;  %v3366_v53 = vadd.f32 1.0, %v2738_v30 }
 0x648   : > { %vm2899_vm11 = vc.u32 %v8804_v29, %v8808_v19  ;;  %v2900_v35 = vadd.s32 1, %v8809_v3  ;;  %v5236_v14 = vadd.s32 4294967169, %v2743_v49  ;;  %v5269_v56 = vsel %vm3398_vm9, 1.0, %v9656_v12 }
 0x649   : > { %v2608_v21 = vor.u32 %v2607_v46, %v2606_v39  ;;  %v2611_v18 = vshll.u32 %v2610_v28, 23  ;;  %v2619_v0 = vsub.s32 4, %v8766_v50  ;;  %v3382_v41 = vmul.f32 0.5, %v3366_v53  ;;  %v8865_v46 = vld [vmem:[%s7033_s29 + $0x68] sm:$0xff] }
 0x64a   : > { %v5285_v24 = vsel %vm3462_vm10, 1.0, %v9656_v12  ;;  %v2901_v54 = vsel %vm2899_vm11, %v2900_v35, %v8809_v3  ;;  %v2749_v62 = vadd.s32 1, %v5236_v14  ;;  %v2739_v38 = vand.u32 2147483647, %v8783_v52 }
 0x64b   : > { %v2612_v63 = vor.u32 4788187, %v2611_v18  ;;  %v2615_v10 = vcvt.s32.f32 %v2608_v21  ;;  %v2902_v8 = vadd.s32 %v2901_v54, %v2897_v59  ;;  %v3446_v51 = vmul.f32 %v5269_v56, %v3382_v41 }
 0x64c   : > { %vm2535_vm12 = vcmp.lt.s32.totalorder %v8628_v15, 0  ;;  %vm2750_vm13 = vcmp.gt.s32.totalorder %v2749_v62, 0  ;;  %vm8837_vm14 = vcmp.le.f32.partialorder %v2533_v37, 0.7853982  ;;  %v2746_v27 = vand.u32 8388607, %v2739_v38 }
 0x64d   : > { %v2613_v23 = vand.u32 2147483647, %v2612_v63  ;;  %v2620_v61 = vsel %vm2535_vm12, %v2619_v0, %v8766_v50  ;;  %v2903_v58 = vadd.s32 536870912, %v2902_v8  ;;  %v2751_v16 = vsel %vm2750_vm13, %v2749_v62, 0 }
 0x64e   : > { %v3510_v60 = vmul.f32 %v5285_v24, %v3446_v51  ;;  %v2753_v34 = vand.u32 31, %v2751_v16  ;;  %v2622_v50 = vsel %vm8837_vm14, 0, %v2620_v61  ;;  %v2747_v45 = vor.u32 8388608, %v2746_v27 }
 0x64f   : > { %v2616_v44 = vmul.f32 %v2615_v10, %v2613_v23  ;;  %v8841_v42 = vshrl.u32 %v2903_v58, 30  ;;  %v2752_v47 = vshrl.u32 %v2751_v16, 5  ;;  %v2626_v21 = vand.u32 3, %v2622_v50 }
 0x650   : > { %4255 = vperm.xlu1 %6421, %v3510_v60   ;;  %v2754_v33 = vsub.s32 32, %v2753_v34  ;;  %v2756_v36 = vshll.u32 %v9657_v25, %v2753_v34  ;;  %v2759_v17 = vshll.u32 %v9658_v20, %v2753_v34  ;;  %v2762_v32 = vshll.u32 %v9638_v6, %v2753_v34 }
 0x651   : > { %v2617_v2 = vxor.u32 2147483648, %v2616_v44  ;;  %v2905_v37 = vshll.u32 %v8841_v42, 30  ;;  %v2765_v26 = vshll.u32 %v9644_v7, %v2753_v34  ;;  %v2768_v14 = vshll.u32 %v9645_v13, %v2753_v34 }
 0x652   : > { %v2757_v57 = vshrl.u32 %v9658_v20, %v2754_v33  ;;  %v2760_v1 = vshrl.u32 %v9638_v6, %v2754_v33  ;;  %v2763_v40 = vshrl.u32 %v9644_v7, %v2754_v33  ;;  %v2766_v39 = vshrl.u32 %v9645_v13, %v2754_v33 }
 0x653   : > { %v2618_v3 = vsel %vm2535_vm12, %v2617_v2, %v2616_v44  ;;  %v8857_v5 = vsub.s32 %v2902_v8, %v2905_v37  ;;  %v2755_v49 = vshrl.u32 %v9657_v25, %v2754_v33  ;;  %v2769_v56 = vshrl.u32 %v9646_v31, %v2754_v33 }
 0x654   : > { %v2621_v48 = vsel %vm8837_vm14, %v8628_v15, %v2618_v3  ;;  %v2758_v30 = vor.u32 %v2757_v57, %v2756_v36  ;;  %v2761_v59 = vor.u32 %v2760_v1, %v2759_v17  ;;  %v2764_v53 = vor.u32 %v2763_v40, %v2762_v32 }
 0x655   : > { %6522 = vcosq.f32 %v2621_v48  ;;  %v2908_v28 = vsub.s32 0, %v8857_v5  ;;  %v2767_v35 = vor.u32 %v2766_v39, %v2765_v26  ;;  %v2787_v0 = vshll.u32 %v2747_v45, 8 }
 0x656   : > { %6524 = vsinq.f32 %v2621_v48  ;;  %v8872_v41 = vmul.f32 0.31415927, %v8865_v46  ;;  %v2770_v24 = vor.u32 %v2769_v56, %v2768_v14  ;;  %vm2771_vm1 = vcmp.lt.s32.totalorder %v2752_v47, 1 }
 0x657   : > { %v5241_v18 = vmin.u32 %v2908_v28, %v8857_v5  ;;  %vm2772_vm2 = vcmp.lt.s32.totalorder %v2752_v47, 2  ;;  %vm2773_vm3 = vcmp.lt.s32.totalorder %v2752_v47, 3  ;;  %vm2774_vm4 = vcmp.lt.s32.totalorder %v2752_v47, 4 }
 0x658   : > { %v2775_v62 = vsel %vm2771_vm1, %v2755_v49, %v2758_v30  ;;  %v2779_v63 = vsel %vm2771_vm1, %v2758_v30, %v2761_v59  ;;  %v2776_v10 = vsel %vm2774_vm4, %v2764_v53, 2102212464  ;;  %v2780_v8 = vsel %vm2774_vm4, %v2767_v35, 920167782 }
 0x659   : > { %v2910_v54 = vclz %v5241_v18  ;;  %v2783_v51 = vsel %vm2771_vm1, %v2761_v59, %v2764_v53  ;;  %v2784_v23 = vsel %vm2774_vm4, %v2770_v24, 1326507024  ;;  %vm3397_vm5 = vcmp.le.f32.partialorder %v8614_v4, 10.0 }
 0x65a   : > { %v2777_v58 = vsel %vm2773_vm3, %v2761_v59, %v2776_v10  ;;  %v2781_v16 = vsel %vm2773_vm3, %v2764_v53, %v2780_v8  ;;  %v2785_v60 = vsel %vm2773_vm3, %v2767_v35, %v2784_v23  ;;  %vm2625_vm0 = vweird.f32 %v8628_v15 }
 0x65b   : > { %v5242_v61 = vadd.s32 4294967294, %v2910_v54  ;;  %v2898_v34 = vadd.s32 %v8808_v19, %v8804_v29  ;;  %v2782_v22 = vsel %vm2772_vm2, %v2779_v63, %v2781_v16  ;;  %v2786_v44 = vsel %vm2772_vm2, %v2783_v51, %v2785_v60 }
 0x65c   : > { %v2778_v27 = vsel %vm2772_vm2, %v2775_v62, %v2777_v58  ;;  %v8881_v50 = vmul.u32.u64.low %v2787_v0, %v2786_v44  ;;  %v8882_v33 = vmul.u32.u64.high %v2787_v0, %v2786_v44, %v8881_v50  ;;  %vm3461_vm6 = vcmp.ge.f32.partialorder %v8614_v4, 0.0 }
 0x65d   : > { %vm5243_vm15 = vcmp.lt.s32.totalorder %v5242_v61, 0  ;;  %v8885_v2 = vmul.u32.u64.low %v2787_v0, %v2782_v22  ;;  %v8886_v37 = vmul.u32.u64.high %v2787_v0, %v2782_v22, %v8885_v2  ;;  %v3051_v17 = vand.u32 2139095040, %v8872_v41 }
 0x65e   : > { %v2913_v36 = vsel %vm5243_vm15, 0, %v5242_v61  ;;  %vm2631_vm7 = vcmp.eq.s32.totalorder %v2626_v21, 2  ;;  %vm2627_vm8 = vcmp.lt.s32.totalorder %v2626_v21, 2  ;;  %vm2628_vm9 = vcmp.eq.s32.totalorder %v2626_v21, 0 }
 0x65f   : > { %v6523_v29 = vpop.eup %6522  ;;  %v2914_v19 = vsub.s32 32, %v2913_v36  ;;  %v2915_v32 = vshll.u32 %v8857_v5, %v2913_v36  ;;  %v2918_v57 = vsub.s32 4294967266, %v2913_v36  ;;  %v3052_v26 = vshrl.u32 %v3051_v17, 23 }
 0x660   : > { %v6525_v1 = vpop.eup %6524  ;;  %v2632_v40 = vxor.u32 2147483648, %v6523_v29  ;;  %v2794_v48 = vmul.u32 %v2787_v0, %v2778_v27  ;;  %vm2796_vm10 = vc.u32 %v8882_v33, %v8885_v2  ;;  %v2797_v49 = vadd.s32 1, %v8886_v37 }
 0x661   : > { %v2629_v3 = vxor.u32 2147483648, %v6525_v1  ;;  %v2916_v45 = vshrl.u32 %v2898_v34, %v2914_v19  ;;  %v2919_v39 = vadd.s32 127, %v2918_v57  ;;  %v5248_v30 = vadd.s32 4294967169, %v3052_v26 }
 0x662   : > { %v2633_v47 = vsel %vm2631_vm7, %v2632_v40, %v6525_v1  ;;  %v2928_v53 = vsub.s32 4, %v8841_v42  ;;  %v2798_v14 = vsel %vm2796_vm10, %v2797_v49, %v8886_v37  ;;  %v3048_v56 = vand.u32 2147483647, %v8872_v41 }
 0x663   : > { %v2630_v28 = vsel %vm2628_vm9, %v6523_v29, %v2629_v3  ;;  %v2917_v59 = vor.u32 %v2916_v45, %v2915_v32  ;;  %v2920_v5 = vshll.u32 %v2919_v39, 23  ;;  %v3058_v18 = vadd.s32 1, %v5248_v30 }
 0x664   : > { %v2634_v35 = vsel %vm2627_vm8, %v2630_v28, %v2633_v47  ;;  %v2799_v62 = vadd.s32 %v2798_v14, %v2794_v48  ;;  %v5268_v10 = vsel %vm3397_vm5, 1.0, %v9656_v12  ;;  %vm2844_vm11 = vcmp.lt.s32.totalorder %v8682_v9, 0 }
 0x665   : > { %v2635_v0 = vsel %vm2625_vm0, nan, %v2634_v35  ;;  %v2921_v24 = vor.u32 4788187, %v2920_v5  ;;  %v2924_v54 = vcvt.s32.f32 %v2917_v59  ;;  %vm3059_vm12 = vcmp.gt.s32.totalorder %v3058_v18, 0 }
 0x666   : > { %v3365_v63 = vadd.f32 1.0, %v2635_v0  ;;  %v2929_v8 = vsel %vm2844_vm11, %v2928_v53, %v8841_v42  ;;  %v2800_v51 = vadd.s32 536870912, %v2799_v62  ;;  %v3060_v23 = vsel %vm3059_vm12, %v3058_v18, 0 }
 0x667   : > { %v2922_v21 = vand.u32 2147483647, %v2921_v24  ;;  %v3055_v61 = vand.u32 8388607, %v3048_v56  ;;  %v3062_v58 = vand.u32 31, %v3060_v23  ;;  %v5284_v16 = vsel %vm3461_vm6, 1.0, %v9656_v12 }
 0x668   : > { %v3381_v15 = vmul.f32 0.5, %v3365_v63  ;;  %vm8914_vm13 = vcmp.le.f32.partialorder %v2842_v43, 0.7853982  ;;  %v8918_v22 = vshrl.u32 %v2800_v51, 30  ;;  %v3061_v45 = vshrl.u32 %v3060_v23, 5  ;;  %v8950_v24 = vld [vmem:[%s7033_s29 + $0x60] sm:$0xff] }
 0x669   : > { %v2925_v34 = vmul.f32 %v2924_v54, %v2922_v21  ;;  %v2931_v44 = vsel %vm8914_vm13, 0, %v2929_v8  ;;  %v3063_v27 = vsub.s32 32, %v3062_v58  ;;  %v3065_v4 = vshll.u32 %v9657_v25, %v3062_v58 }
 0x66a   : > { %v3445_v42 = vmul.f32 %v5268_v10, %v3381_v15  ;;  %v2802_v36 = vshll.u32 %v8918_v22, 30  ;;  %v3068_v37 = vshll.u32 %v9658_v20, %v3062_v58  ;;  %v3056_v43 = vor.u32 8388608, %v3055_v61 }
 0x66b   : > { %v2926_v50 = vxor.u32 2147483648, %v2925_v34  ;;  %v3066_v29 = vshrl.u32 %v9658_v20, %v3063_v27  ;;  %v3069_v19 = vshrl.u32 %v9638_v6, %v3063_v27  ;;  %v3071_v1 = vshll.u32 %v9638_v6, %v3062_v58 }
 0x66c   : > { %v3509_v17 = vmul.f32 %v5284_v16, %v3445_v42  ;;  %v8929_v57 = vsub.s32 %v2799_v62, %v2802_v36  ;;  %v3072_v40 = vshrl.u32 %v9644_v7, %v3063_v27  ;;  %v8936_v3 = vand.u32 3, %v2931_v44 }
 0x66d   : > { %v2927_v32 = vsel %vm2844_vm11, %v2926_v50, %v2925_v34  ;;  %v3067_v48 = vor.u32 %v3066_v29, %v3065_v4  ;;  %v3070_v47 = vor.u32 %v3069_v19, %v3068_v37  ;;  %v3074_v49 = vshll.u32 %v9644_v7, %v3062_v58 }
 0x66e   : > { %4250 = vperm.xlu0 %6420, %v3509_v17   ;;  %v2930_v26 = vsel %vm8914_vm13, %v8682_v9, %v2927_v32  ;;  %v2805_v39 = vsub.s32 0, %v8929_v57  ;;  %v3075_v30 = vshrl.u32 %v9645_v13, %v3063_v27  ;;  %v3077_v28 = vshll.u32 %v9645_v13, %v3062_v58 }
 0x66f   : > { %6526 = vcosq.f32 %v2930_v26  ;;  %v2795_v59 = vadd.s32 %v8885_v2, %v8882_v33  ;;  %v3073_v53 = vor.u32 %v3072_v40, %v3071_v1  ;;  %v8945_v35 = vshll.u32 %v3056_v43, 8 }
 0x670   : > { %6528 = vsinq.f32 %v2930_v26  ;;  %v5237_v5 = vmin.u32 %v2805_v39, %v8929_v57  ;;  %v3064_v14 = vshrl.u32 %v9657_v25, %v3063_v27  ;;  %v3076_v18 = vor.u32 %v3075_v30, %v3074_v49 }
 0x671   : > { %v3078_v0 = vshrl.u32 %v9646_v31, %v3063_v27  ;;  %vm3080_vm14 = vcmp.lt.s32.totalorder %v3061_v45, 1  ;;  %vm2936_vm1 = vcmp.lt.s32.totalorder %v8936_v3, 2  ;;  %vm3081_vm2 = vcmp.lt.s32.totalorder %v3061_v45, 2 }
 0x672   : > { %v2807_v54 = vclz %v5237_v5  ;;  %vm3082_vm3 = vcmp.lt.s32.totalorder %v3061_v45, 3  ;;  %vm3083_vm4 = vcmp.lt.s32.totalorder %v3061_v45, 4  ;;  %vm2934_vm5 = vweird.f32 %v8682_v9 }
 0x673   : > { %v3079_v33 = vor.u32 %v3078_v0, %v3077_v28  ;;  %v3085_v2 = vsel %vm3083_vm4, %v3073_v53, 2102212464  ;;  %v3088_v62 = vsel %vm3080_vm14, %v3067_v48, %v3070_v47  ;;  %v3089_v63 = vsel %vm3083_vm4, %v3076_v18, 920167782 }
 0x674   : > { %v5238_v10 = vadd.s32 4294967294, %v2807_v54  ;;  %v3090_v21 = vsel %vm3082_vm3, %v3073_v53, %v3089_v63  ;;  %v3092_v8 = vsel %vm3080_vm14, %v3070_v47, %v3073_v53  ;;  %v8958_v51 = vmul.f32 0.31415927, %v8950_v24 }
 0x675   : > { %vm3400_vm0 = vcmp.le.f32.partialorder %v8670_v11, 10.0  ;;  %vm3464_vm15 = vcmp.ge.f32.partialorder %v8670_v11, 0.0  ;;  %v3084_v23 = vsel %vm3080_vm14, %v3064_v14, %v3067_v48  ;;  %v3086_v15 = vsel %vm3082_vm3, %v3070_v47, %v3085_v2 }
 0x676   : > { %v3091_v61 = vsel %vm3081_vm2, %v3088_v62, %v3090_v21  ;;  %v3093_v58 = vsel %vm3083_vm4, %v3079_v33, 1326507024  ;;  %vm5239_vm6 = vcmp.lt.s32.totalorder %v5238_v10, 0  ;;  %vm2937_vm7 = vcmp.eq.s32.totalorder %v8936_v3, 0 }
 0x677   : > { %v3094_v16 = vsel %vm3082_vm3, %v3076_v18, %v3093_v58  ;;  %v8967_v60 = vmul.u32.u64.low %v8945_v35, %v3091_v61  ;;  %v8968_v34 = vmul.u32.u64.high %v8945_v35, %v3091_v61, %v8967_v60  ;;  %vm2940_vm8 = vcmp.eq.s32.totalorder %v8936_v3, 2 }
 0x678   : > { %v2810_v42 = vsel %vm5239_vm6, 0, %v5238_v10  ;;  %v3095_v44 = vsel %vm3081_vm2, %v3092_v8, %v3094_v16  ;;  %v3087_v37 = vsel %vm3081_vm2, %v3084_v23, %v3086_v15  ;;  %v2948_v32 = vand.u32 2139095040, %v8958_v51 }
 0x679   : > { %v6527_v27 = vpop.eup %6526  ;;  %v2811_v50 = vsub.s32 32, %v2810_v42  ;;  %v2812_v36 = vshll.u32 %v8929_v57, %v2810_v42  ;;  %v2815_v4 = vsub.s32 4294967266, %v2810_v42  ;;  %v3106_v39 = vadd.s32 1, %v8968_v34  ;;  %v9019_v42 = vld [vmem:[%s7033_s29 + $0x78] sm:$0xff] }
 0x67a   : > { %v6529_v17 = vpop.eup %6528  ;;  %v2941_v43 = vxor.u32 2147483648, %v6527_v27  ;;  %v8977_v29 = vmul.u32.u64.low %v8945_v35, %v3095_v44  ;;  %v8978_v19 = vmul.u32.u64.high %v8945_v35, %v3095_v44, %v8977_v29  ;;  %v2825_v57 = vsub.s32 4, %v8918_v22 }
 0x67b   : > { %v2938_v1 = vxor.u32 2147483648, %v6529_v17  ;;  %v2813_v40 = vshrl.u32 %v2795_v59, %v2811_v50  ;;  %v2816_v26 = vadd.s32 127, %v2815_v4  ;;  %v3103_v45 = vmul.u32 %v8945_v35, %v3087_v37 }
 0x67c   : > { %v2942_v48 = vsel %vm2940_vm8, %v2941_v43, %v6529_v17  ;;  %v2949_v47 = vshrl.u32 %v2948_v32, 23  ;;  %vm2741_vm9 = vcmp.lt.s32.totalorder %v8783_v52, 0  ;;  %vm3105_vm10 = vc.u32 %v8978_v19, %v8967_v60 }
 0x67d   : > { %v2939_v49 = vsel %vm2937_vm7, %v6527_v27, %v2938_v1  ;;  %v2814_v30 = vor.u32 %v2813_v40, %v2812_v36  ;;  %v2817_v28 = vshll.u32 %v2816_v26, 23  ;;  %v2945_v5 = vand.u32 2147483647, %v8958_v51 }
 0x67e   : > { %v2943_v59 = vsel %vm2936_vm1, %v2939_v49, %v2942_v48  ;;  %v5244_v53 = vadd.s32 4294967169, %v2949_v47  ;;  %v3107_v0 = vsel %vm3105_vm10, %v3106_v39, %v8968_v34  ;;  %v2826_v33 = vsel %vm2741_vm9, %v2825_v57, %v8918_v22 }
 0x67f   : > { %v2944_v35 = vsel %vm2934_vm5, nan, %v2943_v59  ;;  %v2818_v14 = vor.u32 4788187, %v2817_v28  ;;  %v2821_v18 = vcvt.s32.f32 %v2814_v30  ;;  %v3108_v3 = vadd.s32 %v3107_v0, %v3103_v45 }
 0x680   : > { %v3368_v54 = vadd.f32 1.0, %v2944_v35  ;;  %v2955_v2 = vadd.s32 1, %v5244_v53  ;;  %v5271_v62 = vsel %vm3400_vm0, 1.0, %v9656_v12  ;;  %v5287_v9 = vsel %vm3464_vm15, 1.0, %v9656_v12 }
 0x681   : > { %v2819_v63 = vand.u32 2147483647, %v2818_v14  ;;  %vm9008_vm11 = vcmp.le.f32.partialorder %v2739_v38, 0.7853982  ;;  %v3109_v22 = vadd.s32 536870912, %v3108_v3  ;;  %v3104_v59 = vadd.s32 %v8967_v60, %v8978_v19 }
 0x682   : > { %v3384_v10 = vmul.f32 0.5, %v3368_v54  ;;  %vm2956_vm12 = vcmp.gt.s32.totalorder %v2955_v2, 0  ;;  %v2828_v23 = vsel %vm9008_vm11, 0, %v2826_v33  ;;  %v2952_v15 = vand.u32 8388607, %v2945_v5 }
 0x683   : > { %v2822_v8 = vmul.f32 %v2821_v18, %v2819_v63  ;;  %v2957_v61 = vsel %vm2956_vm12, %v2955_v2, 0  ;;  %v9016_v58 = vshrl.u32 %v3109_v22, 30  ;;  %v9021_v44 = vand.u32 3, %v2828_v23 }
 0x684   : > { %v3448_v11 = vmul.f32 %v5271_v62, %v3384_v10  ;;  %v2959_v16 = vand.u32 31, %v2957_v61  ;;  %v2953_v4 = vor.u32 8388608, %v2952_v15  ;;  %v2958_v32 = vshrl.u32 %v2957_v61, 5 }
 0x685   : > { %v2823_v34 = vxor.u32 2147483648, %v2822_v8  ;;  %v3111_v27 = vshll.u32 %v9016_v58, 30  ;;  %v9034_v1 = vmul.f32 0.31415927, %v9019_v42  ;;  %vm2837_vm13 = vcmp.eq.s32.totalorder %v9021_v44, 2 }
 0x686   : > { %v3512_v38 = vmul.f32 %v5287_v9, %v3448_v11  ;;  %v2960_v50 = vsub.s32 32, %v2959_v16  ;;  %v2962_v37 = vshll.u32 %v9657_v25, %v2959_v16  ;;  %v2965_v17 = vshll.u32 %v9658_v20, %v2959_v16 }
 0x687   : > { %v2824_v36 = vsel %vm2741_vm9, %v2823_v34, %v2822_v8  ;;  %v9031_v29 = vsub.s32 %v3108_v3, %v3111_v27  ;;  %v2968_v39 = vshll.u32 %v9638_v6, %v2959_v16  ;;  %v2971_v30 = vshll.u32 %v9644_v7, %v2959_v16 }
 0x688   : > { %4265 = vperm.xlu1 %6421, %v3512_v38   ;;  %v2827_v43 = vsel %vm9008_vm11, %v8783_v52, %v2824_v36  ;;  %v2963_v40 = vshrl.u32 %v9658_v20, %v2960_v50  ;;  %v2966_v26 = vshrl.u32 %v9638_v6, %v2960_v50  ;;  %v2961_v57 = vshrl.u32 %v9657_v25, %v2960_v50 }
 0x689   : > { %6530 = vcosq.f32 %v2827_v43  ;;  %v3114_v48 = vsub.s32 0, %v9031_v29  ;;  %v2969_v45 = vshrl.u32 %v9644_v7, %v2960_v50  ;;  %v2972_v28 = vshrl.u32 %v9645_v13, %v2960_v50 }
 0x68a   : > { %6532 = vsinq.f32 %v2827_v43  ;;  %v2964_v47 = vor.u32 %v2963_v40, %v2962_v37  ;;  %v2967_v49 = vor.u32 %v2966_v26, %v2965_v17  ;;  %vm2834_vm14 = vcmp.eq.s32.totalorder %v9021_v44, 0 }
 0x68b   : > { %v5249_v53 = vmin.u32 %v3114_v48, %v9031_v29  ;;  %v9049_v35 = vshll.u32 %v2953_v4, 8  ;;  %v3257_v14 = vand.u32 2139095040, %v9034_v1  ;;  %v2970_v18 = vor.u32 %v2969_v45, %v2968_v39 }
 0x68c   : > { %v2973_v0 = vor.u32 %v2972_v28, %v2971_v30  ;;  %v2974_v54 = vshll.u32 %v9645_v13, %v2959_v16  ;;  %v2975_v33 = vshrl.u32 %v9646_v31, %v2960_v50  ;;  %vm2831_vm1 = vweird.f32 %v8783_v52 }
 0x68d   : > { %v3116_v3 = vclz %v5249_v53  ;;  %vm2977_vm2 = vcmp.lt.s32.totalorder %v2958_v32, 1  ;;  %vm2978_vm3 = vcmp.lt.s32.totalorder %v2958_v32, 2  ;;  %vm2979_vm4 = vcmp.lt.s32.totalorder %v2958_v32, 3 }
 0x68e   : > { %v2976_v2 = vor.u32 %v2975_v33, %v2974_v54  ;;  %vm2980_vm5 = vcmp.lt.s32.totalorder %v2958_v32, 4  ;;  %v2981_v60 = vsel %vm2977_vm2, %v2961_v57, %v2964_v47  ;;  %v2985_v19 = vsel %vm2977_vm2, %v2964_v47, %v2967_v49 }
 0x68f   : > { %vm3399_vm0 = vcmp.le.f32.partialorder %v8773_v55, 10.0  ;;  %v5250_v62 = vadd.s32 4294967294, %v3116_v3  ;;  %v2982_v9 = vsel %vm2980_vm5, %v2970_v18, 2102212464  ;;  %v2986_v63 = vsel %vm2980_vm5, %v2973_v0, 920167782 }
 0x690   : > { %v2989_v10 = vsel %vm2977_vm2, %v2967_v49, %v2970_v18  ;;  %v2983_v21 = vsel %vm2979_vm4, %v2967_v49, %v2982_v9  ;;  %v2987_v22 = vsel %vm2979_vm4, %v2970_v18, %v2986_v63  ;;  %v2990_v8 = vsel %vm2980_vm5, %v2976_v2, 1326507024 }
 0x691   : > { %v3258_v23 = vshrl.u32 %v3257_v14, 23  ;;  %vm5251_vm15 = vcmp.lt.s32.totalorder %v5250_v62, 0  ;;  %v2984_v15 = vsel %vm2978_vm3, %v2981_v60, %v2983_v21  ;;  %v2988_v61 = vsel %vm2978_vm3, %v2985_v19, %v2987_v22 }
 0x692   : > { %v2991_v11 = vsel %vm2979_vm4, %v2973_v0, %v2990_v8  ;;  %v3119_v34 = vsel %vm5251_vm15, 0, %v5250_v62  ;;  %v9063_v27 = vmul.u32.u64.low %v9049_v35, %v2988_v61  ;;  %v9064_v50 = vmul.u32.u64.high %v9049_v35, %v2988_v61, %v9063_v27 }
 0x693   : > { %v6531_v16 = vpop.eup %6530  ;;  %v2992_v38 = vsel %vm2978_vm3, %v2989_v10, %v2991_v11  ;;  %v3120_v37 = vsub.s32 32, %v3119_v34  ;;  %v3121_v17 = vshll.u32 %v9031_v29, %v3119_v34  ;;  %v3124_v43 = vsub.s32 4294967266, %v3119_v34 }
 0x694   : > { %v6533_v36 = vpop.eup %6532  ;;  %v2838_v4 = vxor.u32 2147483648, %v6531_v16  ;;  %vm2833_vm6 = vcmp.lt.s32.totalorder %v9021_v44, 2  ;;  %v9070_v26 = vmul.u32.u64.low %v9049_v35, %v2992_v38  ;;  %v9071_v39 = vmul.u32.u64.high %v9049_v35, %v2992_v38, %v9070_v26 }
 0x695   : > { %v2835_v40 = vxor.u32 2147483648, %v6533_v36  ;;  %v3122_v48 = vshrl.u32 %v3104_v59, %v3120_v37  ;;  %v3125_v57 = vadd.s32 127, %v3124_v43  ;;  %v5256_v45 = vadd.s32 4294967169, %v3258_v23 }
 0x696   : > { %v2839_v32 = vsel %vm2837_vm13, %v2838_v4, %v6533_v36  ;;  %v3134_v49 = vsub.s32 4, %v9016_v58  ;;  %v3000_v29 = vmul.u32 %v9049_v35, %v2984_v15  ;;  %v3003_v30 = vadd.s32 1, %v9064_v50 }
 0x697   : > { %v2836_v47 = vsel %vm2834_vm14, %v6531_v16, %v2835_v40  ;;  %v3123_v53 = vor.u32 %v3122_v48, %v3121_v17  ;;  %v3126_v14 = vshll.u32 %v3125_v57, 23  ;;  %v3264_v18 = vadd.s32 1, %v5256_v45 }
 0x698   : > { %v2840_v28 = vsel %vm2833_vm6, %v2836_v47, %v2839_v32  ;;  %vm3463_vm7 = vcmp.ge.f32.partialorder %v8773_v55, 0.0  ;;  %vm3002_vm8 = vc.u32 %v9071_v39, %v9063_v27  ;;  %v3254_v44 = vand.u32 2147483647, %v9034_v1 }
 0x699   : > { %v2841_v0 = vsel %vm2831_vm1, nan, %v2840_v28  ;;  %v3127_v54 = vor.u32 4788187, %v3126_v14  ;;  %v3130_v33 = vcvt.s32.f32 %v3123_v53  ;;  %v3004_v35 = vsel %vm3002_vm8, %v3003_v30, %v9064_v50 }
 0x69a   : > { %v3367_v59 = vadd.f32 1.0, %v2841_v0  ;;  %v5270_v3 = vsel %vm3399_vm0, 1.0, %v9656_v12  ;;  %vm3050_vm9 = vcmp.lt.s32.totalorder %v8872_v41, 0  ;;  %v3005_v52 = vadd.s32 %v3004_v35, %v3000_v29 }
 0x69b   : > { %vm3265_vm10 = vcmp.gt.s32.totalorder %v3264_v18, 0  ;;  %v3128_v60 = vand.u32 2147483647, %v3127_v54  ;;  %v3135_v19 = vsel %vm3050_vm9, %v3134_v49, %v9016_v58  ;;  %v5286_v9 = vsel %vm3463_vm7, 1.0, %v9656_v12  ;;  %v9127_v49 = vld [vmem:[%s7033_s29 + $0x70] sm:$0xff] }
 0x69c   : > { %v3383_v2 = vmul.f32 0.5, %v3367_v59  ;;  %v3266_v62 = vsel %vm3265_vm10, %v3264_v18, 0  ;;  %v3006_v63 = vadd.s32 536870912, %v3005_v52  ;;  %vm9097_vm11 = vcmp.le.f32.partialorder %v3048_v56, 0.7853982 }
 0x69d   : > { %v3268_v10 = vand.u32 31, %v3266_v62  ;;  %v3131_v22 = vmul.f32 %v3130_v33, %v3128_v60  ;;  %v3261_v8 = vand.u32 8388607, %v3254_v44  ;;  %v3137_v23 = vsel %vm9097_vm11, 0, %v3135_v19 }
 0x69e   : > { %v3447_v21 = vmul.f32 %v5270_v3, %v3383_v2  ;;  %v9105_v58 = vshrl.u32 %v3006_v63, 30  ;;  %v3267_v15 = vshrl.u32 %v3266_v62, 5  ;;  %v9123_v57 = vand.u32 3, %v3137_v23 }
 0x69f   : > { %v3269_v61 = vsub.s32 32, %v3268_v10  ;;  %v3132_v16 = vxor.u32 2147483648, %v3131_v22  ;;  %v3271_v34 = vshll.u32 %v9657_v25, %v3268_v10  ;;  %v3274_v56 = vshll.u32 %v9658_v20, %v3268_v10 }
 0x6a0   : > { %v3511_v11 = vmul.f32 %v5286_v9, %v3447_v21  ;;  %v3008_v38 = vshll.u32 %v9105_v58, 30  ;;  %v3277_v36 = vshll.u32 %v9638_v6, %v3268_v10  ;;  %v3280_v4 = vshll.u32 %v9644_v7, %v3268_v10 }
 0x6a1   : > { %v3272_v50 = vshrl.u32 %v9658_v20, %v3269_v61  ;;  %v3133_v37 = vsel %vm3050_vm9, %v3132_v16, %v3131_v22  ;;  %v3275_v17 = vshrl.u32 %v9638_v6, %v3269_v61  ;;  %v3278_v43 = vshrl.u32 %v9644_v7, %v3269_v61 }
 0x6a2   : > { %4260 = vperm.xlu0 %6420, %v3511_v11   ;;  %v3281_v40 = vshrl.u32 %v9645_v13, %v3269_v61  ;;  %v3136_v26 = vsel %vm9097_vm11, %v8872_v41, %v3133_v37  ;;  %v9121_v32 = vsub.s32 %v3005_v52, %v3008_v38  ;;  %v3262_v48 = vor.u32 8388608, %v3261_v8 }
 0x6a3   : > { %6534 = vcosq.f32 %v3136_v26  ;;  %v3270_v45 = vshrl.u32 %v9657_v25, %v3269_v61  ;;  %v3273_v47 = vor.u32 %v3272_v50, %v3271_v34  ;;  %v3276_v30 = vor.u32 %v3275_v17, %v3274_v56 }
 0x6a4   : > { %6536 = vsinq.f32 %v3136_v26  ;;  %v3011_v29 = vsub.s32 0, %v9121_v32  ;;  %v3282_v28 = vor.u32 %v3281_v40, %v3280_v4  ;;  %v3279_v53 = vor.u32 %v3278_v43, %v3277_v36 }
 0x6a5   : > { %v3283_v14 = vshll.u32 %v9645_v13, %v3268_v10  ;;  %v3284_v18 = vshrl.u32 %v9646_v31, %v3269_v61  ;;  %vm3286_vm12 = vcmp.lt.s32.totalorder %v3267_v15, 1  ;;  %vm3287_vm13 = vcmp.lt.s32.totalorder %v3267_v15, 2 }
 0x6a6   : > { %v5245_v0 = vmin.u32 %v3011_v29, %v9121_v32  ;;  %v3302_v59 = vshll.u32 %v3262_v48, 8  ;;  %v9134_v54 = vmul.f32 0.31415927, %v9127_v49  ;;  %vm3288_vm14 = vcmp.lt.s32.totalorder %v3267_v15, 3 }
 0x6a7   : > { %v3285_v33 = vor.u32 %v3284_v18, %v3283_v14  ;;  %vm3289_vm1 = vcmp.lt.s32.totalorder %v3267_v15, 4  ;;  %v3290_v35 = vsel %vm3286_vm12, %v3270_v45, %v3273_v47  ;;  %v3294_v2 = vsel %vm3286_vm12, %v3273_v47, %v3276_v30 }
 0x6a8   : > { %v3013_v3 = vclz %v5245_v0  ;;  %v3291_v52 = vsel %vm3289_vm1, %v3279_v53, 2102212464  ;;  %v3295_v60 = vsel %vm3289_vm1, %v3282_v28, 920167782  ;;  %v3298_v9 = vsel %vm3286_vm12, %v3276_v30, %v3279_v53 }
 0x6a9   : > { %v3292_v19 = vsel %vm3288_vm14, %v3276_v30, %v3291_v52  ;;  %v3296_v62 = vsel %vm3288_vm14, %v3279_v53, %v3295_v60  ;;  %v3299_v63 = vsel %vm3289_vm1, %v3285_v33, 1326507024  ;;  %vm3142_vm2 = vcmp.lt.s32.totalorder %v9123_v57, 2 }
 0x6aa   : > { %v5246_v10 = vadd.s32 4294967294, %v3013_v3  ;;  %v3297_v21 = vsel %vm3287_vm13, %v3294_v2, %v3296_v62  ;;  %v3300_v55 = vsel %vm3288_vm14, %v3282_v28, %v3299_v63  ;;  %v3001_v22 = vadd.s32 %v9063_v27, %v9071_v39 }
 0x6ab   : > { %v3301_v8 = vsel %vm3287_vm13, %v3298_v9, %v3300_v55  ;;  %v9141_v23 = vmul.u32.u64.low %v3302_v59, %v3297_v21  ;;  %v9142_v61 = vmul.u32.u64.high %v3302_v59, %v3297_v21, %v9141_v23  ;;  %v3293_v11 = vsel %vm3287_vm13, %v3290_v35, %v3292_v19 }
 0x6ac   : > { %vm5247_vm3 = vcmp.lt.s32.totalorder %v5246_v10, 0  ;;  %v9146_v16 = vmul.u32.u64.low %v3302_v59, %v3301_v8  ;;  %v9147_v34 = vmul.u32.u64.high %v3302_v59, %v3301_v8, %v9146_v16  ;;  %vm3143_vm4 = vcmp.eq.s32.totalorder %v9123_v57, 0 }
 0x6ad   : > { %v6535_v56 = vpop.eup %6534  ;;  %vm3146_vm5 = vcmp.eq.s32.totalorder %v9123_v57, 2  ;;  %v3016_v38 = vsel %vm5247_vm3, 0, %v5246_v10  ;;  %v3154_v27 = vand.u32 2139095040, %v9134_v54  ;;  %v3309_v15 = vmul.u32 %v3302_v59, %v3293_v11 }
 0x6ae   : > { %v6537_v39 = vpop.eup %6536  ;;  %v3147_v50 = vxor.u32 2147483648, %v6535_v56  ;;  %v3017_v36 = vsub.s32 32, %v3016_v38  ;;  %v3018_v4 = vshll.u32 %v9121_v32, %v3016_v38  ;;  %v3021_v37 = vsub.s32 4294967266, %v3016_v38 }
 0x6af   : > { %v3144_v17 = vxor.u32 2147483648, %v6537_v39  ;;  %v3312_v43 = vadd.s32 1, %v9142_v61  ;;  %v3155_v40 = vshrl.u32 %v3154_v27, 23  ;;  %vm3140_vm0 = vweird.f32 %v8872_v41 }
 0x6b0   : > { %v3148_v26 = vsel %vm3146_vm5, %v3147_v50, %v6537_v39  ;;  %v3019_v48 = vshrl.u32 %v3001_v22, %v3017_v36  ;;  %v3022_v45 = vadd.s32 127, %v3021_v37  ;;  %vm3402_vm15 = vcmp.le.f32.partialorder %v8865_v46, 10.0 }
 0x6b1   : > { %v3145_v47 = vsel %vm3143_vm4, %v6535_v56, %v3144_v17  ;;  %vm3311_vm6 = vc.u32 %v9147_v34, %v9141_v23  ;;  %v5252_v32 = vadd.s32 4294967169, %v3155_v40  ;;  %v3031_v14 = vsub.s32 4, %v9105_v58 }
 0x6b2   : > { %v3149_v29 = vsel %vm3142_vm2, %v3145_v47, %v3148_v26  ;;  %v3020_v30 = vor.u32 %v3019_v48, %v3018_v4  ;;  %v3023_v28 = vshll.u32 %v3022_v45, 23  ;;  %v3313_v53 = vsel %vm3311_vm6, %v3312_v43, %v9142_v61 }
 0x6b3   : > { %v3150_v41 = vsel %vm3140_vm0, nan, %v3149_v29  ;;  %v3314_v18 = vadd.s32 %v3313_v53, %v3309_v15  ;;  %v3161_v0 = vadd.s32 1, %v5252_v32  ;;  %vm3466_vm7 = vcmp.ge.f32.partialorder %v8865_v46, 0.0 }
 0x6b4   : > { %v3370_v59 = vadd.f32 1.0, %v3150_v41  ;;  %v3024_v33 = vor.u32 4788187, %v3023_v28  ;;  %v3027_v35 = vcvt.s32.f32 %v3020_v30  ;;  %v5273_v3 = vsel %vm3402_vm15, 1.0, %v9656_v12 }
 0x6b5   : > { %v3315_v52 = vadd.s32 536870912, %v3314_v18  ;;  %v3151_v57 = vand.u32 2147483647, %v9134_v54  ;;  %vm3162_vm8 = vcmp.gt.s32.totalorder %v3161_v0, 0  ;;  %vm2947_vm9 = vcmp.lt.s32.totalorder %v8958_v51, 0 }
 0x6b6   : > { %v3386_v2 = vmul.f32 0.5, %v3370_v59  ;;  %v3025_v60 = vand.u32 2147483647, %v3024_v33  ;;  %v3163_v19 = vsel %vm3162_vm8, %v3161_v0, 0  ;;  %v5289_v62 = vsel %vm3466_vm7, 1.0, %v9656_v12 }
 0x6b7   : > { %v3032_v9 = vsel %vm2947_vm9, %v3031_v14, %v9105_v58  ;;  %v9172_v46 = vshrl.u32 %v3315_v52, 30  ;;  %v3165_v63 = vand.u32 31, %v3163_v19  ;;  %vm9176_vm10 = vcmp.le.f32.partialorder %v2945_v5, 0.7853982 }
 0x6b8   : > { %v3450_v10 = vmul.f32 %v5273_v3, %v3386_v2  ;;  %v3028_v21 = vmul.f32 %v3027_v35, %v3025_v60  ;;  %v3158_v8 = vand.u32 8388607, %v3151_v57  ;;  %v3034_v58 = vsel %vm9176_vm10, 0, %v3032_v9 }
 0x6b9   : > { %v3317_v22 = vshll.u32 %v9172_v46, 30  ;;  %v3166_v61 = vsub.s32 32, %v3165_v63  ;;  %v3168_v56 = vshll.u32 %v9657_v25, %v3165_v63  ;;  %v3171_v27 = vshll.u32 %v9658_v20, %v3165_v63 }
 0x6ba   : > { %v3514_v11 = vmul.f32 %v5289_v62, %v3450_v10  ;;  %v3029_v16 = vxor.u32 2147483648, %v3028_v21  ;;  %v3174_v39 = vshll.u32 %v9638_v6, %v3165_v63  ;;  %v3159_v15 = vor.u32 8388608, %v3158_v8 }
 0x6bb   : > { %v9186_v38 = vsub.s32 %v3314_v18, %v3317_v22  ;;  %v3169_v5 = vshrl.u32 %v9658_v20, %v3166_v61  ;;  %v3172_v36 = vshrl.u32 %v9638_v6, %v3166_v61  ;;  %v3175_v4 = vshrl.u32 %v9644_v7, %v3166_v61 }
 0x6bc   : > { %4275 = vperm.xlu1 %6421, %v3514_v11   ;;  %v3030_v50 = vsel %vm2947_vm9, %v3029_v16, %v3028_v21  ;;  %v3164_v43 = vshrl.u32 %v3163_v19, 5  ;;  %v3038_v20 = vand.u32 3, %v3034_v58  ;;  %v3177_v26 = vshll.u32 %v9644_v7, %v3165_v63 }
 0x6bd   : > { %v3033_v37 = vsel %vm9176_vm10, %v8958_v51, %v3030_v50  ;;  %v3320_v17 = vsub.s32 0, %v9186_v38  ;;  %v3170_v40 = vor.u32 %v3169_v5, %v3168_v56  ;;  %v3173_v45 = vor.u32 %v3172_v36, %v3171_v27 }
 0x6be   : > { %6538 = vcosq.f32 %v3033_v37  ;;  %v3176_v6 = vor.u32 %v3175_v4, %v3174_v39  ;;  %v3167_v47 = vshrl.u32 %v9657_v25, %v3166_v61  ;;  %v3178_v32 = vshrl.u32 %v9645_v13, %v3166_v61 }
 0x6bf   : > { %6540 = vsinq.f32 %v3033_v37  ;;  %v5257_v48 = vmin.u32 %v3320_v17, %v9186_v38  ;;  %v3180_v29 = vshll.u32 %v9645_v13, %v3165_v63  ;;  %v3181_v30 = vshrl.u32 %v9646_v31, %v3166_v61 }
 0x6c0   : > { %vm3183_vm11 = vcmp.lt.s32.totalorder %v3164_v43, 1  ;;  %vm3184_vm12 = vcmp.lt.s32.totalorder %v3164_v43, 2  ;;  %v3199_v53 = vshll.u32 %v3159_v15, 8  ;;  %v3179_v41 = vor.u32 %v3178_v32, %v3177_v26 }
 0x6c1   : > { %v3322_v28 = vclz %v5257_v48  ;;  %v3182_v14 = vor.u32 %v3181_v30, %v3180_v29  ;;  %vm3185_vm13 = vcmp.lt.s32.totalorder %v3164_v43, 3  ;;  %vm3186_vm14 = vcmp.lt.s32.totalorder %v3164_v43, 4 }
 0x6c2   : > { %v3188_v18 = vsel %vm3186_vm14, %v3176_v6, 2102212464  ;;  %v3191_v0 = vsel %vm3183_vm11, %v3170_v40, %v3173_v45  ;;  %v3195_v59 = vsel %vm3183_vm11, %v3173_v45, %v3176_v6  ;;  %v3187_v33 = vsel %vm3183_vm11, %v3167_v47, %v3170_v40 }
 0x6c3   : > { %v5258_v7 = vadd.s32 4294967294, %v3322_v28  ;;  %v3189_v25 = vsel %vm3185_vm13, %v3173_v45, %v3188_v18  ;;  %v3192_v35 = vsel %vm3186_vm14, %v3179_v41, 920167782  ;;  %v3196_v3 = vsel %vm3186_vm14, %v3182_v14, 1326507024 }
 0x6c4   : > { %v3310_v13 = vadd.s32 %v9141_v23, %v9147_v34  ;;  %v3193_v31 = vsel %vm3185_vm13, %v3176_v6, %v3192_v35  ;;  %v3197_v52 = vsel %vm3185_vm13, %v3179_v41, %v3196_v3  ;;  %vm3043_vm2 = vcmp.eq.s32.totalorder %v3038_v20, 2  ;;  %v9247_v18 = vld [vmem:[%s9685_s1] ss:$0 sm:$0xff] }
 0x6c5   : > { %vm5259_vm1 = vcmp.lt.s32.totalorder %v5258_v7, 0  ;;  %v3194_v60 = vsel %vm3184_vm12, %v3191_v0, %v3193_v31  ;;  %v3198_v19 = vsel %vm3184_vm12, %v3195_v59, %v3197_v52  ;;  %v3190_v10 = vsel %vm3184_vm12, %v3187_v33, %v3189_v25 }
 0x6c6   : > { %v3325_v2 = vsel %vm5259_vm1, 0, %v5258_v7  ;;  %v9211_v55 = vmul.u32.u64.low %v3199_v53, %v3198_v19  ;;  %v9212_v22 = vmul.u32.u64.high %v3199_v53, %v3198_v19, %v9211_v55  ;;  %vm3040_vm3 = vcmp.eq.s32.totalorder %v3038_v20, 0  ;;  %v5769_v7 = vpop.f32.mrb[16].mxu0 }
 0x6c7   : > { %v3326_v62 = vsub.s32 32, %v3325_v2  ;;  %v3327_v9 = vshll.u32 %v9186_v38, %v3325_v2  ;;  %v3330_v63 = vsub.s32 4294967266, %v3325_v2  ;;  %vm3037_vm4 = vweird.f32 %v8958_v51  ;;  %v4211_v51 = vpop.permute.xlu0 %4210  ;;  %v4129_v25 = vpop.f32.mrb[17].mxu0 }
 0x6c8   : > { %v6539_v21 = vpop.eup %6538  ;;  %v9214_v23 = vmul.u32.u64.low %v3199_v53, %v3194_v60  ;;  %v9215_v34 = vmul.u32.u64.high %v3199_v53, %v3194_v60, %v9214_v23  ;;  %vm3039_vm5 = vcmp.lt.s32.totalorder %v3038_v20, 2  ;;  %v3206_v27 = vmul.u32 %v3199_v53, %v3190_v10 }
 0x6c9   : > { %v6541_v8 = vpop.eup %6540  ;;  %v3044_v61 = vxor.u32 2147483648, %v6539_v21  ;;  %v3328_v11 = vshrl.u32 %v3310_v13, %v3326_v62  ;;  %v3331_v16 = vadd.s32 127, %v3330_v63  ;;  %vm3401_vm15 = vcmp.le.f32.partialorder %v8950_v24, 10.0 }
 0x6ca   : > { %v3041_v58 = vxor.u32 2147483648, %v6541_v8  ;;  %vm3208_vm0 = vc.u32 %v9212_v22, %v9214_v23  ;;  %v3209_v50 = vadd.s32 1, %v9215_v34  ;;  %vm3465_vm6 = vcmp.ge.f32.partialorder %v8950_v24, 0.0 }
 0x6cb   : > { %v3045_v56 = vsel %vm3043_vm2, %v3044_v61, %v6541_v8  ;;  %v3329_v38 = vor.u32 %v3328_v11, %v3327_v9  ;;  %v3332_v5 = vshll.u32 %v3331_v16, 23  ;;  %v5272_v26 = vsel %vm3401_vm15, 1.0, %v9656_v12  ;;  %v4216_v35 = vpop.permute.xlu0 %4215 }
 0x6cc   : > { %v3042_v39 = vsel %vm3040_vm3, %v6539_v21, %v3041_v58  ;;  %v3210_v15 = vsel %vm3208_vm0, %v3209_v50, %v9215_v34  ;;  %v5288_v47 = vsel %vm3465_vm6, 1.0, %v9656_v12  ;;  %vm9232_vm7 = vcmp.le.f32.partialorder %v3254_v44, 0.7853982 }
 0x6cd   : > { %v3046_v36 = vsel %vm3039_vm5, %v3042_v39, %v3045_v56  ;;  %v3333_v4 = vor.u32 4788187, %v3332_v5  ;;  %v3336_v37 = vcvt.s32.f32 %v3329_v38  ;;  %v3211_v40 = vadd.s32 %v3210_v15, %v3206_v27 }
 0x6ce   : > { %v3047_v17 = vsel %vm3037_vm4, nan, %v3046_v36  ;;  %vm3256_vm8 = vcmp.lt.s32.totalorder %v9034_v1, 0  ;;  %v3340_v30 = vsub.s32 4, %v9172_v46  ;;  %v4135_v33 = vadd.f32 %v5769_v7, %v9247_v18 }
 0x6cf   : > { %v3369_v43 = vadd.f32 1.0, %v3047_v17  ;;  %v3334_v20 = vand.u32 2147483647, %v3333_v4  ;;  %v3212_v6 = vadd.s32 536870912, %v3211_v40  ;;  %v4130_v3 = vadd.f32 %v9247_v18, %v4129_v25 }
 0x6d0   : > { %v3341_v0 = vsel %vm3256_vm8, %v3340_v30, %v9172_v46  ;;  %v4289_v31 = vmul.f32 %v4216_v35, %v4135_v33  ;;  %v3207_v63 = vadd.s32 %v9214_v23, %v9212_v22  ;;  %vm3346_vm13 = vweird.f32 %v9034_v1 }
 0x6d1   : > { %v3385_v48 = vmul.f32 0.5, %v3369_v43  ;;  %v3337_v45 = vmul.f32 %v3336_v37, %v3334_v20  ;;  %v9238_v28 = vshrl.u32 %v3212_v6, 30  ;;  %v3343_v52 = vsel %vm9232_vm7, 0, %v3341_v0  ;;  %v4231_v0 = vpop.permute.xlu0 %4230 }
 0x6d2   : > { %v4288_v2 = vmul.f32 %v4211_v51, %v4130_v3  ;;  %4306 = vst [vmem:[%s9256_s25 + $0x8] sm:$0xff] %v4289_v31  ;;  %v3347_v46 = vand.u32 3, %v3343_v52  ;;  %vm3404_vm14 = vcmp.le.f32.partialorder %v9019_v42, 10.0  ;;  %vm3468_vm1 = vcmp.ge.f32.partialorder %v9019_v42, 0.0  ;;  %v5772_v52 = vpop.f32.mrb[18].mxu0 }
 0x6d3   : > { %v3449_v29 = vmul.f32 %v5272_v26, %v3385_v48  ;;  %v3338_v24 = vxor.u32 2147483648, %v3337_v45  ;;  %v3214_v14 = vshll.u32 %v9238_v28, 30  ;;  %v5275_v50 = vsel %vm3404_vm14, 1.0, %v9656_v12 }
 0x6d4   : > { %4305 = vst [vmem:[%s9256_s25] sm:$0xff] %v4288_v2  ;;  %vm3352_vm9 = vcmp.eq.s32.totalorder %v3347_v46, 2  ;;  %vm3348_vm11 = vcmp.lt.s32.totalorder %v3347_v46, 2  ;;  %vm3349_vm12 = vcmp.eq.s32.totalorder %v3347_v46, 0  ;;  %vm3153_vm2 = vcmp.lt.s32.totalorder %v9134_v54, 0  ;;  %v5778_v2 = vpop.f32.mrb[0].mxu1  ;;  %v4139_v46 = vpop.f32.mrb[19].mxu0 }
 0x6d5   : > { %v3513_v53 = vmul.f32 %v5288_v47, %v3449_v29  ;;  %v3339_v41 = vsel %vm3256_vm8, %v3338_v24, %v3337_v45  ;;  %v3215_v59 = vsub.s32 %v3211_v40, %v3214_v14  ;;  %vm3152_vm3 = vcmp.le.f32.partialorder %v3151_v57, 0.7853982  ;;  %v4221_v45 = vpop.permute.xlu1 %4220  ;;  %v4241_v31 = vpop.permute.xlu0 %4240 }
 0x6d6   : > { %v3342_v44 = vsel %vm9232_vm7, %v9034_v1, %v3339_v41  ;;  %v5291_v1 = vsel %vm3468_vm1, 1.0, %v9656_v12  ;;  %v3237_v26 = vsub.s32 4, %v9238_v28  ;;  %vm3243_vm15 = vweird.f32 %v9134_v54 }
 0x6d7   : > { %4270 = vperm.xlu0 %6420, %v3513_v53   ;;  %6542 = vcosq.f32 %v3342_v44  ;;  %v3217_v13 = vsub.s32 0, %v3215_v59  ;;  %vm3403_vm6 = vcmp.le.f32.partialorder %v9127_v49, 10.0  ;;  %vm3467_vm7 = vcmp.ge.f32.partialorder %v9127_v49, 0.0  ;;  %v4159_v49 = vpop.f32.mrb[1].mxu1 }
 0x6d8   : > { %6544 = vsinq.f32 %v3342_v44  ;;  %v3238_v6 = vsel %vm3153_vm2, %v3237_v26, %v9238_v28  ;;  %v5274_v33 = vsel %vm3403_vm6, 1.0, %v9656_v12  ;;  %v5290_v35 = vsel %vm3467_vm7, 1.0, %v9656_v12  ;;  %v5781_v12 = vpop.f32.mrb[2].mxu1 }
 0x6d9   : > { %v5253_v60 = vmin.u32 %v3217_v13, %v3215_v59  ;;  %v3240_v47 = vsel %vm3152_vm3, 0, %v3238_v6  ;;  %v4226_v32 = vpop.permute.xlu1 %4225 }
 0x6da   : > { %v3244_v51 = vand.u32 3, %v3240_v47 }
 0x6db   : > { %v3219_v19 = vclz %v5253_v60  ;;  %v4145_v60 = vadd.f32 %v5772_v52, %v9247_v18 }
 0x6dc   : > { %vm3249_vm4 = vcmp.eq.s32.totalorder %v3244_v51, 2  ;;  %vm3246_vm5 = vcmp.eq.s32.totalorder %v3244_v51, 0  ;;  %vm3245_vm0 = vcmp.lt.s32.totalorder %v3244_v51, 2 }
 0x6dd   : > { %v5254_v62 = vadd.s32 4294967294, %v3219_v19  ;;  %v4236_v30 = vpop.permute.xlu1 %4235  ;;  %v4165_v19 = vadd.f32 %v5778_v2, %v9247_v18 }
 0x6df   : > { %vm5255_vm10 = vcmp.lt.s32.totalorder %v5254_v62, 0 }
 0x6e0   : > { %v3222_v55 = vsel %vm5255_vm10, 0, %v5254_v62  ;;  %v4140_v62 = vadd.f32 %v9247_v18, %v4139_v46 }
 0x6e1   : > { %v6543_v9 = vpop.eup %6542  ;;  %v3223_v8 = vsub.s32 32, %v3222_v55  ;;  %v3224_v61 = vshll.u32 %v3215_v59, %v3222_v55  ;;  %v3227_v11 = vsub.s32 4294967266, %v3222_v55  ;;  %v4246_v59 = vpop.permute.xlu1 %4245 }
 0x6e2   : > { %v6545_v10 = vpop.eup %6544  ;;  %v3353_v21 = vxor.u32 2147483648, %v6543_v9 }
 0x6e3   : > { %v3350_v34 = vxor.u32 2147483648, %v6545_v10  ;;  %v3225_v56 = vshrl.u32 %v3207_v63, %v3223_v8  ;;  %v3228_v38 = vadd.s32 127, %v3227_v11  ;;  %v4160_v63 = vadd.f32 %v9247_v18, %v4159_v49 }
 0x6e4   : > { %v3354_v16 = vsel %vm3352_vm9, %v3353_v21, %v6545_v10  ;;  %v4291_v10 = vmul.f32 %v4226_v32, %v4145_v60  ;;  %v4175_v8 = vadd.f32 %v5781_v12, %v9247_v18  ;;  %v4290_v11 = vmul.f32 %v4221_v45, %v4140_v62 }
 0x6e5   : > { %v3351_v58 = vsel %vm3349_vm12, %v6543_v9, %v3350_v34  ;;  %v3226_v23 = vor.u32 %v3225_v56, %v3224_v61  ;;  %v3229_v27 = vshll.u32 %v3228_v38, 23  ;;  %v5775_v9 = vpop.f32.mrb[20].mxu0  ;;  %v4295_v34 = vmul.f32 %v4246_v59, %v4165_v19  ;;  %v4169_v61 = vpop.f32.mrb[3].mxu1 }
 0x6e6   : > { %v3355_v5 = vsel %vm3348_vm11, %v3351_v58, %v3354_v16  ;;  %v4155_v21 = vadd.f32 %v5775_v9, %v9247_v18  ;;  %v4149_v55 = vpop.f32.mrb[21].mxu0  ;;  %v4294_v58 = vmul.f32 %v4241_v31, %v4160_v63  ;;  %v4170_v56 = vadd.f32 %v9247_v18, %v4169_v61  ;;  %v5784_v38 = vpop.f32.mrb[4].mxu1  ;;  %4308 = vst [vmem:[%s9256_s25 + $0x18] sm:$0xff] %v4291_v10 }
 0x6e7   : > { %v3356_v22 = vsel %vm3346_vm13, nan, %v3355_v5  ;;  %v3230_v36 = vor.u32 4788187, %v3229_v27  ;;  %v3233_v4 = vcvt.s32.f32 %v3226_v23  ;;  %v4150_v16 = vadd.f32 %v9247_v18, %v4149_v55  ;;  %4312 = vst [vmem:[%s9256_s25 + $0x38] sm:$0xff] %v4295_v34  ;;  %4307 = vst [vmem:[%s9256_s25 + $0x10] sm:$0xff] %v4290_v11 }
 0x6e8   : > { %v3372_v39 = vadd.f32 1.0, %v3356_v22  ;;  %v4293_v22 = vmul.f32 %v4236_v30, %v4155_v21  ;;  %v4185_v27 = vadd.f32 %v5784_v38, %v9247_v18  ;;  %4311 = vst [vmem:[%s9256_s25 + $0x30] sm:$0xff] %v4294_v58 }
 0x6e9   : > { %v3231_v17 = vand.u32 2147483647, %v3230_v36  ;;  %v4292_v36 = vmul.f32 %v4231_v0, %v4150_v16 }
 0x6ea   : > { %v3388_v37 = vmul.f32 0.5, %v3372_v39  ;;  %v4179_v39 = vpop.f32.mrb[5].mxu1  ;;  %4310 = vst [vmem:[%s9256_s25 + $0x28] sm:$0xff] %v4293_v22 }
 0x6eb   : > { %v3234_v43 = vmul.f32 %v3233_v4, %v3231_v17  ;;  %4309 = vst [vmem:[%s9256_s25 + $0x20] sm:$0xff] %v4292_v36 }
 0x6ec   : > { %v3452_v15 = vmul.f32 %v5275_v50, %v3388_v37  ;;  %v4180_v37 = vadd.f32 %v9247_v18, %v4179_v39 }
 0x6ed   : > { %v3235_v40 = vxor.u32 2147483648, %v3234_v43  ;;  %v4251_v5 = vpop.permute.xlu0 %4250 }
 0x6ee   : > { %v3516_v20 = vmul.f32 %v5291_v1, %v3452_v15  ;;  %v4296_v4 = vmul.f32 %v4251_v5, %v4170_v56  ;;  %v5787_v1 = vpop.f32.mrb[6].mxu1 }
 0x6ef   : > { %v3236_v42 = vsel %vm3153_vm2, %v3235_v40, %v3234_v43  ;;  %v4195_v15 = vadd.f32 %v5787_v1, %v9247_v18  ;;  %v4189_v43 = vpop.f32.mrb[7].mxu1 }
 0x6f0   : > { %4285 = vperm.xlu1 %6421, %v3516_v20   ;;  %v3239_v48 = vsel %vm3152_vm3, %v9134_v54, %v3236_v42  ;;  %v4256_v54 = vpop.permute.xlu1 %4255  ;;  %4313 = vst [vmem:[%s9256_s25 + $0x40] sm:$0xff] %v4296_v4  ;;  %v4190_v20 = vadd.f32 %v9247_v18, %v4189_v43  ;;  %v5790_v40 = vpop.f32.mrb[8].mxu1 }
 0x6f1   : > { %6546 = vcosq.f32 %v3239_v48  ;;  %v4297_v23 = vmul.f32 %v4256_v54, %v4175_v8  ;;  %v4205_v26 = vadd.f32 %v5790_v40, %v9247_v18  ;;  %v4199_v42 = vpop.f32.mrb[9].mxu1 }
 0x6f2   : > { %6548 = vsinq.f32 %v3239_v48  ;;  %v4200_v48 = vadd.f32 %v9247_v18, %v4199_v42 }
 0x6f3   : > { %4314 = vst [vmem:[%s9256_s25 + $0x48] sm:$0xff] %v4297_v23 }
 0x6fb   : > { %v6547_v29 = vpop.eup %6546 }
 0x6fc   : > { %v6549_v24 = vpop.eup %6548  ;;  %v3250_v57 = vxor.u32 2147483648, %v6547_v29 }
 0x6fd   : > { %v3247_v53 = vxor.u32 2147483648, %v6549_v24 }
 0x6fe   : > { %v3251_v41 = vsel %vm3249_vm4, %v3250_v57, %v6549_v24 }
 0x6ff   : > { %v3248_v14 = vsel %vm3246_vm5, %v6547_v29, %v3247_v53 }
 0x700   : > { %v3252_v44 = vsel %vm3245_vm0, %v3248_v14, %v3251_v41 }
 0x701   : > { %v3253_v28 = vsel %vm3243_vm15, nan, %v3252_v44 }
 0x702   : > { %v3371_v7 = vadd.f32 1.0, %v3253_v28 }
 0x704   : > { %v3387_v25 = vmul.f32 0.5, %v3371_v7 }
 0x706   : > { %v3451_v3 = vmul.f32 %v5274_v33, %v3387_v25 }
 0x707   : > { %v4266_v50 = vpop.permute.xlu1 %4265 }
 0x708   : > { %v3515_v13 = vmul.f32 %v5290_v35, %v3451_v3  ;;  %v4299_v17 = vmul.f32 %v4266_v50, %v4185_v27 }
 0x70a   : > { %4280 = vperm.xlu0 %6420, %v3515_v13   ;;  %4316 = vst [vmem:[%s9256_s25 + $0x58] sm:$0xff] %v4299_v17 }
 0x721   : > { %v4261_v45 = vpop.permute.xlu0 %4260 }
 0x722   : > { %v4298_v6 = vmul.f32 %v4261_v45, %v4180_v37 }
 0x724   : > { %4315 = vst [vmem:[%s9256_s25 + $0x50] sm:$0xff] %v4298_v6 }
 0x73b   : > { %v4276_v47 = vpop.permute.xlu1 %4275 }
 0x73c   : > { %v4301_v32 = vmul.f32 %v4276_v47, %v4195_v15 }
 0x73e   : > { %4318 = vst [vmem:[%s9256_s25 + $0x68] sm:$0xff] %v4301_v32 }
 0x756   : > { %v4271_v51 = vpop.permute.xlu0 %4270 }
 0x757   : > { %v4300_v29 = vmul.f32 %v4271_v51, %v4190_v20 }
 0x759   : > { %4317 = vst [vmem:[%s9256_s25 + $0x60] sm:$0xff] %v4300_v29 }
 0x76f   : > { %v4286_v24 = vpop.permute.xlu1 %4285 }
 0x770   : > { %v4303_v57 = vmul.f32 %v4286_v24, %v4205_v26 }
 0x772   : > { %4320 = vst [vmem:[%s9256_s25 + $0x78] sm:$0xff] %v4303_v57 }
 0x789   : > { %v4281_v30 = vpop.permute.xlu0 %4280 }
 0x78a   : > { %v4302_v53 = vmul.f32 %v4281_v30, %v4200_v48 }
 0x78c   : > { %4319 = vst [vmem:[%s9256_s25 + $0x70] sm:$0xff] %v4302_v53 }
 0x78d PF: > { %v4340_v18 = vld [vmem:[%s7026_s15 + $0x10] sm:$0xff]  ;;  %v4338_v41 = vld [vmem:[%s7026_s15] sm:$0xff]  ;;  %v6751_v14 = vmov 0   ;;  %v4341_v44 = vld [vmem:[%s7026_s15 + $0x18] sm:$0xff]  ;;  %v4355_v49 = vlaneseq  ;;  %vm4455_vm8 = vcmask 130048   ;;  %v6752_v12 = vmov 0.0  }
 0x78e   : > { %6553 = vset.pattern.permute.xlu1 %v6751_v14  ;;  %6552 = vset.pattern.permute.xlu0 %v6751_v14  ;;  %v4339_v28 = vld [vmem:[%s7026_s15 + $0x8] sm:$0xff]  ;;  %v4453_v7 = vld [vmem:[#allocation3] sm:$0xff]  ;;  %v4454_v0 = vld [vmem:[#allocation3 + $0x8] sm:$0xff]  ;;  %v6753_v51 = vmov 1.0   ;;  %p4759_p0 = scmp.eq.s32.totalorder %s6712_s27, 1 }
 0x78f   : > { %4364 = vperm.xlu1 %6553, %v4340_v18   ;;  %4358 = vperm.xlu0 %6552, %v4338_v41   ;;  %v6088_v59 = vpack.c.bf16 %v4454_v0, %v4453_v7  ;;  %v4343_v33 = vld [vmem:[%s7026_s15 + $0x28] sm:$0xff]  ;;  %v4342_v25 = vld [vmem:[%s7026_s15 + $0x20] sm:$0xff]  ;;  %v4345_v35 = vld [vmem:[%s7026_s15 + $0x38] sm:$0xff]  ;;  %v9323_v62 = vand.u32 127, %v4355_v49  ;;  %v4666_v6 = vshrl.u32 %v4355_v49, 7 }
 0x790   : > { %v4344_v3 = vld [vmem:[%s7026_s15 + $0x30] sm:$0xff]  ;;  %v4347_v13 = vld [vmem:[%s7026_s15 + $0x48] sm:$0xff]  ;;  %v4346_v31 = vld [vmem:[%s7026_s15 + $0x40] sm:$0xff]  ;;  %p4760_p3 = pnand %p4759_p0, %p882_p10 }
 0x791   : > { %6089 = vmatprep.subr.bf16.mxu0 %v6088_v59  ;;  %v4349_v54 = vld [vmem:[%s7026_s15 + $0x58] sm:$0xff]  ;;  %v4348_v52 = vld [vmem:[%s7026_s15 + $0x50] sm:$0xff]  ;;  %v4351_v2 = vld [vmem:[%s7026_s15 + $0x68] sm:$0xff]  ;;  %v9361_v32 = vadd.s32 8, %v4666_v6  ;;  %s9688_s19 = sld [smem:[#allocation33_spill]] (!%p4760_p3)  ;;  %s9690_s30 = sld [smem:[#allocation36_spill]] (!%p4760_p3) }
 0x792   : > { %6091 = vmatpush3.bf16.msra.mxu0 %v6088_v59  ;;  %v4350_v60 = vld [vmem:[%s7026_s15 + $0x60] sm:$0xff]  ;;  %v4353_v46 = vld [vmem:[%s7026_s15 + $0x78] sm:$0xff]  ;;  %v4352_v19 = vld [vmem:[%s7026_s15 + $0x70] sm:$0xff]  ;;  %s9687_s15 = sshll.u32 %s6712_s27, 7 }
 0x793   : > { %4367 = vperm.xlu1 %6553, %v4341_v44   ;;  %4361 = vperm.xlu0 %6552, %v4339_v28   ;;  %v9359_v47 = vld [vmem:[%s7007_s20] ss:$0 sm:$0xff]  ;;  %s9369_s28 = scalar_lea.vmem [#allocation2], %s9687_s15  ;;  %s9689_s20 = sld [smem:[#allocation34_spill]] (!%p4760_p3) }
 0x794   : > { %v4323_v29 = vld [vmem:[%s9369_s28 + $0x8] sm:$0xff]  ;;  %v4322_v24 = vld [vmem:[%s9369_s28] sm:$0xff]  ;;  %v4325_v41 = vld [vmem:[%s9369_s28 + $0x18] sm:$0xff] }
 0x795   : > { %v4324_v14 = vld [vmem:[%s9369_s28 + $0x10] sm:$0xff] }
 0x797   : > { %4373 = vperm.xlu1 %6553, %v4343_v33   ;;  %4370 = vperm.xlu0 %6552, %v4342_v25   ;;  %v4327_v33 = vld [vmem:[%s9369_s28 + $0x28] sm:$0xff]  ;;  %v4326_v25 = vld [vmem:[%s9369_s28 + $0x20] sm:$0xff] }
 0x79b   : > { %4379 = vperm.xlu1 %6553, %v4345_v35   ;;  %4376 = vperm.xlu0 %6552, %v4344_v3  }
 0x79f   : > { %4385 = vperm.xlu1 %6553, %v4347_v13   ;;  %4382 = vperm.xlu0 %6552, %v4346_v31  }
 0x7a3   : > { %4391 = vperm.xlu1 %6553, %v4349_v54   ;;  %4388 = vperm.xlu0 %6552, %v4348_v52   ;;  %v4329_v52 = vld [vmem:[%s9369_s28 + $0x38] sm:$0xff] }
 0x7a7   : > { %4397 = vperm.xlu1 %6553, %v4351_v2   ;;  %4394 = vperm.xlu0 %6552, %v4350_v60   ;;  %v4328_v2 = vld [vmem:[%s9369_s28 + $0x30] sm:$0xff] }
 0x7ab   : > { %4403 = vperm.xlu1 %6553, %v4353_v46   ;;  %4400 = vperm.xlu0 %6552, %v4352_v19  }
 0x80e   : > { %v4365_v9 = vpop.permute.xlu1 %4364  ;;  %v4359_v63 = vpop.permute.xlu0 %4358 }
 0x80f   : > { %vm4405_vm9 = vcmp.eq.s32.totalorder %v9323_v62, %v4359_v63  ;;  %vm4407_vm10 = vcmp.eq.s32.totalorder %v9323_v62, %v4365_v9  ;;  %v4331_v9 = vld [vmem:[%s9369_s28 + $0x48] sm:$0xff]  ;;  %v4330_v63 = vld [vmem:[%s9369_s28 + $0x40] sm:$0xff] }
 0x810   : > { %v5326_v10 = vsel %vm4405_vm9, 1.0, %v6752_v12  ;;  %v5328_v34 = vsel %vm4407_vm10, 1.0, %v6752_v12  ;;  %vm4672_vm10 = vcmp.eq.s32.totalorder %v4666_v6, %v9359_v47 }
 0x811   : > { %5795 = vmatprep.mubr.msk.f32.mxu0 %vm4455_vm8, %v5326_v10  ;;  %5851 = vmatprep.mubr.msk.f32.mxu1 %vm4672_vm10, %v6753_v51 }
 0x812   : > { %v4368_v21 = vpop.permute.xlu1 %4367  ;;  %v4362_v55 = vpop.permute.xlu0 %4361 }
 0x813   : > { %vm4406_vm11 = vcmp.eq.s32.totalorder %v9323_v62, %v4362_v55  ;;  %vm4408_vm12 = vcmp.eq.s32.totalorder %v9323_v62, %v4368_v21 }
 0x814   : > { %v5327_v8 = vsel %vm4406_vm11, 1.0, %v6752_v12  ;;  %v5329_v16 = vsel %vm4408_vm12, 1.0, %v6752_v12  ;;  %vm4673_vm11 = vcmp.eq.s32.totalorder %v9361_v32, %v9359_v47  ;;  %v4767_v47 = vld [vmem:[%s9688_s19 + $0x8] sm:$0xff] (!%p4760_p3)  ;;  %v4768_v32 = vld [vmem:[%s9688_s19 + $0x10] sm:$0xff] (!%p4760_p3) }
 0x815   : > { %5796 = vmatmul.mubr.msk.f32.vlgmr.msra.gmra.mrb[0].mxu0 %vm4455_vm8, %v5327_v8  ;;  %v4333_v8 = vld [vmem:[%s9369_s28 + $0x58] sm:$0xff] }
 0x816   : > { %v4374_v61 = vpop.permute.xlu1 %4373  ;;  %5798 = vmatprep.mubr.msk.f32.mxu0 %vm4455_vm8, %v5328_v34  ;;  %v4371_v11 = vpop.permute.xlu0 %4370 }
 0x817   : > { %vm4409_vm13 = vcmp.eq.s32.totalorder %v9323_v62, %v4371_v11  ;;  %vm4410_vm14 = vcmp.eq.s32.totalorder %v9323_v62, %v4374_v61  ;;  %v4332_v61 = vld [vmem:[%s9369_s28 + $0x50] sm:$0xff] }
 0x818   : > { %v5330_v58 = vsel %vm4409_vm13, 1.0, %v6752_v12  ;;  %v5331_v5 = vsel %vm4410_vm14, 1.0, %v6752_v12 }
 0x819   : > { %5799 = vmatmul.mubr.msk.f32.gmra.mrb[2].mxu0 %vm4455_vm8, %v5329_v16 }
 0x81a   : > { %v4380_v56 = vpop.permute.xlu1 %4379  ;;  %5801 = vmatprep.mubr.msk.f32.mxu0 %vm4455_vm8, %v5330_v58  ;;  %v4377_v38 = vpop.permute.xlu0 %4376 }
 0x81b   : > { %vm4411_vm1 = vcmp.eq.s32.totalorder %v9323_v62, %v4377_v38  ;;  %vm4412_vm2 = vcmp.eq.s32.totalorder %v9323_v62, %v4380_v56 }
 0x81c   : > { %v5332_v22 = vsel %vm4411_vm1, 1.0, %v6752_v12  ;;  %v5333_v39 = vsel %vm4412_vm2, 1.0, %v6752_v12 }
 0x81d   : > { %5802 = vmatmul.mubr.msk.f32.gmra.mrb[4].mxu0 %vm4455_vm8, %v5331_v5  ;;  %v4335_v5 = vld [vmem:[%s9369_s28 + $0x68] sm:$0xff] }
 0x81e   : > { %v4386_v23 = vpop.permute.xlu1 %4385  ;;  %5804 = vmatprep.mubr.msk.f32.mxu0 %vm4455_vm8, %v5332_v22  ;;  %v4383_v27 = vpop.permute.xlu0 %4382  ;;  %v4334_v22 = vld [vmem:[%s9369_s28 + $0x60] sm:$0xff] }
 0x81f   : > { %vm4413_vm3 = vcmp.eq.s32.totalorder %v9323_v62, %v4383_v27  ;;  %vm4414_vm4 = vcmp.eq.s32.totalorder %v9323_v62, %v4386_v23 }
 0x820   : > { %v5334_v50 = vsel %vm4413_vm3, 1.0, %v6752_v12  ;;  %v5335_v37 = vsel %vm4414_vm4, 1.0, %v6752_v12 }
 0x821   : > { %5805 = vmatmul.mubr.msk.f32.gmra.mrb[6].mxu0 %vm4455_vm8, %v5333_v39 }
 0x822   : > { %v4392_v36 = vpop.permute.xlu1 %4391  ;;  %5807 = vmatprep.mubr.msk.f32.mxu0 %vm4455_vm8, %v5334_v50  ;;  %v4389_v4 = vpop.permute.xlu0 %4388 }
 0x823   : > { %vm4415_vm5 = vcmp.eq.s32.totalorder %v9323_v62, %v4389_v4  ;;  %vm4416_vm0 = vcmp.eq.s32.totalorder %v9323_v62, %v4392_v36  ;;  %v4337_v4 = vld [vmem:[%s9369_s28 + $0x78] sm:$0xff] }
 0x824   : > { %v5336_v1 = vsel %vm4415_vm5, 1.0, %v6752_v12  ;;  %v5337_v43 = vsel %vm4416_vm0, 1.0, %v6752_v12 }
 0x825   : > { %5808 = vmatmul.mubr.msk.f32.gmra.mrb[8].mxu0 %vm4455_vm8, %v5335_v37  ;;  %v4336_v37 = vld [vmem:[%s9369_s28 + $0x70] sm:$0xff] }
 0x826   : > { %v4398_v17 = vpop.permute.xlu1 %4397  ;;  %5810 = vmatprep.mubr.msk.f32.mxu0 %vm4455_vm8, %v5336_v1  ;;  %v4395_v15 = vpop.permute.xlu0 %4394 }
 0x827   : > { %vm4417_vm15 = vcmp.eq.s32.totalorder %v9323_v62, %v4395_v15  ;;  %vm4418_vm6 = vcmp.eq.s32.totalorder %v9323_v62, %v4398_v17 }
 0x828   : > { %v5338_v20 = vsel %vm4417_vm15, 1.0, %v6752_v12  ;;  %v5339_v42 = vsel %vm4418_vm6, 1.0, %v6752_v12 }
 0x829   : > { %5811 = vmatmul.mubr.msk.f32.gmra.mrb[10].mxu0 %vm4455_vm8, %v5337_v43 }
 0x82a   : > { %v4404_v40 = vpop.permute.xlu1 %4403  ;;  %5813 = vmatprep.mubr.msk.f32.mxu0 %vm4455_vm8, %v5338_v20  ;;  %v4401_v26 = vpop.permute.xlu0 %4400 }
 0x82b   : > { %vm4419_vm7 = vcmp.eq.s32.totalorder %v9323_v62, %v4401_v26  ;;  %vm4420_vm9 = vcmp.eq.s32.totalorder %v9323_v62, %v4404_v40  ;;  %v4679_v26 = vld [vmem:[#allocation4 + $0x8] sm:$0xff] }
 0x82c   : > { %v5340_v48 = vsel %vm4419_vm7, 1.0, %v6752_v12  ;;  %v5341_v45 = vsel %vm4420_vm9, 1.0, %v6752_v12 }
 0x82d   : > { %5814 = vmatmul.mubr.msk.f32.gmra.mrb[12].mxu0 %vm4455_vm8, %v5339_v42  ;;  %v4678_v42 = vld [vmem:[#allocation4] sm:$0xff] }
 0x82e   : > { %5816 = vmatprep.mubr.msk.f32.mxu0 %vm4455_vm8, %v5340_v48 }
 0x831   : > { %5817 = vmatmul.mubr.msk.f32.gmra.mrb[14].mxu0 %vm4455_vm8, %v5341_v45 }
 0x8e8   : > { %v5797_v57 = vpop.f32.mrb[0].mxu0 }
 0x8e9   : > { %v4650_v30 = vmul.f32 %v5797_v57, %v4323_v29  ;;  %v4570_v53 = vpop.f32.mrb[1].mxu0  ;;  %v4769_v57 = vld [vmem:[%s9688_s19 + $0x18] sm:$0xff] (!%p4760_p3) }
 0x8ea   : > { %v4649_v18 = vmul.f32 %v4570_v53, %v4322_v24  ;;  %v4766_v24 = vld [vmem:[%s9688_s19] sm:$0xff] (!%p4760_p3) }
 0x8eb   : > { %v4770_v53 = vld [vmem:[%s9688_s19 + $0x20] sm:$0xff] (!%p4760_p3) }
 0x8ec   : > { %v5800_v44 = vpop.f32.mrb[2].mxu0  ;;  %v6092_v28 = vpack.c.bf16 %v4650_v30, %v4649_v18  ;;  %v6128_v30 = vpack.c.bf16 (!%p4760_p3), %v4769_v57, %v4768_v32  ;;  %v4771_v18 = vld [vmem:[%s9688_s19 + $0x28] sm:$0xff] (!%p4760_p3) }
 0x8ed   : > { %v4652_v7 = vmul.f32 %v5800_v44, %v4325_v41  ;;  %v4580_v0 = vpop.f32.mrb[3].mxu0  ;;  %v6132_v41 = vpack.c.bf16 (!%p4760_p3), %v4771_v18, %v4770_v53  ;;  %v4772_v44 = vld [vmem:[%s9688_s19 + $0x30] sm:$0xff] (!%p4760_p3) }
 0x8ee   : > { %v4651_v59 = vmul.f32 %v4580_v0, %v4324_v14  ;;  %6093 = vmatprep.subr.bf16.mxu1 %v6092_v28  ;;  %v4774_v0 = vld [vmem:[%s9688_s19 + $0x40] sm:$0xff] (!%p4760_p3) }
 0x8ef   : > { %6095 = vmatpush3.bf16.msra.mxu1 %v6092_v28  ;;  %v4773_v28 = vld [vmem:[%s9688_s19 + $0x38] sm:$0xff] (!%p4760_p3) }
 0x8f0   : > { %v6096_v35 = vpack.c.bf16 %v4652_v7, %v4651_v59  ;;  %v5803_v3 = vpop.f32.mrb[4].mxu0  ;;  %v6136_v7 = vpack.c.bf16 (!%p4760_p3), %v4773_v28, %v4772_v44  ;;  %v4775_v59 = vld [vmem:[%s9688_s19 + $0x48] sm:$0xff] (!%p4760_p3) }
 0x8f1   : > { %v4654_v13 = vmul.f32 %v5803_v3, %v4327_v33  ;;  %v4590_v31 = vpop.f32.mrb[5].mxu0  ;;  %v6140_v33 = vpack.c.bf16 (!%p4760_p3), %v4775_v59, %v4774_v0 }
 0x8f2   : > { %v4653_v54 = vmul.f32 %v4590_v31, %v4326_v25  ;;  %6097 = vmatprep.subr.bf16.mxu1 %v6096_v35  ;;  %v4776_v25 = vld [vmem:[%s9688_s19 + $0x50] sm:$0xff] (!%p4760_p3)  ;;  %v4779_v31 = vld [vmem:[%s9688_s19 + $0x68] sm:$0xff] (!%p4760_p3) }
 0x8f3   : > { %6099 = vmatpush3.bf16.msra.mxu1 %v6096_v35  ;;  %v4777_v35 = vld [vmem:[%s9688_s19 + $0x58] sm:$0xff] (!%p4760_p3) }
 0x8f4   : > { %v6100_v60 = vpack.c.bf16 %v4654_v13, %v4653_v54  ;;  %v5806_v46 = vpop.f32.mrb[6].mxu0  ;;  %v6144_v3 = vpack.c.bf16 (!%p4760_p3), %v4777_v35, %v4776_v25  ;;  %v4778_v13 = vld [vmem:[%s9688_s19 + $0x60] sm:$0xff] (!%p4760_p3) }
 0x8f5   : > { %v4656_v19 = vmul.f32 %v5806_v46, %v4329_v52  ;;  %v4600_v49 = vpop.f32.mrb[7].mxu0  ;;  %v6148_v54 = vpack.c.bf16 (!%p4760_p3), %v4779_v31, %v4778_v13  ;;  %v4780_v52 = vld [vmem:[%s9688_s19 + $0x70] sm:$0xff] (!%p4760_p3) }
 0x8f6   : > { %v4655_v62 = vmul.f32 %v4600_v49, %v4328_v2  ;;  %6101 = vmatprep.subr.bf16.mxu1 %v6100_v60  ;;  %v4781_v2 = vld [vmem:[%s9688_s19 + $0x78] sm:$0xff] (!%p4760_p3) }
 0x8f7   : > { %6103 = vmatpush3.bf16.msra.mxu1 %v6100_v60  ;;  %v6152_v60 = vpack.c.bf16 (!%p4760_p3), %v4781_v2, %v4780_v52  ;;  %v4903_v49 = vld [vmem:[#allocation8 + $0x8] sm:$0xff] (!%p4760_p3) }
 0x8f8   : > { %v6104_v12 = vpack.c.bf16 %v4656_v19, %v4655_v62  ;;  %v5809_v10 = vpop.f32.mrb[8].mxu0  ;;  %v4902_v19 = vld [vmem:[#allocation8] sm:$0xff] (!%p4760_p3)  ;;  %v5366_v2 = vld [vmem:[%s9690_s30] ss:$0 sm:$0xff] (!%p4760_p3) }
 0x8f9   : > { %v4658_v21 = vmul.f32 %v5809_v10, %v4331_v9  ;;  %v4610_v55 = vpop.f32.mrb[9].mxu0  ;;  %v6156_v62 = vpack.c.bf16 (!%p4760_p3), %v4903_v49, %v4902_v19  ;;  %v4904_v9 = vld [vmem:[#allocation8 + $0x10] sm:$0xff] (!%p4760_p3) }
 0x8fa   : > { %v4657_v34 = vmul.f32 %v4610_v55, %v4330_v63  ;;  %6105 = vmatprep.subr.bf16.mxu1 %v6104_v12  ;;  %v4905_v63 = vld [vmem:[#allocation8 + $0x18] sm:$0xff] (!%p4760_p3) }
 0x8fb   : > { %6107 = vmatpush3.bf16.msra.mxu1 %v6104_v12  ;;  %v4906_v12 = vld [vmem:[#allocation8 + $0x20] sm:$0xff] (!%p4760_p3)  ;;  %v6160_v10 = vpack.c.bf16 (!%p4760_p3), %v4905_v63, %v4904_v9 }
 0x8fc   : > { %v6108_v11 = vpack.c.bf16 %v4658_v21, %v4657_v34  ;;  %v5812_v16 = vpop.f32.mrb[10].mxu0  ;;  %v4907_v21 = vld [vmem:[#allocation8 + $0x28] sm:$0xff] (!%p4760_p3)  ;;  %v4908_v34 = vld [vmem:[#allocation8 + $0x30] sm:$0xff] (!%p4760_p3) }
 0x8fd   : > { %v4660_v58 = vmul.f32 %v5812_v16, %v4333_v8  ;;  %v4620_v56 = vpop.f32.mrb[11].mxu0  ;;  %v6164_v55 = vpack.c.bf16 (!%p4760_p3), %v4907_v21, %v4906_v12  ;;  %v4909_v8 = vld [vmem:[#allocation8 + $0x38] sm:$0xff] (!%p4760_p3)  ;;  %v4911_v16 = vld [vmem:[#allocation8 + $0x48] sm:$0xff] (!%p4760_p3) }
 0x8fe   : > { %v4659_v38 = vmul.f32 %v4620_v56, %v4332_v61  ;;  %6109 = vmatprep.subr.bf16.mxu1 %v6108_v11  ;;  %v6168_v61 = vpack.c.bf16 (!%p4760_p3), %v4909_v8, %v4908_v34  ;;  %v4912_v56 = vld [vmem:[#allocation8 + $0x50] sm:$0xff] (!%p4760_p3) }
 0x8ff   : > { %6111 = vmatpush3.bf16.msra.mxu1 %v6108_v11  ;;  %v4910_v11 = vld [vmem:[#allocation8 + $0x40] sm:$0xff] (!%p4760_p3) }
 0x900   : > { %v6112_v23 = vpack.c.bf16 %v4660_v58, %v4659_v38  ;;  %v5815_v27 = vpop.f32.mrb[12].mxu0  ;;  %v6172_v58 = vpack.c.bf16 (!%p4760_p3), %v4911_v16, %v4910_v11  ;;  %v4913_v38 = vld [vmem:[#allocation8 + $0x58] sm:$0xff] (!%p4760_p3) }
 0x901   : > { %v4662_v39 = vmul.f32 %v5815_v27, %v4335_v5  ;;  %v4630_v50 = vpop.f32.mrb[13].mxu0  ;;  %v6176_v5 = vpack.c.bf16 (!%p4760_p3), %v4913_v38, %v4912_v56 }
 0x902   : > { %v4661_v36 = vmul.f32 %v4630_v50, %v4334_v22  ;;  %6113 = vmatprep.subr.bf16.mxu1 %v6112_v23  ;;  %v4914_v22 = vld [vmem:[#allocation8 + $0x60] sm:$0xff] (!%p4760_p3)  ;;  %v4917_v50 = vld [vmem:[#allocation8 + $0x78] sm:$0xff] (!%p4760_p3) }
 0x903   : > { %6115 = vmatpush3.bf16.msra.mxu1 %v6112_v23  ;;  %v4915_v23 = vld [vmem:[#allocation8 + $0x68] sm:$0xff] (!%p4760_p3) }
 0x904   : > { %v6116_v1 = vpack.c.bf16 %v4662_v39, %v4661_v36  ;;  %v5818_v17 = vpop.f32.mrb[14].mxu0  ;;  %v6180_v27 = vpack.c.bf16 (!%p4760_p3), %v4915_v23, %v4914_v22  ;;  %v4916_v39 = vld [vmem:[#allocation8 + $0x70] sm:$0xff] (!%p4760_p3) }
 0x905   : > { %v4664_v15 = vmul.f32 %v5818_v17, %v4337_v4  ;;  %v4640_v43 = vpop.f32.mrb[15].mxu0  ;;  %v6184_v36 = vpack.c.bf16 (!%p4760_p3), %v4917_v50, %v4916_v39  ;;  %v5363_v4 = vld [vmem:[%s9689_s20] ss:$0 sm:$0xff] (!%p4760_p3) }
 0x906   : > { %v4663_v20 = vmul.f32 %v4640_v43, %v4336_v37  ;;  %6117 = vmatprep.subr.bf16.mxu1 %v6116_v1 }
 0x907   : > { %6119 = vmatpush3.bf16.msra.mxu1 %v6116_v1 }
 0x908   : > { %v6120_v40 = vpack.c.bf16 %v4664_v15, %v4663_v20 }
 0x90a   : > { %6121 = vmatprep.subr.bf16.mxu1 %v6120_v40 }
 0x90b   : > { %6123 = vmatpush3.bf16.msra.mxu1 %v6120_v40 }
 0x90c   : > { %6157 = vmatprep.subr.bf16.mxu1 (!%p4760_p3), %v6156_v62 }
 0x90e   : > { %5852 = vmatmul.mubr.msk.f32.vlgmr.msra.gmra.mrb[0].mxu1 %vm4673_vm11, %v6753_v51  ;;  %v6124_v51 = vpack.c.bf16 (!%p4760_p3), %v4767_v47, %v4766_v24 }
 0x90f   : > { %6159 = vmatpush3.bf16.msra.mxu1 (!%p4760_p3), %v6156_v62 }
 0x910   : > { %6125 = vmatprep.subr.bf16.mxu0 (!%p4760_p3), %v6124_v51  ;;  %6161 = vmatprep.subr.bf16.mxu1 (!%p4760_p3), %v6160_v10 }
 0x911   : > { %6127 = vmatpush3.bf16.msra.mxu0 (!%p4760_p3), %v6124_v51 }
 0x912   : > { %6129 = vmatprep.subr.bf16.mxu0 (!%p4760_p3), %v6128_v30 }
 0x913   : > { %6163 = vmatpush3.bf16.msra.mxu1 (!%p4760_p3), %v6160_v10 }
 0x914   : > { %6165 = vmatprep.subr.bf16.mxu1 (!%p4760_p3), %v6164_v55 }
 0x915   : > { %6131 = vmatpush3.bf16.msra.mxu0 (!%p4760_p3), %v6128_v30 }
 0x916   : > { %6133 = vmatprep.subr.bf16.mxu0 (!%p4760_p3), %v6132_v41 }
 0x917   : > { %6167 = vmatpush3.bf16.msra.mxu1 (!%p4760_p3), %v6164_v55 }
 0x918   : > { %6169 = vmatprep.subr.bf16.mxu1 (!%p4760_p3), %v6168_v61 }
 0x919   : > { %6135 = vmatpush3.bf16.msra.mxu0 (!%p4760_p3), %v6132_v41 }
 0x91a   : > { %6137 = vmatprep.subr.bf16.mxu0 (!%p4760_p3), %v6136_v7 }
 0x91b   : > { %6171 = vmatpush3.bf16.msra.mxu1 (!%p4760_p3), %v6168_v61 }
 0x91c   : > { %6173 = vmatprep.subr.bf16.mxu1 (!%p4760_p3), %v6172_v58 }
 0x91d   : > { %6139 = vmatpush3.bf16.msra.mxu0 (!%p4760_p3), %v6136_v7 }
 0x91e   : > { %6141 = vmatprep.subr.bf16.mxu0 (!%p4760_p3), %v6140_v33 }
 0x91f   : > { %6175 = vmatpush3.bf16.msra.mxu1 (!%p4760_p3), %v6172_v58 }
 0x920   : > { %6177 = vmatprep.subr.bf16.mxu1 (!%p4760_p3), %v6176_v5 }
 0x921   : > { %6143 = vmatpush3.bf16.msra.mxu0 (!%p4760_p3), %v6140_v33 }
 0x922   : > { %6145 = vmatprep.subr.bf16.mxu0 (!%p4760_p3), %v6144_v3 }
 0x923   : > { %6179 = vmatpush3.bf16.msra.mxu1 (!%p4760_p3), %v6176_v5 }
 0x924   : > { %6181 = vmatprep.subr.bf16.mxu1 (!%p4760_p3), %v6180_v27 }
 0x925   : > { %6147 = vmatpush3.bf16.msra.mxu0 (!%p4760_p3), %v6144_v3 }
 0x926   : > { %6149 = vmatprep.subr.bf16.mxu0 (!%p4760_p3), %v6148_v54 }
 0x927   : > { %6183 = vmatpush3.bf16.msra.mxu1 (!%p4760_p3), %v6180_v27 }
 0x928   : > { %6185 = vmatprep.subr.bf16.mxu1 (!%p4760_p3), %v6184_v36 }
 0x929   : > { %6151 = vmatpush3.bf16.msra.mxu0 (!%p4760_p3), %v6148_v54 }
 0x92a   : > { %6153 = vmatprep.subr.bf16.mxu0 (!%p4760_p3), %v6152_v60 }
 0x92b   : > { %6187 = vmatpush3.bf16.msra.mxu1 (!%p4760_p3), %v6184_v36 }
 0x92d   : > { %6155 = vmatpush3.bf16.msra.mxu0 (!%p4760_p3), %v6152_v60 }
 0x9df   : > { %4763 = sbr.rel (%p4760_p3) target bundleno = 3050 (0xbea), region = 128 }
 0x9e1   : > { %v5853_v48 = vpop.f32.mrb[0].mxu1 }
 0x9e2   : > { %v4756_v45 = vadd.f32 %v5853_v48, %v4679_v26  ;;  %v4746_v6 = vpop.f32.mrb[1].mxu1 }
 0x9e3   : > { %v4755_v29 = vadd.f32 %v4746_v6, %v4678_v42 }
 0x9e4   : > { %4758 = vst [vmem:[#allocation4 + $0x8] sm:$0xff] %v4756_v45 }
 0x9e5   : > { %4757 = vst [vmem:[#allocation4] sm:$0xff] %v4755_v29 }
 0x9eb   : > { %v4765_v46 = vld [vmem:[#allocation4 + $0x8] sm:$0xff] }
 0x9ec   : > { %v4764_v14 = vld [vmem:[#allocation4] sm:$0xff] }
 0x9ed   : > { %5886 = vmatprep.mubr.f32.mxu0 %v4764_v14 }
 0x9ee   : > { %5887 = vmatmul.mubr.f32.vlgmr.msra.gmra.mrb[0].mxu0 %v4765_v46 }
 0xac1   : > { %v5888_v37 = vpop.f32.mrb[0].mxu0 }
 0xac2   : > { %v4861_v1 = vadd.f32 %v5888_v37, %v5363_v4  ;;  %v4855_v17 = vpop.f32.mrb[1].mxu0 }
 0xac3   : > { %v4856_v15 = vadd.f32 %v5363_v4, %v4855_v17 }
 0xac4   : > { %v4871_v43 = vand.u32 2147483647, %v4861_v1  ;;  %v4865_v28 = vmax.f32 %v4861_v1, 0.0  ;;  %vm4867_vm13 = vcmp.ne.f32.partialorder %v4861_v1, %v4861_v1 }
 0xac5   : > { %v4870_v20 = vand.u32 2147483647, %v4856_v15  ;;  %v4864_v59 = vmax.f32 %v4856_v15, 0.0  ;;  %vm4866_vm14 = vcmp.ne.f32.partialorder %v4856_v15, %v4856_v15 }
 0xac6   : > { %v4873_v40 = vsub.f32 0.0, %v4871_v43 }
 0xac7   : > { %v4872_v26 = vsub.f32 0.0, %v4870_v20 }
 0xac8   : > { %v4876_v42 = vmul.f32 1.442695, %v4873_v40 }
 0xac9   : > { %v4874_v48 = vmul.f32 1.442695, %v4872_v26 }
 0xaca   : > { %6554 = vpow2.f32 %v4876_v42 }
 0xacb   : > { %6556 = vpow2.f32 %v4874_v48 }
 0xad4   : > { %v6555_v45 = vpop.eup %6554 }
 0xad5   : > { %v6557_v6 = vpop.eup %6556  ;;  %v4887_v29 = vadd.f32 1.0, %v6555_v45  ;;  %v4890_v47 = vmul.f32 -0.5, %v6555_v45  ;;  %v4893_v30 = vand.u32 2147483647, %v6555_v45 }
 0xad6   : > { %v4878_v24 = vadd.f32 1.0, %v6557_v6  ;;  %v4881_v32 = vmul.f32 -0.5, %v6557_v6  ;;  %v4884_v53 = vand.u32 2147483647, %v6557_v6 }
 0xad7   : > { %6558 = vlog2.f32 %v4887_v29  ;;  %v4891_v51 = vadd.f32 1.0, %v4890_v47  ;;  %vm4894_vm8 = vcmp.lt.f32.partialorder %v4893_v30, 0.0004427343 }
 0xad8   : > { %6560 = vlog2.f32 %v4878_v24  ;;  %v4882_v57 = vadd.f32 1.0, %v4881_v32  ;;  %vm4885_vm12 = vcmp.lt.f32.partialorder %v4884_v53, 0.0004427343 }
 0xad9   : > { %v4892_v44 = vmul.f32 %v6555_v45, %v4891_v51 }
 0xada   : > { %v4883_v0 = vmul.f32 %v6557_v6, %v4882_v57 }
 0xae1   : > { %v6559_v18 = vpop.eup %6558 }
 0xae2   : > { %v6561_v41 = vpop.eup %6560  ;;  %v4889_v14 = vmul.f32 0.6931472, %v6559_v18 }
 0xae3   : > { %v4880_v7 = vmul.f32 0.6931472, %v6561_v41 }
 0xae4   : > { %v4895_v33 = vsel %vm4894_vm8, %v4892_v44, %v4889_v14 }
 0xae5   : > { %v4886_v25 = vsel %vm4885_vm12, %v4883_v0, %v4880_v7  ;;  %v4897_v35 = vadd.f32 %v4895_v33, %v4865_v28 }
 0xae6   : > { %v4896_v3 = vadd.f32 %v4886_v25, %v4864_v59 }
 0xae7   : > { %v4899_v13 = vsel %vm4867_vm13, %v4861_v1, %v4897_v35 }
 0xae8   : > { %v4898_v31 = vsel %vm4866_vm14, %v4856_v15, %v4896_v3  ;;  %v5365_v52 = vadd.f32 -0.6931472, %v4899_v13 }
 0xae9   : > { %v5364_v54 = vadd.f32 -0.6931472, %v4898_v31 }
 0xaeb   : > { %5921 = vmatprep.mubr.f32.mxu1 %v5364_v54 }
 0xaec   : > { %5922 = vmatmul.mubr.f32.vlgmr.msra.gmra.mrb[0].mxu1 %v5365_v52 }
 0xbbf   : > { %v5923_v60 = vpop.f32.mrb[0].mxu1 }
 0xbc0   : > { %v4997_v46 = vadd.f32 %v5923_v60, %v5366_v2  ;;  %v4991_v19 = vpop.f32.mrb[1].mxu1 }
 0xbc1   : > { %v4992_v49 = vadd.f32 %v5366_v2, %v4991_v19 }
 0xbc2   : > { %v5007_v62 = vand.u32 2147483647, %v4997_v46  ;;  %v5001_v50 = vmax.f32 %v4997_v46, 0.0  ;;  %vm5003_vm3 = vcmp.ne.f32.partialorder %v4997_v46, %v4997_v46 }
 0xbc3   : > { %v5006_v9 = vand.u32 2147483647, %v4992_v49  ;;  %v5000_v1 = vmax.f32 %v4992_v49, 0.0  ;;  %vm5002_vm4 = vcmp.ne.f32.partialorder %v4992_v49, %v4992_v49 }
 0xbc4   : > { %v5009_v63 = vsub.f32 0.0, %v5007_v62 }
 0xbc5   : > { %v5008_v12 = vsub.f32 0.0, %v5006_v9 }
 0xbc6   : > { %v5012_v10 = vmul.f32 1.442695, %v5009_v63 }
 0xbc7   : > { %v5010_v21 = vmul.f32 1.442695, %v5008_v12 }
 0xbc8   : > { %6562 = vpow2.f32 %v5012_v10 }
 0xbc9   : > { %6564 = vpow2.f32 %v5010_v21 }
 0xbd2   : > { %v6563_v55 = vpop.eup %6562 }
 0xbd3   : > { %v6565_v34 = vpop.eup %6564  ;;  %v5023_v8 = vadd.f32 1.0, %v6563_v55  ;;  %v5026_v11 = vmul.f32 -0.5, %v6563_v55  ;;  %v5029_v56 = vand.u32 2147483647, %v6563_v55 }
 0xbd4   : > { %v5014_v61 = vadd.f32 1.0, %v6565_v34  ;;  %v5017_v16 = vmul.f32 -0.5, %v6565_v34  ;;  %v5020_v5 = vand.u32 2147483647, %v6565_v34 }
 0xbd5   : > { %6566 = vlog2.f32 %v5023_v8  ;;  %v5027_v58 = vadd.f32 1.0, %v5026_v11  ;;  %vm5030_vm1 = vcmp.lt.f32.partialorder %v5029_v56, 0.0004427343 }
 0xbd6   : > { %6568 = vlog2.f32 %v5014_v61  ;;  %v5018_v38 = vadd.f32 1.0, %v5017_v16  ;;  %vm5021_vm2 = vcmp.lt.f32.partialorder %v5020_v5, 0.0004427343 }
 0xbd7   : > { %v5028_v39 = vmul.f32 %v6563_v55, %v5027_v58 }
 0xbd8   : > { %v5019_v4 = vmul.f32 %v6565_v34, %v5018_v38 }
 0xbdf   : > { %v6567_v22 = vpop.eup %6566 }
 0xbe0   : > { %v6569_v23 = vpop.eup %6568  ;;  %v5025_v27 = vmul.f32 0.6931472, %v6567_v22 }
 0xbe1   : > { %v5016_v36 = vmul.f32 0.6931472, %v6569_v23 }
 0xbe2   : > { %v5031_v37 = vsel %vm5030_vm1, %v5028_v39, %v5025_v27 }
 0xbe3   : > { %v5033_v17 = vadd.f32 %v5031_v37, %v5001_v50  ;;  %v5022_v15 = vsel %vm5021_vm2, %v5019_v4, %v5016_v36 }
 0xbe4   : > { %v5032_v43 = vadd.f32 %v5022_v15, %v5000_v1 }
 0xbe5   : > { %v5035_v20 = vsel %vm5003_vm3, %v4997_v46, %v5033_v17 }
 0xbe6   : > { %v5368_v40 = vadd.f32 -0.6931472, %v5035_v20  ;;  %v5034_v26 = vsel %vm5002_vm4, %v4992_v49, %v5032_v43 }
 0xbe7   : > { %v5367_v42 = vadd.f32 -0.6931472, %v5034_v26 }
 0xbe8   : > { %5039 = vst [vmem:[#allocation10 + $0x8] sm:$0xff] %v5368_v40 }
 0xbe9   : > { %5038 = vst [vmem:[#allocation10] sm:$0xff] %v5367_v42 }
 0xbea PF: > { %s9691_s27 = sadd.s32 4294967295, %s6728_s0   ;;  %s6754_s5 = smov [#allocation10]  }
 0xbeb   : > { %p9450_p6 = scmp.eq.s32.totalorder %s9691_s27, 3  ;;  %s5046_s24 = sshll.u32 %s6754_s5, 4  ;;  %s5047_s24 = int_to_ptr.vmem [resolvable:$true] %s5046_s24 }
 0xbec   : > { %s6628_s26 = scalar_lea.vmem %s5047_s24, 256  ;;  %p6635_p7 = scmp.lt.s32.totalorder %s5047_s24, %s5047_s24 }
 0xbed   : > { %p6629_p2 = scmp.ne.s32.totalorder %s5047_s24, %s6628_s26  ;;  %p6636_p4 = scmp.lt.s32.totalorder %s6628_s26, %s6628_s26 }
 0xbef   : > { %p6630_p13 = pnand %p6629_p2, %p9450_p6  ;;  %p6637_p5 = por %p6636_p4, %p6635_p7 }
 0xbf1   : > { %p6631_p1 = pneg %p6630_p13 }
 0xbf3   : > { %p6638_p8 = pnand %p6637_p5, %p6631_p1 }
 0xbf5   : > { %6641 = shalt.err (!%p6638_p8)
}
 0xbf6   : > { %s9693_s16 = sld [smem:[#allocation37_spill]] }
 0xbfc   : > { %s6642_s1 = scalar_lea.hbm %s9693_s16, 256 }
 0xbfd   : > { %p6643_p9 = scmp.ne.s32.totalorder %s9693_s16, %s6642_s1  ;;  %p6648_p12 = scmp.lt.u32.totalorder %s6642_s1, %s9693_s16 }
 0xbff   : > { %p6644_p10 = pnand %p6643_p9, %p9450_p6 }
 0xc01   : > { %p6645_p11 = pneg %p6644_p10 }
 0xc03   : > { %p6650_p0 = pnand %p6648_p12, %p6645_p11 }
 0xc05   : > { %6653 = shalt.err (!%p6650_p0)
}
 0xc06   : > { %s6755_s20 = smov 128   ;;  %s6756_s10 = smov 8  }
 0xc07   : > { %6289 = dma.vmem_to_hbm [thread:$0]  (%p9450_p6), %s5047_s24, 256, %s9693_s16, [#allocation7], %s6755_s20, %s6755_s20, %s6756_s10  }
 0xc08   : > { %6695 = dma.done.wait (%p9450_p6), [#allocation7], 256  }
 0xc09   : > { %6697 = vsyncadd (%p9450_p6), [#allocation7], 4294967040 }
 0xc0a PF: > { %s36_s0 = sadd.s32 1, %s6728_s0   ;;  %s9694_s2 = sld [smem:[#allocation14_spill]] }
 0xc0b   : > { %p33_p3 = scmp.ge.s32.totalorder %s36_s0, 6   ;;  %s9695_s25 = sld [smem:[#allocation15_spill]] }
 0xc0c   : > { %s9696_s26 = sld [smem:[#allocation20_spill]]  ;;  %s9697_s27 = sld [smem:[#allocation16_spill]] }
 0xc0d   : > { %s9698_s3 = sld [smem:[#allocation17_spill]]  ;;  %s9699_s28 = sld [smem:[#allocation18_spill]] }
 0xc0e   : > { %s9700_s29 = sld [smem:[#allocation19_spill]]  ;;  %35 = sbr.rel (!%p33_p3) target bundleno = 20 (0x14), region = 172 }
 0xc15   :  { %5062 = vsyncpa [#allocation6], 1 }
 0xc16   :  { %5064 = vsyncpa [#allocation6 + $0x1], 1 }
 0xc17   :  { %5065 = vsyncpa [#allocation9], 1 }
 0xc18   :  { %5066 = vsyncpa [#allocation7], 1 }
 0xc19   :  { %5068 = vsyncpa [#allocation7 + $0x1], 1 }

</bundles_post_ra>
